<compile_context>
chip_gen: v6e
topology: v6e:2x2x1
jax: 0.10.0
libtpu: 0.0.40
codegen_flags: <defaults>
</compile_context>

<pallas_src>
import math

import jax
import jax.numpy as jnp
from jax import lax
from jax.experimental import pallas as pl
from jax.experimental.pallas import tpu as pltpu


_INV_SQRT2 = 1.0 / math.sqrt(2.0)
_PAD_CLASSES = 128        # lane-dense logits width (real classes = 2)
_NEG_BIG = -1e30          # bias on padded logit columns -> exp() underflows to 0


def _gelu(x):
    # Exact (erf-based) GELU, matching torch.nn.GELU() default.
    return 0.5 * x * (1.0 + lax.erf(x * _INV_SQRT2))


def _make_kernel(use_bf16_elementwise):
    """Kernel factory; the element-wise-GELU dtype is a compile-time choice."""

    def act(z_f32):
        # Returns a bf16, dot-ready activation. On v6e/v7x the GELU itself runs
        # in bf16 (halves VPU/EUP vreg count); on v5e it stays f32 then casts.
        if use_bf16_elementwise:
            return _gelu(z_f32.astype(jnp.bfloat16))
        return _gelu(z_f32).astype(jnp.bfloat16)

    def kernel(x_ref, pol_ref,
               w1l_ref, b1l_ref, w1g_ref, b1g_ref,
               w2t_ref, w2b_ref, b2_ref,
               w3_ref, b3_ref,
               w4_ref, b4_ref,
               out_ref,
               pool_ref, den_ref, row_ref):
        p = pl.program_id(1)      # phase: 0 = pool accumulation, 1 = token MLP
        t = pl.program_id(2)      # token tile index

        # ---- shared: LayerNorm statistics (affine already folded into w1/b1) ----
        x = x_ref[...].astype(jnp.float32)                       # (tn, C)
        mean = jnp.mean(x, axis=-1, keepdims=True)
        var = jnp.mean((x - mean) * (x - mean), axis=-1, keepdims=True)
        xn = ((x - mean) * lax.rsqrt(var + 1e-5)).astype(jnp.bfloat16)

        @pl.when(jnp.logical_and(p == 0, t == 0))
        def _():
            pool_ref[...] = jnp.zeros_like(pool_ref)
            den_ref[...] = jnp.zeros_like(den_ref)

        # ---- phase 0: masked global pool over the "global" half of in_conv ----
        @pl.when(p == 0)
        def _():
            pol = pol_ref[...].astype(jnp.float32)               # (1, tn)
            hg = _gelu(jnp.dot(xn, w1g_ref[...],
                               preferred_element_type=jnp.float32)
                       + b1g_ref[...])                            # (tn, C/2) f32
            # pool numerator on the MXU: (1, tn) @ (tn, C/2); f32 accumulation.
            pool_ref[...] += jnp.dot(pol, hg,
                                     preferred_element_type=jnp.float32)
            den_ref[...] += jnp.sum(pol, axis=-1, keepdims=True)

        # ---- phase 1: token-parallel MLP + lane-dense log-softmax ----
        @pl.when(p == 1)
        def _():
            @pl.when(t == 0)
            def _():
                # NOTE: an all-zero policy gives inf/NaN, same as the PyTorch module.
                gx = pool_ref[...] * pl.reciprocal(den_ref[...], approx=True)
                # fold pooled-row contribution + b2 once per batch (no per-tile
                # broadcast of global_x; no concat).
                row_ref[...] = (jnp.dot(gx.astype(jnp.bfloat16), w2b_ref[...],
                                        preferred_element_type=jnp.float32)
                                + b2_ref[...])                    # (1, C/2)

            hl = act(jnp.dot(xn, w1l_ref[...],
                             preferred_element_type=jnp.float32) + b1l_ref[...])
            y = act(jnp.dot(hl, w2t_ref[...],
                            preferred_element_type=jnp.float32) + row_ref[...])
            y = act(jnp.dot(y, w3_ref[...],
                            preferred_element_type=jnp.float32) + b3_ref[...])

            logits = (jnp.dot(y, w4_ref[...],
                              preferred_element_type=jnp.float32)
                      + b4_ref[...])                              # (tn, 128) f32
            m = jnp.max(logits, axis=-1, keepdims=True)
            z = logits - m
            log_probs = z - jnp.log(jnp.sum(jnp.exp(z), axis=-1, keepdims=True))
            out_ref[...] = log_probs.astype(out_ref.dtype)

    return kernel


def predictor_lg(x, policy, params, *, token_tile=None):
    """x: (B, N, C) f32, policy: (B, N, 1) f32 -> (B, N, 2) f32 log-probs."""
    (ln_g, ln_b, w1, b1, w2, b2, w3, b3, w4, b4) = params
    B, N, C = x.shape
    assert C % 4 == 0, "embed_dim must be divisible by 4"
    half, quarter = C // 2, C // 4

    # ---- token tile: prefer 256 rows (fills v6e/v7x MXU), else 128, else N ----
    if token_tile is None:
        token_tile = next((c for c in (256, 128) if N % c == 0), N)
    assert N % token_tile == 0, "token_tile must divide N"
    assert token_tile == N or token_tile % 128 == 0
    tn = token_tile
    nt = N // tn

    # ---- generation-aware compile choices (static Python, no in-kernel branch) ----
    kind = jax.devices()[0].device_kind.lower()
    is_v7 = "v7" in kind
    use_bf16_ew = ("v6" in kind) or is_v7          # v5e has no bf16 VPU/EUP
    vmem_limit = (56 << 20) if is_v7 else (100 << 20)

    # ---- parameter preprocessing (one-time XLA ops outside the kernel) ----
    # Fold LayerNorm affine into w1/b1:  (z*g + b) @ w1 = z @ (diag(g) w1) + (b1 + b @ w1)
    w1f = w1 * ln_g.reshape(C, 1)
    b1f = b1 + ln_b @ w1                                   # (1, C)
    # Split w1 by output halves so phase 0 / phase 1 never repeat MXU work.
    w1l = w1f[:, :half].astype(jnp.bfloat16)               # local half
    w1g = w1f[:, half:].astype(jnp.bfloat16)               # global (pooled) half
    b1l = b1f[:, :half]
    b1g = b1f[:, half:]
    # Split w2 by input halves: top multiplies local tokens, bottom multiplies
    # the pooled row (once per batch).
    w2t = w2[:half].astype(jnp.bfloat16)
    w2b = w2[half:].astype(jnp.bfloat16)
    w3b = w3.astype(jnp.bfloat16)
    # Pad the 2-class head to 128 lanes (zero weight cols, -1e30 bias) so the
    # epilogue + stores are lane-dense; the wrapper slices back to 2 classes.
    w4p = jnp.zeros((quarter, _PAD_CLASSES), jnp.float32).at[:, :2].set(w4)
    w4p = w4p.astype(jnp.bfloat16)
    b4p = jnp.full((1, _PAD_CLASSES), _NEG_BIG, jnp.float32).at[:, :2].set(b4)

    pol_row = policy.reshape(B, 1, N)                      # lane-dense: (B, 1, N)

    def wspec(a):
        # Constant index_map + single buffering: weights/biases are resident,
        # not double-buffered (halves weight VMEM footprint).
        return pl.BlockSpec(a.shape, lambda b, p, t: (0,) * a.ndim,
                            pipeline_mode=pl.Buffered(1))

    kernel = _make_kernel(use_bf16_ew)

    out_padded = pl.pallas_call(
        kernel,
        out_shape=jax.ShapeDtypeStruct((B, N, _PAD_CLASSES), jnp.float32),
        grid_spec=pltpu.PrefetchScalarGridSpec(
            num_scalar_prefetch=0,
            grid=(B, 2, nt),
            in_specs=[
                # x token tile, fetched in both phases.
                pl.BlockSpec((None, tn, C), lambda b, p, t: (b, t, 0)),
                # policy tile; only used in phase 0 -> pinned to block 0 in phase 1.
                pl.BlockSpec((None, 1, tn), lambda b, p, t: (b, 0, t * (1 - p))),
                wspec(w1l), wspec(b1l), wspec(w1g), wspec(b1g),
                wspec(w2t), wspec(w2b), wspec(b2),
                wspec(w3b), wspec(b3),
                wspec(w4p), wspec(b4p),
            ],
            # During phase 0 the out index stays at (b, 0, 0) (never written, never
            # flushed); phase 1 writes tile t and it flushes on the next index change.
            out_specs=pl.BlockSpec((None, tn, _PAD_CLASSES),
                                   lambda b, p, t: (b, t * p, 0)),
            scratch_shapes=[
                pltpu.VMEM((1, half), jnp.float32),   # pool numerator
                pltpu.VMEM((1, 1), jnp.float32),      # pool denominator
                pltpu.VMEM((1, half), jnp.float32),   # pooled row @ w2_glob + b2
            ],
        ),
        compiler_params=pltpu.CompilerParams(
            dimension_semantics=("parallel", "arbitrary", "arbitrary"),
            vmem_limit_bytes=vmem_limit,
        ),
    )(x, pol_row, w1l, b1l, w1g, b1g, w2t, w2b, b2, w3b, b3, w4p, b4p)

    return out_padded[..., :2]


def init_params(key, embed_dim):
    """Deterministic synthetic parameters. Linear weights stored as (in, out)."""
    C = embed_dim
    ks = jax.random.split(key, 8)

    def lin(k, fan_in, fan_out):
        bound = 1.0 / math.sqrt(fan_in)
        kw, kb = jax.random.split(k)
        w = jax.random.uniform(kw, (fan_in, fan_out), jnp.float32, -bound, bound)
        b = jax.random.uniform(kb, (1, fan_out), jnp.float32, -bound, bound)
        return w, b

    # Non-trivial LN affine so the w1/b1 folding is actually exercised.
    ln_g = 1.0 + 0.1 * jax.random.normal(ks[4], (1, C), jnp.float32)
    ln_b = 0.1 * jax.random.normal(ks[5], (1, C), jnp.float32)
    w1, b1 = lin(ks[0], C, C)
    w2, b2 = lin(ks[1], C, C // 2)
    w3, b3 = lin(ks[2], C // 2, C // 4)
    w4, b4 = lin(ks[3], C // 4, 2)
    return (ln_g, ln_b, w1, b1, w2, b2, w3, b3, w4, b4)


def predictor_lg_ref(x, policy, params):
    """Pure-JAX f32 reference mirroring the PyTorch forward."""
    (ln_g, ln_b, w1, b1, w2, b2, w3, b3, w4, b4) = params
    B, N, C = x.shape
    mean = jnp.mean(x, -1, keepdims=True)
    var = jnp.mean((x - mean) ** 2, -1, keepdims=True)
    xn = (x - mean) / jnp.sqrt(var + 1e-5) * ln_g[0] + ln_b[0]
    h = _gelu(xn @ w1 + b1[0])
    local_x = h[:, :, : C // 2]
    global_x = jnp.sum(h[:, :, C // 2:] * policy, axis=1, keepdims=True) / \
        jnp.sum(policy, axis=1, keepdims=True)
    xcat = jnp.concatenate(
        [local_x, jnp.broadcast_to(global_x, (B, N, C // 2))], axis=-1)
    y = _gelu(xcat @ w2 + b2[0])
    y = _gelu(y @ w3 + b3[0])
    logits = y @ w4 + b4[0]
    return jax.nn.log_softmax(logits, axis=-1)


if __name__ == "__main__":
    key = jax.random.PRNGKey(0)
    k_x, k_p, k_w = jax.random.split(key, 3)

    B, N, C = 2, 256, 512    # small, lane-aligned (C/2=256, C/4=128)
    x = jax.random.normal(k_x, (B, N, C), jnp.float32)
    policy = jax.random.uniform(k_p, (B, N, 1), jnp.float32,
                                minval=0.1, maxval=1.0)
    params = init_params(k_w, C)

    ref = predictor_lg_ref(x, policy, params)

    # (1) explicit 128-token tiles: exercises the two-phase, multi-tile path.
    out_tiled = jax.block_until_ready(
        predictor_lg(x, policy, params, token_tile=128))
    # (2) auto tiling (256-token tiles, nt=1): exercises the full-tile path.
    out_auto = jax.block_until_ready(predictor_lg(x, policy, params))

    for out in (out_tiled, out_auto):
        assert out.shape == (B, N, 2)
        assert bool(jnp.all(jnp.isfinite(out)))
        max_err = float(jnp.max(jnp.abs(out - ref)))
        # bf16 matmul operands + approx reciprocal -> looser tolerance vs f32 ref.
        assert max_err < 5e-2, f"mismatch vs reference: max abs err = {max_err}"

    print("KERNEL_OK")
</pallas_src>

<mosaic_0001>
module attributes {stable_mosaic.version = 11 : i64} {
  func.func @kernel(%arg0: i32, %arg1: i32, %arg2: i32, %arg3: memref<1x128x512xf32, #tpu.memory_space<vmem>>, %arg4: memref<1x1x128xf32, #tpu.memory_space<vmem>>, %arg5: memref<512x256xbf16, #tpu.memory_space<vmem>>, %arg6: memref<1x256xf32, #tpu.memory_space<vmem>>, %arg7: memref<512x256xbf16, #tpu.memory_space<vmem>>, %arg8: memref<1x256xf32, #tpu.memory_space<vmem>>, %arg9: memref<256x256xbf16, #tpu.memory_space<vmem>>, %arg10: memref<256x256xbf16, #tpu.memory_space<vmem>>, %arg11: memref<1x256xf32, #tpu.memory_space<vmem>>, %arg12: memref<256x128xbf16, #tpu.memory_space<vmem>>, %arg13: memref<1x128xf32, #tpu.memory_space<vmem>>, %arg14: memref<128x128xbf16, #tpu.memory_space<vmem>>, %arg15: memref<1x128xf32, #tpu.memory_space<vmem>>, %arg16: memref<1x128x128xf32, #tpu.memory_space<vmem>>, %arg17: memref<1x256xf32, #tpu.memory_space<vmem>>, %arg18: memref<1x1xf32, #tpu.memory_space<vmem>>, %arg19: memref<1x256xf32, #tpu.memory_space<vmem>>) attributes {dimension_semantics = [#tpu.dimension_semantics<parallel>, #tpu.dimension_semantics<arbitrary>, #tpu.dimension_semantics<arbitrary>], iteration_bounds = array<i64: 2, 2, 2>, scalar_prefetch = 0 : i64, scratch_operands = 3 : i64, tpu.core_type = #tpu.core_type<tc>, window_params = [{transform_indices = @transform_0, window_bounds = array<i64: 1, 128, 512>}, {transform_indices = @transform_1, window_bounds = array<i64: 1, 1, 128>}, {pipeline_mode = #tpu.pipeline_mode<synchronous>, transform_indices = @transform_2, window_bounds = array<i64: 512, 256>}, {pipeline_mode = #tpu.pipeline_mode<synchronous>, transform_indices = @transform_3, window_bounds = array<i64: 1, 256>}, {pipeline_mode = #tpu.pipeline_mode<synchronous>, transform_indices = @transform_4, window_bounds = array<i64: 512, 256>}, {pipeline_mode = #tpu.pipeline_mode<synchronous>, transform_indices = @transform_5, window_bounds = array<i64: 1, 256>}, {pipeline_mode = #tpu.pipeline_mode<synchronous>, transform_indices = @transform_6, window_bounds = array<i64: 256, 256>}, {pipeline_mode = #tpu.pipeline_mode<synchronous>, transform_indices = @transform_7, window_bounds = array<i64: 256, 256>}, {pipeline_mode = #tpu.pipeline_mode<synchronous>, transform_indices = @transform_8, window_bounds = array<i64: 1, 256>}, {pipeline_mode = #tpu.pipeline_mode<synchronous>, transform_indices = @transform_9, window_bounds = array<i64: 256, 128>}, {pipeline_mode = #tpu.pipeline_mode<synchronous>, transform_indices = @transform_10, window_bounds = array<i64: 1, 128>}, {pipeline_mode = #tpu.pipeline_mode<synchronous>, transform_indices = @transform_11, window_bounds = array<i64: 128, 128>}, {pipeline_mode = #tpu.pipeline_mode<synchronous>, transform_indices = @transform_12, window_bounds = array<i64: 1, 128>}, {transform_indices = @transform_13, window_bounds = array<i64: 1, 128, 128>}]} {
    %c0 = arith.constant 0 : index
    %c0_0 = arith.constant 0 : index
    %c0_1 = arith.constant 0 : index
    %0 = vector.load %arg3[%c0, %c0_0, %c0_1] : memref<1x128x512xf32, #tpu.memory_space<vmem>>, vector<1x128x512xf32>
    %1 = vector.shape_cast %0 : vector<1x128x512xf32> to vector<128x512xf32>
    %cst = arith.constant dense<0.000000e+00> : vector<128xf32>
    %2 = vector.multi_reduction <add>, %1, %cst [1] : vector<128x512xf32> to vector<128xf32>
    %3 = vector.shape_cast %2 : vector<128xf32> to vector<128x1xf32>
    %cst_2 = arith.constant 5.120000e+02 : f32
    %4 = vector.broadcast %cst_2 : f32 to vector<128x1xf32>
    %5 = arith.divf %3, %4 : vector<128x1xf32>
    %6 = vector.broadcast %5 : vector<128x1xf32> to vector<128x512xf32>
    %7 = arith.subf %1, %6 : vector<128x512xf32>
    %8 = vector.broadcast %5 : vector<128x1xf32> to vector<128x512xf32>
    %9 = arith.subf %1, %8 : vector<128x512xf32>
    %10 = arith.mulf %7, %9 : vector<128x512xf32>
    %cst_3 = arith.constant dense<0.000000e+00> : vector<128xf32>
    %11 = vector.multi_reduction <add>, %10, %cst_3 [1] : vector<128x512xf32> to vector<128xf32>
    %12 = vector.shape_cast %11 : vector<128xf32> to vector<128x1xf32>
    %cst_4 = arith.constant 5.120000e+02 : f32
    %13 = vector.broadcast %cst_4 : f32 to vector<128x1xf32>
    %14 = arith.divf %12, %13 : vector<128x1xf32>
    %15 = vector.broadcast %5 : vector<128x1xf32> to vector<128x512xf32>
    %16 = arith.subf %1, %15 : vector<128x512xf32>
    %cst_5 = arith.constant 9.99999974E-6 : f32
    %17 = vector.broadcast %cst_5 : f32 to vector<128x1xf32>
    %18 = arith.addf %14, %17 : vector<128x1xf32>
    %19 = math.rsqrt %18 : vector<128x1xf32>
    %20 = vector.broadcast %19 : vector<128x1xf32> to vector<128x512xf32>
    %21 = arith.mulf %16, %20 : vector<128x512xf32>
    %22 = arith.truncf %21 : vector<128x512xf32> to vector<128x512xbf16>
    %c0_i32 = arith.constant 0 : i32
    %23 = arith.cmpi eq, %arg1, %c0_i32 : i32
    %c0_i32_6 = arith.constant 0 : i32
    %24 = arith.cmpi eq, %arg2, %c0_i32_6 : i32
    %25 = arith.andi %23, %24 : i1
    %26 = arith.extui %25 : i1 to i32
    %c0_i32_7 = arith.constant 0 : i32
    %27 = arith.cmpi ne, %26, %c0_i32_7 : i32
    scf.if %27 {
      %cst_11 = arith.constant 0.000000e+00 : f32
      %34 = vector.broadcast %cst_11 : f32 to vector<1x256xf32>
      %c0_12 = arith.constant 0 : index
      %c0_13 = arith.constant 0 : index
      %35 = vector.load %arg17[%c0_12, %c0_13] : memref<1x256xf32, #tpu.memory_space<vmem>>, vector<1x256xf32>
      tpu.vector_store %arg17[%c0_12, %c0_13], %34 {strides = array<i32>} : memref<1x256xf32, #tpu.memory_space<vmem>>, vector<1x256xf32>,
      %cst_14 = arith.constant 0.000000e+00 : f32
      %36 = vector.broadcast %cst_14 : f32 to vector<1x1xf32>
      %c0_15 = arith.constant 0 : index
      %c0_16 = arith.constant 0 : index
      %37 = vector.load %arg18[%c0_15, %c0_16] : memref<1x1xf32, #tpu.memory_space<vmem>>, vector<1x1xf32>
      tpu.vector_store %arg18[%c0_15, %c0_16], %36 {strides = array<i32>} : memref<1x1xf32, #tpu.memory_space<vmem>>, vector<1x1xf32>,
    } else {
    }
    %c0_i32_8 = arith.constant 0 : i32
    %28 = arith.cmpi eq, %arg1, %c0_i32_8 : i32
    %29 = arith.extui %28 : i1 to i32
    %c0_i32_9 = arith.constant 0 : i32
    %30 = arith.cmpi ne, %29, %c0_i32_9 : i32
    scf.if %30 {
      %c0_11 = arith.constant 0 : index
      %c0_12 = arith.constant 0 : index
      %c0_13 = arith.constant 0 : index
      %34 = vector.load %arg4[%c0_11, %c0_12, %c0_13] : memref<1x1x128xf32, #tpu.memory_space<vmem>>, vector<1x1x128xf32>
      %35 = vector.shape_cast %34 : vector<1x1x128xf32> to vector<1x128xf32>
      %c0_14 = arith.constant 0 : index
      %c0_15 = arith.constant 0 : index
      %36 = vector.load %arg7[%c0_14, %c0_15] : memref<512x256xbf16, #tpu.memory_space<vmem>>, vector<512x256xbf16>
      %cst_16 = arith.constant dense<0.000000e+00> : vector<128x256xf32>
      %37 = tpu.matmul %22, %36, %cst_16 {dimension_numbers = #tpu.dot_dimension_numbers<[1], [0], [0], [1], [0, 0, 1, 1], [], []>} : vector<128x512xbf16>, vector<512x256xbf16>, vector<128x256xf32> -> vector<128x256xf32>
      %c0_17 = arith.constant 0 : index
      %c0_18 = arith.constant 0 : index
      %38 = vector.load %arg8[%c0_17, %c0_18] : memref<1x256xf32, #tpu.memory_space<vmem>>, vector<1x256xf32>
      %39 = vector.broadcast %38 : vector<1x256xf32> to vector<128x256xf32>
      %40 = arith.addf %37, %39 : vector<128x256xf32>
      %cst_19 = arith.constant 5.000000e-01 : f32
      %41 = vector.broadcast %cst_19 : f32 to vector<128x256xf32>
      %42 = arith.mulf %41, %40 : vector<128x256xf32>
      %cst_20 = arith.constant 0.707106769 : f32
      %43 = vector.broadcast %cst_20 : f32 to vector<128x256xf32>
      %44 = arith.mulf %40, %43 : vector<128x256xf32>
      %45 = math.erf %44 : vector<128x256xf32>
      %cst_21 = arith.constant 1.000000e+00 : f32
      %46 = vector.broadcast %cst_21 : f32 to vector<128x256xf32>
      %47 = arith.addf %46, %45 : vector<128x256xf32>
      %48 = arith.mulf %42, %47 : vector<128x256xf32>
      %c0_22 = arith.constant 0 : index
      %c0_23 = arith.constant 0 : index
      %49 = vector.load %arg17[%c0_22, %c0_23] : memref<1x256xf32, #tpu.memory_space<vmem>>, vector<1x256xf32>
      %cst_24 = arith.constant dense<0.000000e+00> : vector<1x256xf32>
      %50 = tpu.matmul %35, %48, %cst_24 {dimension_numbers = #tpu.dot_dimension_numbers<[1], [0], [0], [1], [0, 0, 1, 1], [], []>} : vector<1x128xf32>, vector<128x256xf32>, vector<1x256xf32> -> vector<1x256xf32>
      %51 = arith.addf %49, %50 : vector<1x256xf32>
      %c0_25 = arith.constant 0 : index
      %c0_26 = arith.constant 0 : index
      %52 = vector.load %arg17[%c0_25, %c0_26] : memref<1x256xf32, #tpu.memory_space<vmem>>, vector<1x256xf32>
      tpu.vector_store %arg17[%c0_25, %c0_26], %51 {strides = array<i32>} : memref<1x256xf32, #tpu.memory_space<vmem>>, vector<1x256xf32>,
      %c0_27 = arith.constant 0 : index
      %c0_28 = arith.constant 0 : index
      %53 = vector.load %arg18[%c0_27, %c0_28] : memref<1x1xf32, #tpu.memory_space<vmem>>, vector<1x1xf32>
      %cst_29 = arith.constant dense<0.000000e+00> : vector<1xf32>
      %54 = vector.multi_reduction <add>, %35, %cst_29 [1] : vector<1x128xf32> to vector<1xf32>
      %55 = vector.shape_cast %54 : vector<1xf32> to vector<1x1xf32>
      %56 = arith.addf %53, %55 : vector<1x1xf32>
      %c0_30 = arith.constant 0 : index
      %c0_31 = arith.constant 0 : index
      %57 = vector.load %arg18[%c0_30, %c0_31] : memref<1x1xf32, #tpu.memory_space<vmem>>, vector<1x1xf32>
      tpu.vector_store %arg18[%c0_30, %c0_31], %56 {strides = array<i32>} : memref<1x1xf32, #tpu.memory_space<vmem>>, vector<1x1xf32>,
    } else {
    }
    %c1_i32 = arith.constant 1 : i32
    %31 = arith.cmpi eq, %arg1, %c1_i32 : i32
    %32 = arith.extui %31 : i1 to i32
    %c0_i32_10 = arith.constant 0 : i32
    %33 = arith.cmpi ne, %32, %c0_i32_10 : i32
    scf.if %33 {
      %c0_i32_11 = arith.constant 0 : i32
      %34 = arith.cmpi eq, %arg2, %c0_i32_11 : i32
      %35 = arith.extui %34 : i1 to i32
      %c0_i32_12 = arith.constant 0 : i32
      %36 = arith.cmpi ne, %35, %c0_i32_12 : i32
      scf.if %36 {
        %c0_47 = arith.constant 0 : index
        %c0_48 = arith.constant 0 : index
        %97 = vector.load %arg17[%c0_47, %c0_48] : memref<1x256xf32, #tpu.memory_space<vmem>>, vector<1x256xf32>
        %c0_49 = arith.constant 0 : index
        %c0_50 = arith.constant 0 : index
        %98 = vector.load %arg18[%c0_49, %c0_50] : memref<1x1xf32, #tpu.memory_space<vmem>>, vector<1x1xf32>
        %99 = tpu.reciprocal %98 {approx = true} : vector<1x1xf32> -> vector<1x1xf32>
        %100 = vector.broadcast %99 : vector<1x1xf32> to vector<1x256xf32>
        %101 = arith.mulf %97, %100 : vector<1x256xf32>
        %102 = arith.truncf %101 : vector<1x256xf32> to vector<1x256xbf16>
        %c0_51 = arith.constant 0 : index
        %c0_52 = arith.constant 0 : index
        %103 = vector.load %arg10[%c0_51, %c0_52] : memref<256x256xbf16, #tpu.memory_space<vmem>>, vector<256x256xbf16>
        %cst_53 = arith.constant dense<0.000000e+00> : vector<1x256xf32>
        %104 = tpu.matmul %102, %103, %cst_53 {dimension_numbers = #tpu.dot_dimension_numbers<[1], [0], [0], [1], [0, 0, 1, 1], [], []>} : vector<1x256xbf16>, vector<256x256xbf16>, vector<1x256xf32> -> vector<1x256xf32>
        %c0_54 = arith.constant 0 : index
        %c0_55 = arith.constant 0 : index
        %105 = vector.load %arg11[%c0_54, %c0_55] : memref<1x256xf32, #tpu.memory_space<vmem>>, vector<1x256xf32>
        %106 = arith.addf %104, %105 : vector<1x256xf32>
        %c0_56 = arith.constant 0 : index
        %c0_57 = arith.constant 0 : index
        %107 = vector.load %arg19[%c0_56, %c0_57] : memref<1x256xf32, #tpu.memory_space<vmem>>, vector<1x256xf32>
        tpu.vector_store %arg19[%c0_56, %c0_57], %106 {strides = array<i32>} : memref<1x256xf32, #tpu.memory_space<vmem>>, vector<1x256xf32>,
      } else {
      }
      %c0_13 = arith.constant 0 : index
      %c0_14 = arith.constant 0 : index
      %37 = vector.load %arg5[%c0_13, %c0_14] : memref<512x256xbf16, #tpu.memory_space<vmem>>, vector<512x256xbf16>
      %cst_15 = arith.constant dense<0.000000e+00> : vector<128x256xf32>
      %38 = tpu.matmul %22, %37, %cst_15 {dimension_numbers = #tpu.dot_dimension_numbers<[1], [0], [0], [1], [0, 0, 1, 1], [], []>} : vector<128x512xbf16>, vector<512x256xbf16>, vector<128x256xf32> -> vector<128x256xf32>
      %c0_16 = arith.constant 0 : index
      %c0_17 = arith.constant 0 : index
      %39 = vector.load %arg6[%c0_16, %c0_17] : memref<1x256xf32, #tpu.memory_space<vmem>>, vector<1x256xf32>
      %40 = vector.broadcast %39 : vector<1x256xf32> to vector<128x256xf32>
      %41 = arith.addf %38, %40 : vector<128x256xf32>
      %cst_18 = arith.constant 5.000000e-01 : f32
      %42 = vector.broadcast %cst_18 : f32 to vector<128x256xf32>
      %43 = arith.mulf %42, %41 : vector<128x256xf32>
      %cst_19 = arith.constant 0.707106769 : f32
      %44 = vector.broadcast %cst_19 : f32 to vector<128x256xf32>
      %45 = arith.mulf %41, %44 : vector<128x256xf32>
      %46 = math.erf %45 : vector<128x256xf32>
      %cst_20 = arith.constant 1.000000e+00 : f32
      %47 = vector.broadcast %cst_20 : f32 to vector<128x256xf32>
      %48 = arith.addf %47, %46 : vector<128x256xf32>
      %49 = arith.mulf %43, %48 : vector<128x256xf32>
      %50 = arith.truncf %49 : vector<128x256xf32> to vector<128x256xbf16>
      %c0_21 = arith.constant 0 : index
      %c0_22 = arith.constant 0 : index
      %51 = vector.load %arg9[%c0_21, %c0_22] : memref<256x256xbf16, #tpu.memory_space<vmem>>, vector<256x256xbf16>
      %cst_23 = arith.constant dense<0.000000e+00> : vector<128x256xf32>
      %52 = tpu.matmul %50, %51, %cst_23 {dimension_numbers = #tpu.dot_dimension_numbers<[1], [0], [0], [1], [0, 0, 1, 1], [], []>} : vector<128x256xbf16>, vector<256x256xbf16>, vector<128x256xf32> -> vector<128x256xf32>
      %c0_24 = arith.constant 0 : index
      %c0_25 = arith.constant 0 : index
      %53 = vector.load %arg19[%c0_24, %c0_25] : memref<1x256xf32, #tpu.memory_space<vmem>>, vector<1x256xf32>
      %54 = vector.broadcast %53 : vector<1x256xf32> to vector<128x256xf32>
      %55 = arith.addf %52, %54 : vector<128x256xf32>
      %cst_26 = arith.constant 5.000000e-01 : f32
      %56 = vector.broadcast %cst_26 : f32 to vector<128x256xf32>
      %57 = arith.mulf %56, %55 : vector<128x256xf32>
      %cst_27 = arith.constant 0.707106769 : f32
      %58 = vector.broadcast %cst_27 : f32 to vector<128x256xf32>
      %59 = arith.mulf %55, %58 : vector<128x256xf32>
      %60 = math.erf %59 : vector<128x256xf32>
      %cst_28 = arith.constant 1.000000e+00 : f32
      %61 = vector.broadcast %cst_28 : f32 to vector<128x256xf32>
      %62 = arith.addf %61, %60 : vector<128x256xf32>
      %63 = arith.mulf %57, %62 : vector<128x256xf32>
      %64 = arith.truncf %63 : vector<128x256xf32> to vector<128x256xbf16>
      %c0_29 = arith.constant 0 : index
      %c0_30 = arith.constant 0 : index
      %65 = vector.load %arg12[%c0_29, %c0_30] : memref<256x128xbf16, #tpu.memory_space<vmem>>, vector<256x128xbf16>
      %cst_31 = arith.constant dense<0.000000e+00> : vector<128x128xf32>
      %66 = tpu.matmul %64, %65, %cst_31 {dimension_numbers = #tpu.dot_dimension_numbers<[1], [0], [0], [1], [0, 0, 1, 1], [], []>} : vector<128x256xbf16>, vector<256x128xbf16>, vector<128x128xf32> -> vector<128x128xf32>
      %c0_32 = arith.constant 0 : index
      %c0_33 = arith.constant 0 : index
      %67 = vector.load %arg13[%c0_32, %c0_33] : memref<1x128xf32, #tpu.memory_space<vmem>>, vector<1x128xf32>
      %68 = vector.broadcast %67 : vector<1x128xf32> to vector<128x128xf32>
      %69 = arith.addf %66, %68 : vector<128x128xf32>
      %cst_34 = arith.constant 5.000000e-01 : f32
      %70 = vector.broadcast %cst_34 : f32 to vector<128x128xf32>
      %71 = arith.mulf %70, %69 : vector<128x128xf32>
      %cst_35 = arith.constant 0.707106769 : f32
      %72 = vector.broadcast %cst_35 : f32 to vector<128x128xf32>
      %73 = arith.mulf %69, %72 : vector<128x128xf32>
      %74 = math.erf %73 : vector<128x128xf32>
      %cst_36 = arith.constant 1.000000e+00 : f32
      %75 = vector.broadcast %cst_36 : f32 to vector<128x128xf32>
      %76 = arith.addf %75, %74 : vector<128x128xf32>
      %77 = arith.mulf %71, %76 : vector<128x128xf32>
      %78 = arith.truncf %77 : vector<128x128xf32> to vector<128x128xbf16>
      %c0_37 = arith.constant 0 : index
      %c0_38 = arith.constant 0 : index
      %79 = vector.load %arg14[%c0_37, %c0_38] : memref<128x128xbf16, #tpu.memory_space<vmem>>, vector<128x128xbf16>
      %cst_39 = arith.constant dense<0.000000e+00> : vector<128x128xf32>
      %80 = tpu.matmul %78, %79, %cst_39 {dimension_numbers = #tpu.dot_dimension_numbers<[1], [0], [0], [1], [0, 0, 1, 1], [], []>} : vector<128x128xbf16>, vector<128x128xbf16>, vector<128x128xf32> -> vector<128x128xf32>
      %c0_40 = arith.constant 0 : index
      %c0_41 = arith.constant 0 : index
      %81 = vector.load %arg15[%c0_40, %c0_41] : memref<1x128xf32, #tpu.memory_space<vmem>>, vector<1x128xf32>
      %82 = vector.broadcast %81 : vector<1x128xf32> to vector<128x128xf32>
      %83 = arith.addf %80, %82 : vector<128x128xf32>
      %cst_42 = arith.constant dense<0xFF800000> : vector<128xf32>
      %84 = vector.multi_reduction <maximumf>, %83, %cst_42 [1] : vector<128x128xf32> to vector<128xf32>
      %85 = vector.shape_cast %84 : vector<128xf32> to vector<128x1xf32>
      %86 = vector.broadcast %85 : vector<128x1xf32> to vector<128x128xf32>
      %87 = arith.subf %83, %86 : vector<128x128xf32>
      %88 = math.exp %87 : vector<128x128xf32>
      %cst_43 = arith.constant dense<0.000000e+00> : vector<128xf32>
      %89 = vector.multi_reduction <add>, %88, %cst_43 [1] : vector<128x128xf32> to vector<128xf32>
      %90 = vector.shape_cast %89 : vector<128xf32> to vector<128x1xf32>
      %91 = math.log %90 : vector<128x1xf32>
      %92 = vector.broadcast %91 : vector<128x1xf32> to vector<128x128xf32>
      %93 = arith.subf %87, %92 : vector<128x128xf32>
      %c0_44 = arith.constant 0 : index
      %c0_45 = arith.constant 0 : index
      %c0_46 = arith.constant 0 : index
      %94 = vector.load %arg16[%c0_44, %c0_45, %c0_46] : memref<1x128x128xf32, #tpu.memory_space<vmem>>, vector<1x128x128xf32>
      %95 = vector.shape_cast %94 : vector<1x128x128xf32> to vector<128x128xf32>
      %96 = vector.shape_cast %93 : vector<128x128xf32> to vector<1x128x128xf32>
      tpu.vector_store %arg16[%c0_44, %c0_45, %c0_46], %96 {strides = array<i32>} : memref<1x128x128xf32, #tpu.memory_space<vmem>>, vector<1x128x128xf32>,
    } else {
    }
    return
  }
  func.func @transform_0(%arg0: i32, %arg1: i32, %arg2: i32) -> (i32, i32, i32) {
    %c0_i32 = arith.constant 0 : i32
    %c0_i32_0 = arith.constant 0 : i32
    return %arg0, %arg2, %c0_i32 : i32, i32, i32
  }
  func.func @transform_1(%arg0: i32, %arg1: i32, %arg2: i32) -> (i32, i32, i32) {
    %c1_i32 = arith.constant 1 : i32
    %0 = arith.subi %c1_i32, %arg1 : i32
    %1 = arith.muli %arg2, %0 : i32
    %c0_i32 = arith.constant 0 : i32
    %c0_i32_0 = arith.constant 0 : i32
    return %arg0, %c0_i32, %1 : i32, i32, i32
  }
  func.func @transform_2(%arg0: i32, %arg1: i32, %arg2: i32) -> (i32, i32) {
    %c0_i32 = arith.constant 0 : i32
    %c0_i32_0 = arith.constant 0 : i32
    %c0_i32_1 = arith.constant 0 : i32
    return %c0_i32, %c0_i32_0 : i32, i32
  }
  func.func @transform_3(%arg0: i32, %arg1: i32, %arg2: i32) -> (i32, i32) {
    %c0_i32 = arith.constant 0 : i32
    %c0_i32_0 = arith.constant 0 : i32
    %c0_i32_1 = arith.constant 0 : i32
    return %c0_i32, %c0_i32_0 : i32, i32
  }
  func.func @transform_4(%arg0: i32, %arg1: i32, %arg2: i32) -> (i32, i32) {
    %c0_i32 = arith.constant 0 : i32
    %c0_i32_0 = arith.constant 0 : i32
    %c0_i32_1 = arith.constant 0 : i32
    return %c0_i32, %c0_i32_0 : i32, i32
  }
  func.func @transform_5(%arg0: i32, %arg1: i32, %arg2: i32) -> (i32, i32) {
    %c0_i32 = arith.constant 0 : i32
    %c0_i32_0 = arith.constant 0 : i32
    %c0_i32_1 = arith.constant 0 : i32
    return %c0_i32, %c0_i32_0 : i32, i32
  }
  func.func @transform_6(%arg0: i32, %arg1: i32, %arg2: i32) -> (i32, i32) {
    %c0_i32 = arith.constant 0 : i32
    %c0_i32_0 = arith.constant 0 : i32
    %c0_i32_1 = arith.constant 0 : i32
    return %c0_i32, %c0_i32_0 : i32, i32
  }
  func.func @transform_7(%arg0: i32, %arg1: i32, %arg2: i32) -> (i32, i32) {
    %c0_i32 = arith.constant 0 : i32
    %c0_i32_0 = arith.constant 0 : i32
    %c0_i32_1 = arith.constant 0 : i32
    return %c0_i32, %c0_i32_0 : i32, i32
  }
  func.func @transform_8(%arg0: i32, %arg1: i32, %arg2: i32) -> (i32, i32) {
    %c0_i32 = arith.constant 0 : i32
    %c0_i32_0 = arith.constant 0 : i32
    %c0_i32_1 = arith.constant 0 : i32
    return %c0_i32, %c0_i32_0 : i32, i32
  }
  func.func @transform_9(%arg0: i32, %arg1: i32, %arg2: i32) -> (i32, i32) {
    %c0_i32 = arith.constant 0 : i32
    %c0_i32_0 = arith.constant 0 : i32
    %c0_i32_1 = arith.constant 0 : i32
    return %c0_i32, %c0_i32_0 : i32, i32
  }
  func.func @transform_10(%arg0: i32, %arg1: i32, %arg2: i32) -> (i32, i32) {
    %c0_i32 = arith.constant 0 : i32
    %c0_i32_0 = arith.constant 0 : i32
    %c0_i32_1 = arith.constant 0 : i32
    return %c0_i32, %c0_i32_0 : i32, i32
  }
  func.func @transform_11(%arg0: i32, %arg1: i32, %arg2: i32) -> (i32, i32) {
    %c0_i32 = arith.constant 0 : i32
    %c0_i32_0 = arith.constant 0 : i32
    %c0_i32_1 = arith.constant 0 : i32
    return %c0_i32, %c0_i32_0 : i32, i32
  }
  func.func @transform_12(%arg0: i32, %arg1: i32, %arg2: i32) -> (i32, i32) {
    %c0_i32 = arith.constant 0 : i32
    %c0_i32_0 = arith.constant 0 : i32
    %c0_i32_1 = arith.constant 0 : i32
    return %c0_i32, %c0_i32_0 : i32, i32
  }
  func.func @transform_13(%arg0: i32, %arg1: i32, %arg2: i32) -> (i32, i32, i32) {
    %0 = arith.muli %arg2, %arg1 : i32
    %c0_i32 = arith.constant 0 : i32
    %c0_i32_0 = arith.constant 0 : i32
    return %arg0, %0, %c0_i32 : i32, i32, i32
  }
}

</mosaic_0001>

<bundles_post_ra>
// kernel: tpu_custom_call.1
= control target key start
LH: loop header
LB: loop body
LE: loop exit
PB: predicated region body
PF: predicated region fallthrough
CT: control target
= control target key end

     0   :  { %s8132_s0 = inlined_call_operand.hbm [shape: f32[2,256,512], index: 0, kind: input, shape index: {}]   ;;  %s8133_s1 = inlined_call_operand.hbm [shape: f32[2,1,256], index: 1, kind: input, shape index: {}]   ;;  %s8134_s2 = inlined_call_operand.hbm [shape: bf16[512,256], index: 2, kind: input, shape index: {}]   ;;  %s8135_s3 = inlined_call_operand.vmem [shape: f32[1,256], index: 3, kind: input, shape index: {}]   ;;  %s8136_s4 = inlined_call_operand.hbm [shape: bf16[512,256], index: 4, kind: input, shape index: {}]   ;;  %s8137_s5 = inlined_call_operand.vmem [shape: f32[1,256], index: 5, kind: input, shape index: {}]   ;;  %s8138_s6 = inlined_call_operand.hbm [shape: bf16[256,256], index: 6, kind: input, shape index: {}]   ;;  %s8139_s7 = inlined_call_operand.hbm [shape: bf16[256,256], index: 7, kind: input, shape index: {}]   ;;  %s8140_s8 = inlined_call_operand.vmem [shape: f32[1,256], index: 8, kind: input, shape index: {}]   ;;  %s8141_s9 = inlined_call_operand.hbm [shape: bf16[256,128], index: 9, kind: input, shape index: {}]   ;;  %s8142_s10 = inlined_call_operand.vmem [shape: f32[1,128], index: 10, kind: input, shape index: {}]   ;;  %s8143_s11 = inlined_call_operand.hbm [shape: bf16[128,128], index: 11, kind: input, shape index: {}]   ;;  %s8144_s12 = inlined_call_operand.vmem [shape: f32[1,128], index: 12, kind: input, shape index: {}]   ;;  %s8145_s13 = inlined_call_operand.hbm [shape: f32[2,256,128], index: 13, kind: output, shape index: {}]  }
   0x1   :  { %8229 = sst [smem:[#allocation72_spill]] %s8132_s0 }
   0x2   :  { %8230 = sst [smem:[#allocation73_spill]] %s8133_s1 }
   0x3   :  { %8231 = sst [smem:[#allocation74_spill]] %s8134_s2 }
   0x4   :  { %8232 = sst [smem:[#allocation75_spill]] %s8135_s3 }
   0x5   :  { %8233 = sst [smem:[#allocation76_spill]] %s8136_s4 }
   0x6   :  { %8234 = sst [smem:[#allocation77_spill]] %s8137_s5 }
   0x7   :  { %8235 = sst [smem:[#allocation78_spill]] %s8138_s6 }
   0x8   :  { %8236 = sst [smem:[#allocation79_spill]] %s8139_s7 }
   0x9   :  { %8237 = sst [smem:[#allocation80_spill]] %s8140_s8 }
   0xa   :  { %8238 = sst [smem:[#allocation81_spill]] %s8141_s9 }
   0xb   :  { %8239 = sst [smem:[#allocation82_spill]] %s8142_s10 }
   0xc   :  { %8240 = sst [smem:[#allocation83_spill]] %s8143_s11 }
   0xd   :  { %8241 = sst [smem:[#allocation84_spill]] %s8144_s12 }
   0xe   :  { %8242 = sst [smem:[#allocation85_spill]] %s8145_s13 }
   0xf   :  { %18 = vsyncpa [#allocation6], 0 }
  0x10   :  { %20 = vsyncpa [#allocation6 + $0x1], 0 }
  0x11   :  { %21 = vsyncpa [#allocation9], 0 }
  0x12   :  { %23 = vsyncpa [#allocation9 + $0x1], 0 }
  0x13   :  { %24 = vsyncpa [#allocation12], 0 }
  0x14   :  { %25 = vsyncpa [#allocation15], 0 }
  0x15   :  { %26 = vsyncpa [#allocation18], 0 }
  0x16   :  { %27 = vsyncpa [#allocation7], 0 }
  0x17   :  { %29 = vsyncpa [#allocation7 + $0x1], 0  ;;  %s6212_s25 = smov 0   ;;  %s6214_s26 = smov 0  }
  0x18   :  { %s6216_s27 = smov 0   ;;  %s6218_s28 = smov 0  }
  0x19   :  { %s6220_s29 = smov 0   ;;  %s6222_s30 = smov 0  }
  0x1a   :  { %s6224_s14 = smov 0   ;;  %s6226_s15 = smov 0  }
  0x1b   :  { %s6228_s16 = smov 0   ;;  %s6230_s17 = smov 0  }
  0x1c   :  { %s6232_s18 = smov 0   ;;  %s6234_s19 = smov 0  }
  0x1d   :  { %s6236_s20 = smov 0   ;;  %s6238_s21 = smov 0  }
  0x1e   :  { %s6240_s22 = smov 0   ;;  %s6242_s23 = smov 0  }
  0x1f LB: > { %8243 = sst [smem:[#allocation27_spill]] %s6058_s25  ;;  %s6293_s24 = sadd.s32 4294967295, %s6118_s23   ;;  %s6118_s23 = sphi %s6242_s23, %s35_s23   ;;  %s6114_s22 = sphi %s6240_s22, %s8469_s22   ;;  %s6110_s21 = sphi %s6238_s21, %s8468_s21   ;;  %s6106_s20 = sphi %s6236_s20, %s8467_s20   ;;  %s6102_s19 = sphi %s6234_s19, %s8466_s19   ;;  %s6098_s18 = sphi %s6232_s18, %s8452_s18   ;;  %s6094_s17 = sphi %s6230_s17, %s8465_s17   ;;  %s6090_s16 = sphi %s6228_s16, %s8464_s16   ;;  %s6086_s15 = sphi %s6226_s15, %s8463_s15   ;;  %s6082_s14 = sphi %s6224_s14, %s8462_s14   ;;  %s6078_s30 = sphi %s6222_s30, %s8461_s30   ;;  %s6074_s29 = sphi %s6220_s29, %s8460_s29   ;;  %s6070_s28 = sphi %s6218_s28, %s8459_s28   ;;  %s6066_s27 = sphi %s6216_s27, %s8458_s27   ;;  %s6062_s26 = sphi %s6214_s26, %s8457_s26   ;;  %s6058_s25 = sphi %s6212_s25, %s8450_s25  }
  0x20   : > { %8244 = sst [smem:[#allocation28_spill]] %s6062_s26  ;;  %p4490_p0 = scmp.ge.s32.totalorder %s6118_s23, 1 }
  0x21   : > { %8245 = sst [smem:[#allocation29_spill]] %s6094_s17  ;;  %p8152_p1 = scmp.eq.s32.totalorder %s6293_s24, 0 }
  0x22   : > { %8246 = sst [smem:[#allocation30_spill]] %s6098_s18  ;;  %p380_p2 = scmp.lt.s32.totalorder %s6118_s23, 9 }
  0x23   : > { %8247 = sst [smem:[#allocation31_spill]] %s6102_s19  ;;  %s6120_s19 = smov [#allocation10]  }
  0x24   : > { %8248 = sst [smem:[#allocation32_spill]] %s6106_s20  ;;  %p6298_p3 = pnand %p4490_p0, %p380_p2 }
  0x25   : > { %8249 = sst [smem:[#allocation33_spill]] %s6110_s21  ;;  %s392_s12 = sshll.u32 %s6120_s19, 4  ;;  %s393_s12 = int_to_ptr.vmem [resolvable:$true] %s392_s12 }
  0x26   : > { %s8250_s13 = scalar_select %p6298_p3, 1, 0 }
  0x27   : > { %p4900_p4 = pneg %p6298_p3  ;;  %s6121_s3 = smov [#allocation11]  }
  0x28   : > { %8251 = sst [smem:[#allocation34_spill]] %s8250_s13  ;;  %s408_s8 = sshll.u32 %s6121_s3, 4  ;;  %s409_s8 = int_to_ptr.vmem [resolvable:$true] %s408_s8 }
  0x29   : > { %p6306_p5 = pnand %p4900_p4, %p8152_p1  ;;  %s6122_s5 = smov [#allocation14]  }
  0x2a   : > { %s437_s17 = sshll.u32 %s6122_s5, 4  ;;  %s5737_s19 = scalar_lea.vmem %s393_s12, 8192  ;;  %s438_s17 = int_to_ptr.vmem [resolvable:$true] %s437_s17 }
  0x2b   : > { %p6312_p6 = pneg %p6306_p5  ;;  %p5738_p7 = scmp.ne.s32.totalorder %s393_s12, %s5737_s19 }
  0x2c   : > { %p5745_p10 = scmp.lt.s32.totalorder %s393_s12, %s393_s12  ;;  %p5746_p11 = scmp.lt.s32.totalorder %s5737_s19, %s5737_s19 }
  0x2d   : > { %p5740_p8 = pnand %p5738_p7, %p6312_p6 }
  0x2e   : > { %p5747_p12 = por %p5746_p11, %p5745_p10 }
  0x2f   : > { %p5741_p9 = pneg %p5740_p8 }
  0x31   : > { %p5748_p13 = pnand %p5747_p12, %p5741_p9 }
  0x33   : > { %5751 = shalt.err (!%p5748_p13)
}
  0x34   : > { %s6123_s3 = smov 128   ;;  %s6124_s5 = smov 8  }
  0x35   : > { %s8254_s2 = sld [smem:[#allocation74_spill]]  ;;  %s5763_s25 = scalar_lea.vmem %s409_s8, 8192 }
  0x36   : > { %p5764_p0 = scmp.ne.s32.totalorder %s409_s8, %s5763_s25  ;;  %p5771_p7 = scmp.lt.s32.totalorder %s409_s8, %s409_s8 }
  0x37   : > { %p5772_p8 = scmp.lt.s32.totalorder %s5763_s25, %s5763_s25 }
  0x38   : > { %p5766_p2 = pnand %p5764_p0, %p6312_p6 }
  0x39   : > { %p5773_p9 = por %p5772_p8, %p5771_p7 }
  0x3a   : > { %p5767_p4 = pneg %p5766_p2 }
  0x3b   : > { %4903 = dma.hbm_to_vmem [thread:$0]  (!%p6306_p5), %s8254_s2, 8192, %s393_s12, [#allocation9], %s6123_s3, %s6123_s3, %s6124_s5  }
  0x3c   : > { %p5774_p10 = pnand %p5773_p9, %p5767_p4 }
  0x3e   : > { %5777 = shalt.err (!%p5774_p10)
}
  0x3f   : > { %s8255_s4 = sld [smem:[#allocation76_spill]]  ;;  %s5789_s1 = scalar_lea.vmem %s438_s17, 4096 }
  0x40   : > { %p5790_p11 = scmp.ne.s32.totalorder %s438_s17, %s5789_s1  ;;  %p5797_p0 = scmp.lt.s32.totalorder %s438_s17, %s438_s17 }
  0x41   : > { %p5798_p2 = scmp.lt.s32.totalorder %s5789_s1, %s5789_s1 }
  0x42   : > { %p5792_p12 = pnand %p5790_p11, %p6312_p6 }
  0x43   : > { %p5799_p4 = por %p5798_p2, %p5797_p0 }
  0x44   : > { %p5793_p13 = pneg %p5792_p12 }
  0x45   : > { %4906 = dma.hbm_to_vmem [thread:$0]  (!%p6306_p5), %s8255_s4, 8192, %s409_s8, [#allocation12], %s6123_s3, %s6123_s3, %s6124_s5  }
  0x46   : > { %p5800_p7 = pnand %p5799_p4, %p5793_p13 }
  0x48   : > { %5803 = shalt.err (!%p5800_p7)
}
  0x49   : > { %s8256_s7 = sld [smem:[#allocation79_spill]]  ;;  %s6125_s8 = smov [#allocation13]  }
  0x4a   : > { %s424_s25 = sshll.u32 %s6125_s8, 4  ;;  %s6126_s26 = smov [#allocation16]   ;;  %s425_s25 = int_to_ptr.vmem [resolvable:$true] %s424_s25 }
  0x4b   : > { %s453_s19 = sshll.u32 %s6126_s26, 4  ;;  %s5815_s2 = scalar_lea.vmem %s425_s25, 4096  ;;  %s454_s19 = int_to_ptr.vmem [resolvable:$true] %s453_s19 }
  0x4c   : > { %p5816_p8 = scmp.ne.s32.totalorder %s425_s25, %s5815_s2  ;;  %p5823_p11 = scmp.lt.s32.totalorder %s425_s25, %s425_s25 }
  0x4d   : > { %p5824_p12 = scmp.lt.s32.totalorder %s5815_s2, %s5815_s2 }
  0x4e   : > { %p5818_p9 = pnand %p5816_p8, %p6312_p6 }
  0x4f   : > { %4912 = dma.hbm_to_vmem [thread:$0]  (!%p6306_p5), %s8256_s7, 4096, %s438_s17, [#allocation15], %s6123_s3, %s6123_s3, %s6124_s5  }
  0x50   : > { %p5819_p10 = pneg %p5818_p9  ;;  %p5825_p13 = por %p5824_p12, %p5823_p11 }
  0x52   : > { %p5826_p0 = pnand %p5825_p13, %p5819_p10 }
  0x54   : > { %5829 = shalt.err (!%p5826_p0)
}
  0x55   : > { %s8257_s6 = sld [smem:[#allocation78_spill]]  ;;  %s5841_s12 = scalar_lea.vmem %s454_s19, 2048 }
  0x56   : > { %p5842_p2 = scmp.ne.s32.totalorder %s454_s19, %s5841_s12  ;;  %p5849_p8 = scmp.lt.s32.totalorder %s454_s19, %s454_s19 }
  0x57   : > { %p5850_p9 = scmp.lt.s32.totalorder %s5841_s12, %s5841_s12 }
  0x58   : > { %p5844_p4 = pnand %p5842_p2, %p6312_p6 }
  0x59   : > { %p5851_p10 = por %p5850_p9, %p5849_p8 }
  0x5a   : > { %p5845_p7 = pneg %p5844_p4 }
  0x5b   : > { %4909 = dma.hbm_to_vmem [thread:$0]  (!%p6306_p5), %s8257_s6, 4096, %s425_s25, [#allocation12], %s6123_s3, %s6123_s3, %s6124_s5  }
  0x5c   : > { %p5852_p11 = pnand %p5851_p10, %p5845_p7 }
  0x5e   : > { %5855 = shalt.err (!%p5852_p11)
}
  0x5f   : > { %s6127_s2 = smov 64   ;;  %s6128_s13 = smov 4  }
  0x60   : > { %s8258_s9 = sld [smem:[#allocation81_spill]]  ;;  %s6129_s3 = smov [#allocation17]  }
  0x61   : > { %s469_s5 = sshll.u32 %s6129_s3, 4  ;;  %s470_s5 = int_to_ptr.vmem [resolvable:$true] %s469_s5 }
  0x62   : > { %s5867_s25 = scalar_lea.vmem %s470_s5, 1024  ;;  %p5875_p2 = scmp.lt.s32.totalorder %s470_s5, %s470_s5 }
  0x63   : > { %p5868_p12 = scmp.ne.s32.totalorder %s470_s5, %s5867_s25  ;;  %p5876_p4 = scmp.lt.s32.totalorder %s5867_s25, %s5867_s25 }
  0x65   : > { %p5870_p13 = pnand %p5868_p12, %p6312_p6  ;;  %p5877_p7 = por %p5876_p4, %p5875_p2 }
  0x66   : > { %4915 = dma.hbm_to_vmem [thread:$0]  (!%p6306_p5), %s8258_s9, 2048, %s454_s19, [#allocation15], %s6127_s2, %s6127_s2, %s6128_s13  }
  0x67   : > { %p5871_p0 = pneg %p5870_p13 }
  0x69   : > { %p5878_p8 = pnand %p5877_p7, %p5871_p0 }
  0x6b   : > { %5881 = shalt.err (!%p5878_p8)
}
  0x6c   : > { %s8259_s11 = sld [smem:[#allocation83_spill]]  ;;  %p70_p6 = scmp.ne.s32.totalorder %s6090_s16, %s6086_s15 }
  0x6d   : > { %p71_p9 = scmp.eq.s32.totalorder %s6118_s23, 0  ;;  %p76_p10 = scmp.ne.s32.totalorder %s6086_s15, %s6082_s14 }
  0x6e   : > { %p4936_p11 = scmp.lt.s32.totalorder %s6118_s23, 8  ;;  %s486_s10 = sand.u32 1, %s6090_s16  }
  0x6f   : > { %p72_p12 = por %p71_p9, %p70_p6  ;;  %p6382_p13 = por %p8152_p1, %p76_p10 }
  0x70   : > { %s4498_s12 = sshll.u32 %s486_s10, 9  ;;  %s4741_s8 = sshll.u32 %s6106_s20, 6 }
  0x71   : > { %s4501_s26 = sshll.u32 %s6114_s22, 7  ;;  %s490_s3 = scalar_lea.vmem [#allocation5], %s4498_s12 }
  0x72   : > { %4918 = dma.hbm_to_vmem [thread:$0]  (!%p6306_p5), %s8259_s11, 1024, %s470_s5, [#allocation18], %s6127_s2, %s6127_s2, %s6128_s13  }
  0x73   : > { %s500_s25 = sshll.u32 %s490_s3, 4  ;;  %s497_s2 = sadd.s32 %s4741_s8, %s4501_s26  ;;  %s501_s25 = int_to_ptr.vmem [resolvable:$true] %s500_s25 }
  0x74   : > { %s4502_s13 = sshll.u32 %s497_s2, 7  ;;  %p6390_p5 = pnand %p4936_p11, %p72_p12 }
  0x75   : > { %s8262_s0 = sld [smem:[#allocation72_spill]]  ;;  %s487_s18 = scalar_lea.sflag [#allocation6], %s486_s10 }
  0x76   : > { %p5884_p0 = pneg %p6390_p5  ;;  %s5895_s4 = scalar_lea.vmem %s501_s25, 8192 }
  0x77   : > { %p5896_p2 = scmp.ne.s32.totalorder %s501_s25, %s5895_s4  ;;  %s6130_s12 = smov [#allocation5]  }
  0x78   : > { %s5900_s8 = sshll.u32 %s6130_s12, 4  ;;  %s5901_s8 = int_to_ptr.vmem [resolvable:$false] %s5900_s8 }
  0x79   : > { %p5898_p4 = pnand %p5896_p2, %p5884_p0  ;;  %s5902_s26 = scalar_lea.vmem %s5901_s8, 16384 }
  0x7a   : > { %p5903_p8 = scmp.lt.s32.totalorder %s501_s25, %s5901_s8  ;;  %p5904_p6 = scmp.lt.s32.totalorder %s5902_s26, %s5895_s4 }
  0x7b   : > { %s499_s1 = scalar_lea.hbm %s8262_s0, %s4502_s13  ;;  %p5899_p7 = pneg %p5898_p4 }
  0x7c   : > { %p5905_p10 = por %p5904_p6, %p5903_p8 }
  0x7e   : > { %p5906_p12 = pnand %p5905_p10, %p5899_p7 }
  0x80   : > { %5909 = shalt.err (!%p5906_p12)
}
  0x81   : > { %s6131_s3 = smov 512   ;;  %s6132_s10 = smov 32  }
  0x82   : > { %4922 = dma.hbm_to_vmem [thread:$0]  (!%p6390_p5), %s499_s1, 8192, %s501_s25, %s487_s18, %s6131_s3, %s6131_s3, %s6132_s10  }
  0x83   : > { %s47_s2 = sadd.s32 1, %s6106_s20  ;;  %s50_s13 = sadd.s32 1, %s6110_s21 }
  0x84   : > { %p48_p0 = scmp.ge.s32.totalorder %s47_s2, 2  ;;  %s54_s5 = sadd.s32 1, %s6114_s22 }
  0x85   : > { %s86_s17 = ssub.s32 1, %s6110_s21  ;;  %s95_s18 = sadd.s32 1, %s6078_s30 }
  0x86   : > { %s8471_s2 = smov (%p48_p0, %s47_s2), 0  ;;  %s8473_s13 = smov (!%p48_p0, %s50_s13), %s6110_s21 }
  0x87   : > { %8263 = sst [smem:[#allocation35_spill]] %s8471_s2  ;;  %s59_s12 = ssub.s32 %s6106_s20, %s8471_s2 }
  0x88   : > { %s6412_s14 = smul.u32 %s6106_s20, %s86_s17  ;;  %p52_p5 = scmp.ge.s32.totalorder %s8473_s13, 2 }
  0x89   : > { %p102_p2 = scmp.ne.s32.totalorder %s6078_s30, %s6074_s29  ;;  %p108_p4 = scmp.ne.s32.totalorder %s6074_s29, %s6070_s28 }
  0x8a   : > { %s8475_s13 = smov (%p52_p5, %s8473_s13), 0  ;;  %s8477_s5 = smov (!%p52_p5, %s54_s5), %s6114_s22 }
  0x8b   : > { %8264 = sst [smem:[#allocation36_spill]] %s8475_s13  ;;  %s88_s25 = ssub.s32 1, %s8475_s13 }
  0x8c   : > { %s8265_s1 = sld [smem:[#allocation28_spill]]  ;;  %p6425_p7 = por %p102_p2, %p71_p9 }
  0x8d   : > { %p56_p8 = scmp.ge.s32.totalorder %s8477_s5, 2  ;;  %s89_s26 = smul.u32 %s88_s25, %s8471_s2 }
  0x8e   : > { %p6432_p6 = por %p108_p4, %p8152_p1  ;;  %s349_s3 = smul.u32 %s6106_s20, %s6110_s21 }
  0x8f   : > { %s8479_s5 = smov (%p56_p8, %s8477_s5), 0  ;;  %s8269_s10 = sld [smem:[#allocation27_spill]] }
  0x90   : > { %8268 = sst [smem:[#allocation37_spill]] %s8479_s5  ;;  %s91_s17 = ssub.s32 %s6412_s14, %s89_s26 }
  0x91   : > { %s350_s4 = smul.u32 %s8475_s13, %s8471_s2  ;;  %s58_s0 = ssub.s32 %s6114_s22, %s8479_s5 }
  0x92   : > { %s356_s6 = sadd.s32 1, %s6066_s27  ;;  %s60_s7 = sor.u32 %s59_s12, %s58_s0 }
  0x93   : > { %s92_s25 = sor.u32 %s91_s17, %s58_s0  ;;  %p61_p9 = scmp.eq.s32.totalorder %s60_s7, 0 }
  0x94   : > { %p93_p10 = scmp.eq.s32.totalorder %s92_s25, 0  ;;  %s352_s9 = ssub.s32 %s349_s3, %s350_s4 }
  0x95   : > { %p366_p12 = scmp.ne.s32.totalorder %s6066_s27, %s8265_s1  ;;  %s8270_s11 = sadd.s32 1, %s6090_s16 }
  0x96   : > { %s6451_s21 = scalar_select %p61_p9, %s6090_s16, %s8270_s11  }
  0x97   : > { %s6454_s20 = scalar_select %p93_p10, %s6078_s30, %s95_s18  }
  0x98   : > { %s353_s26 = sor.u32 %s352_s9, %s58_s0  ;;  %p367_p0 = scmp.eq.s32.totalorder %s6293_s24, 7 }
  0x99   : > { %p354_p5 = scmp.eq.s32.totalorder %s353_s26, 0  ;;  %p372_p2 = scmp.ne.s32.totalorder %s8265_s1, %s8269_s10 }
  0x9a   : > { %p6459_p4 = por %p367_p0, %p366_p12  ;;  %s8272_s7 = sadd.s32 4294967294, %s6118_s23  }
  0x9b   : > { %p373_p8 = scmp.eq.s32.totalorder %s8272_s7, 7  ;;  %s510_s11 = sand.u32 1, %s6118_s23  }
  0x9c   : > { %s8271_s12 = scalar_select %p6459_p4, 1, 0 }
  0x9d   : > { %s6466_s17 = scalar_select %p354_p5, %s6066_s27, %s356_s6  }
  0x9e   : > { %p6468_p1 = por %p373_p8, %p372_p2  ;;  %s512_s18 = sand.u32 1, %s6078_s30  }
  0x9f   : > { %s4503_s0 = sshll.u32 %s6114_s22, 1  ;;  %s513_s3 = scalar_lea.vmem [#allocation8], %s512_s18 }
  0xa0   : > { %s8273_s4 = scalar_select %p6468_p1, 1, 0 }
  0xa1   : > { %s520_s9 = sadd.s32 %s4503_s0, %s6412_s14  ;;  %s524_s25 = sshll.u32 %s513_s3, 4  ;;  %s525_s25 = int_to_ptr.vmem [resolvable:$true] %s524_s25 }
  0xa2   : > { %s4504_s26 = sshll.u32 %s520_s9, 4  ;;  %s8274_s5 = sld [smem:[#allocation73_spill]] }
  0xa3   : > { %p6483_p9 = pnand %p4936_p11, %p6425_p7  ;;  %s511_s7 = scalar_lea.sflag [#allocation9], %s510_s11 }
  0xa4   : > { %s5923_s2 = scalar_lea.vmem %s525_s25, 16  ;;  %s6133_s14 = smov [#allocation8]  }
  0xa5   : > { %p5912_p10 = pneg %p6483_p9  ;;  %p5924_p12 = scmp.ne.s32.totalorder %s525_s25, %s5923_s2 }
  0xa6   : > { %s5928_s18 = sshll.u32 %s6133_s14, 4  ;;  %s5929_s18 = int_to_ptr.vmem [resolvable:$false] %s5928_s18 }
  0xa7   : > { %p5926_p0 = pnand %p5924_p12, %p5912_p10  ;;  %s5930_s0 = scalar_lea.vmem %s5929_s18, 32 }
  0xa8   : > { %s522_s13 = scalar_lea.hbm %s8274_s5, %s4504_s26  ;;  %p5931_p2 = scmp.lt.s32.totalorder %s525_s25, %s5929_s18 }
  0xa9   : > { %p5927_p5 = pneg %p5926_p0  ;;  %p5932_p8 = scmp.lt.s32.totalorder %s5930_s0, %s5923_s2 }
  0xab   : > { %p5933_p1 = por %p5932_p8, %p5931_p2 }
  0xad   : > { %p5934_p4 = pnand %p5933_p1, %p5927_p5 }
  0xaf   : > { %5937 = shalt.err (!%p5934_p4)
}
  0xb0   : > { %4925 = dma.hbm_to_vmem [thread:$0]  (!%p6483_p9), %s522_s13, 16, %s525_s25, %s511_s7  }
  0xb1   : > { %533 = sbr.rel (%p6298_p3) target bundleno = 2882 (0xb42), region = 72 }
  0xb6   : > { %s535_s8 = sand.u32 1, %s6086_s15  }
  0xb7   : > { %s4506_s11 = sshll.u32 %s535_s8, 9  ;;  %s536_s9 = scalar_lea.sflag [#allocation6], %s535_s8 }
  0xb8   : > { %s6494_s3 = scalar_lea.vmem [#allocation5], %s4506_s11 }
  0xb9   : > { %6029 = dma.done.wait (%p6382_p13), %s536_s9, 8192  }
  0xba   : > { %6031 = vsyncadd (%p6382_p13), %s536_s9, 4294959104  ;;  %s544_s2 = sand.u32 1, %s6293_s24   ;;  %s546_s13 = sand.u32 1, %s6074_s29  }
  0xbb   : > { %s545_s25 = scalar_lea.sflag [#allocation9], %s544_s2  ;;  %s6502_s26 = scalar_lea.vmem [#allocation8], %s546_s13 }
  0xbc   : > { %6033 = dma.done.wait (%p6432_p6), %s545_s25, 16  }
  0xbd   : > { %6035 = vsyncadd (%p6432_p6), %s545_s25, 4294967280  ;;  %p8277_p1 = scmp.eq.s32.totalorder %s6293_s24, 0 }
  0xbf   : > { %6037 = dma.done.wait (%p8277_p1), [#allocation9], 8192   ;;  %p8278_p3 = pmov %p8277_p1 }
  0xc0   : > { %p8279_p11 = pmov %p8277_p1 }
  0xc1   : > { %6039 = vsyncadd (%p8278_p3), [#allocation9], 4294959104 }
  0xc2   : > { %6041 = dma.done.wait (%p8279_p11), [#allocation12], 12288   ;;  %p8280_p13 = pmov %p8277_p1 }
  0xc3   : > { %p8281_p7 = pmov %p8277_p1 }
  0xc4   : > { %6043 = vsyncadd (%p8280_p13), [#allocation12], 4294955008 }
  0xc5   : > { %6045 = dma.done.wait (%p8281_p7), [#allocation15], 6144   ;;  %p8282_p4 = pmov %p8277_p1 }
  0xc6   : > { %p8283_p6 = pmov %p8277_p1 }
  0xc7   : > { %6047 = vsyncadd (%p8282_p4), [#allocation15], 4294961152 }
  0xc8   : > { %6049 = dma.done.wait (%p8283_p6), [#allocation18], 1024   ;;  %p8284_p9 = pmov %p8277_p1 }
  0xc9   : > { %v6525_v0 = vld [vmem:[%s6494_s3 + $0x40] sm:$0xff]  ;;  %v6528_v1 = vld [vmem:[%s6494_s3 + $0x48] sm:$0xff]  ;;  %v6531_v2 = vld [vmem:[%s6494_s3 + $0x50] sm:$0xff]  ;;  %s8336_s24 = sld [smem:[#allocation28_spill]] }
  0xca   : > { %6051 = vsyncadd (%p8284_p9), [#allocation18], 4294966272  ;;  %v698_v3 = vadd.f32 %v6528_v1, %v6525_v0  ;;  %v6536_v4 = vld [vmem:[%s6494_s3] sm:$0xff]  ;;  %v6539_v5 = vld [vmem:[%s6494_s3 + $0x8] sm:$0xff]  ;;  %s8337_s19 = sld [smem:[#allocation30_spill]] }
  0xcb   : > { %v6542_v6 = vld [vmem:[%s6494_s3 + $0x58] sm:$0xff]  ;;  %v6545_v7 = vld [vmem:[%s6494_s3 + $0x10] sm:$0xff]  ;;  %v688_v8 = vadd.f32 %v6539_v5, %v6536_v4  ;;  %v6550_v9 = vld [vmem:[%s6494_s3 + $0x60] sm:$0xff]  ;;  %s8338_s28 = sld [smem:[#allocation29_spill]] }
  0xcc   : > { %v699_v10 = vadd.f32 %v698_v3, %v6531_v2  ;;  %v6554_v11 = vld [vmem:[%s6494_s3 + $0x18] sm:$0xff]  ;;  %v6557_v12 = vld [vmem:[%s6494_s3 + $0x68] sm:$0xff]  ;;  %v6560_v13 = vld [vmem:[%s6494_s3 + $0x70] sm:$0xff] }
  0xcd   : > { %v689_v14 = vadd.f32 %v688_v8, %v6545_v7  ;;  %v703_v15 = vadd.f32 %v6557_v12, %v6550_v9  ;;  %v6566_v16 = vld [vmem:[%s6494_s3 + $0x20] sm:$0xff]  ;;  %v6569_v17 = vld [vmem:[%s6494_s3 + $0x28] sm:$0xff]  ;;  %v6572_v18 = vld [vmem:[%s6494_s3 + $0x30] sm:$0xff] }
  0xce   : > { %v700_v19 = vadd.f32 %v699_v10, %v6542_v6  ;;  %v6576_v20 = vld [vmem:[%s6494_s3 + $0x78] sm:$0xff]  ;;  %v693_v21 = vadd.f32 %v6569_v17, %v6566_v16  ;;  %v6581_v22 = vld [vmem:[%s6494_s3 + $0xa0] sm:$0xff]  ;;  %v6584_v23 = vld [vmem:[%s6494_s3 + $0xa8] sm:$0xff] }
  0xcf   : > { %v690_v24 = vadd.f32 %v689_v14, %v6554_v11  ;;  %v704_v25 = vadd.f32 %v703_v15, %v6560_v13  ;;  %v6589_v26 = vld [vmem:[%s6494_s3 + $0x38] sm:$0xff]  ;;  %v6592_v27 = vld [vmem:[%s6494_s3 + $0xb0] sm:$0xff]  ;;  %v713_v28 = vadd.f32 %v6584_v23, %v6581_v22  ;;  %v6597_v29 = vld [vmem:[%s6494_s3 + $0x80] sm:$0xff]  ;;  %s615_s1 = sand.u32 1, %s8336_s24  }
  0xd0   : > { %701 = vadd.xlane.f32.xlu1 %v700_v19  ;;  %v694_v30 = vadd.f32 %v693_v21, %v6572_v18  ;;  %v6601_v31 = vld [vmem:[%s6494_s3 + $0xb8] sm:$0xff]  ;;  %v6604_v32 = vld [vmem:[%s6494_s3 + $0x88] sm:$0xff]  ;;  %v6607_v33 = vld [vmem:[%s6494_s3 + $0x90] sm:$0xff]  ;;  %p1137_p10 = scmp.eq.s32.totalorder %s8337_s19, 0  ;;  %s7152_s10 = sshll.u32 %s615_s1, 7 }
  0xd1   : > { %691 = vadd.xlane.f32.xlu0 %v690_v24  ;;  %v705_v34 = vadd.f32 %v704_v25, %v6576_v20  ;;  %v714_v35 = vadd.f32 %v713_v28, %v6592_v27  ;;  %v708_v36 = vadd.f32 %v6604_v32, %v6597_v29  ;;  %v6614_v37 = vld [vmem:[%s6494_s3 + $0xe0] sm:$0xff]  ;;  %v6617_v38 = vld [vmem:[%s6494_s3 + $0xe8] sm:$0xff]  ;;  %v6620_v39 = vld [vmem:[%s6494_s3 + $0xf0] sm:$0xff]  ;;  %p1138_p12 = scmp.eq.s32.totalorder %s8338_s28, 0  ;;  %s7288_s7 = scalar_lea.vmem [#allocation19], %s7152_s10 }
  0xd2   : > { %v695_v40 = vadd.f32 %v694_v30, %v6589_v26  ;;  %v6624_v41 = vld [vmem:[%s6494_s3 + $0x98] sm:$0xff]  ;;  %v723_v42 = vadd.f32 %v6617_v38, %v6614_v37  ;;  %v6629_v43 = vld [vmem:[%s6494_s3 + $0xc0] sm:$0xff]  ;;  %v6632_v44 = vld [vmem:[%s6494_s3 + $0xc8] sm:$0xff] }
  0xd3   : > { %v709_v45 = vadd.f32 %v708_v36, %v6607_v33  ;;  %v6636_v46 = vld [vmem:[%s6494_s3 + $0xd0] sm:$0xff]  ;;  %v718_v47 = vadd.f32 %v6632_v44, %v6629_v43  ;;  %v6641_v48 = vld [vmem:[%s6494_s3 + $0x120] sm:$0xff]  ;;  %v715_v49 = vadd.f32 %v714_v35, %v6601_v31  ;;  %v6645_v50 = vld [vmem:[%s6494_s3 + $0xf8] sm:$0xff]  ;;  %p7155_p0 = pnand %p1138_p12, %p1137_p10 }
  0xd4   : > { %706 = vadd.xlane.f32.xlu1 %v705_v34  ;;  %8285 = vst [vmem:[#allocation38_spill] sm:$0xff] %v6645_v50  ;;  %v724_v51 = vadd.f32 %v723_v42, %v6620_v39  ;;  %v6649_v52 = vld [vmem:[%s6494_s3 + $0xd8] sm:$0xff]  ;;  %v6652_v53 = vld [vmem:[%s6494_s3 + $0x128] sm:$0xff]  ;;  %v6657_v56 = vld [vmem:[%s6494_s3 + $0x130] sm:$0xff] }
  0xd5   : > { %696 = vadd.xlane.f32.xlu0 %v695_v40  ;;  %v710_v54 = vadd.f32 %v709_v45, %v6624_v41  ;;  %v719_v55 = vadd.f32 %v718_v47, %v6636_v46  ;;  %8286 = vst [vmem:[#allocation39_spill] sm:$0xff] %v6657_v56  ;;  %v733_v57 = vadd.f32 %v6652_v53, %v6641_v48  ;;  %v6662_v58 = vld [vmem:[%s6494_s3 + $0x100] sm:$0xff]  ;;  %v6665_v59 = vld [vmem:[%s6494_s3 + $0x108] sm:$0xff]  ;;  %v6668_v60 = vld [vmem:[%s6494_s3 + $0x110] sm:$0xff] }
  0xd6   : > { %8287 = vst [vmem:[#allocation40_spill] sm:$0xff] %v6668_v60  ;;  %v728_v61 = vadd.f32 %v6665_v59, %v6662_v58  ;;  %v6673_v62 = vld [vmem:[%s6494_s3 + $0x160] sm:$0xff]  ;;  %v6676_v63 = vld [vmem:[%s6494_s3 + $0x168] sm:$0xff]  ;;  %v725_v8 = vadd.f32 %v724_v51, %v6645_v50  ;;  %v6683_v10 = vld [vmem:[%s6494_s3 + $0x138] sm:$0xff] }
  0xd7   : > { %v6679_v3 = vld [vmem:[%s6494_s3 + $0x140] sm:$0xff]  ;;  %8288 = vst [vmem:[#allocation41_spill] sm:$0xff] %v6683_v10  ;;  %v734_v14 = vadd.f32 %v733_v57, %v6657_v56  ;;  %v6687_v15 = vld [vmem:[%s6494_s3 + $0x118] sm:$0xff]  ;;  %v743_v19 = vadd.f32 %v6676_v63, %v6673_v62  ;;  %v6692_v21 = vld [vmem:[%s6494_s3 + $0x148] sm:$0xff]  ;;  %v720_v24 = vadd.f32 %v719_v55, %v6649_v52 }
  0xd8   : > { %716 = vadd.xlane.f32.xlu1 %v715_v49  ;;  %8289 = vst [vmem:[#allocation42_spill] sm:$0xff] %v6687_v15  ;;  %v729_v25 = vadd.f32 %v728_v61, %v6668_v60  ;;  %v6697_v28 = vld [vmem:[%s6494_s3 + $0x170] sm:$0xff]  ;;  %v738_v30 = vadd.f32 %v6692_v21, %v6679_v3  ;;  %v6702_v34 = vld [vmem:[%s6494_s3 + $0x1a0] sm:$0xff]  ;;  %v6705_v35 = vld [vmem:[%s6494_s3 + $0x1a8] sm:$0xff] }
  0xd9   : > { %711 = vadd.xlane.f32.xlu0 %v710_v54  ;;  %8290 = vst [vmem:[#allocation43_spill] sm:$0xff] %v6697_v28  ;;  %v6708_v36 = vld [vmem:[%s6494_s3 + $0x150] sm:$0xff]  ;;  %v6711_v40 = vld [vmem:[%s6494_s3 + $0x180] sm:$0xff]  ;;  %v6714_v42 = vld [vmem:[%s6494_s3 + $0x188] sm:$0xff]  ;;  %v735_v45 = vadd.f32 %v734_v14, %v6683_v10  ;;  %v744_v49 = vadd.f32 %v743_v19, %v6697_v28  ;;  %v753_v54 = vadd.f32 %v6705_v35, %v6702_v34 }
  0xda   : > { %8291 = vst [vmem:[#allocation44_spill] sm:$0xff] %v6708_v36  ;;  %v6718_v47 = vld [vmem:[%s6494_s3 + $0x178] sm:$0xff]  ;;  %v730_v55 = vadd.f32 %v729_v25, %v6687_v15  ;;  %v739_v57 = vadd.f32 %v738_v30, %v6708_v36  ;;  %v6729_v61 = vld [vmem:[%s6494_s3 + $0x1b0] sm:$0xff]  ;;  %v6734_v14 = vld [vmem:[%s6494_s3 + $0x1e0] sm:$0xff] }
  0xdb   : > { %8292 = vst [vmem:[#allocation45_spill] sm:$0xff] %v6718_v47  ;;  %v6722_v51 = vld [vmem:[%s6494_s3 + $0x158] sm:$0xff]  ;;  %8294 = vst [vmem:[#allocation47_spill] sm:$0xff] %v6729_v61  ;;  %v6737_v19 = vld [vmem:[%s6494_s3 + $0x1e8] sm:$0xff]  ;;  %v745_v25 = vadd.f32 %v744_v49, %v6718_v47  ;;  %v754_v30 = vadd.f32 %v753_v54, %v6729_v61 }
  0xdc   : > { %726 = vadd.xlane.f32.xlu1 %v725_v8  ;;  %8293 = vst [vmem:[#allocation46_spill] sm:$0xff] %v6722_v51  ;;  %v748_v8 = vadd.f32 %v6714_v42, %v6711_v40  ;;  %v6740_v28 = vld [vmem:[%s6494_s3 + $0x190] sm:$0xff]  ;;  %v6746_v10 = vld [vmem:[%s6494_s3 + $0x1c8] sm:$0xff]  ;;  %v763_v36 = vadd.f32 %v6737_v19, %v6734_v14  ;;  %v740_v56 = vadd.f32 %v739_v57, %v6722_v51  ;;  %v6754_v15 = vld [vmem:[%s6494_s3 + $0x1b8] sm:$0xff] }
  0xdd   : > { %721 = vadd.xlane.f32.xlu0 %v720_v24  ;;  %8295 = vst [vmem:[#allocation48_spill] sm:$0xff] %v6740_v28  ;;  %v6743_v24 = vld [vmem:[%s6494_s3 + $0x1c0] sm:$0xff]  ;;  %8296 = vst [vmem:[#allocation49_spill] sm:$0xff] %v6746_v10  ;;  %v6758_v50 = vld [vmem:[%s6494_s3 + $0x1f0] sm:$0xff]  ;;  %v755_v54 = vadd.f32 %v754_v30, %v6754_v15 }
  0xde   : > { %v749_v60 = vadd.f32 %v748_v8, %v6740_v28  ;;  %8297 = vst [vmem:[#allocation50_spill] sm:$0xff] %v6758_v50  ;;  %v6763_v49 = vld [vmem:[%s6494_s3 + $0x198] sm:$0xff]  ;;  %v6766_v47 = vld [vmem:[%s6494_s3 + $0x1d0] sm:$0xff] }
  0xdf   : > { %v6772_v61 = vld [vmem:[%s6494_s3 + $0x1f8] sm:$0xff] }
  0xe0   : > { %736 = vadd.xlane.f32.xlu1 %v735_v45  ;;  %v758_v45 = vadd.f32 %v6746_v10, %v6743_v24  ;;  %v750_v57 = vadd.f32 %v749_v60, %v6763_v49  ;;  %8298 = vst [vmem:[#allocation51_spill] sm:$0xff] %v6772_v61  ;;  %v6776_v28 = vld [vmem:[%s6494_s3 + $0x1d8] sm:$0xff] }
  0xe1   : > { %731 = vadd.xlane.f32.xlu0 %v730_v55  ;;  %v764_v55 = vadd.f32 %v763_v36, %v6758_v50 }
  0xe2   : > { %v759_v8 = vadd.f32 %v758_v45, %v6766_v47 }
  0xe3   : > { %v765_v51 = vadd.f32 %v764_v55, %v6772_v61 }
  0xe4   : > { %746 = vadd.xlane.f32.xlu1 %v745_v25  ;;  %v760_v10 = vadd.f32 %v759_v8, %v6776_v28 }
  0xe5   : > { %741 = vadd.xlane.f32.xlu0 %v740_v56 }
  0xe8   : > { %756 = vadd.xlane.f32.xlu1 %v755_v54 }
  0xe9   : > { %751 = vadd.xlane.f32.xlu0 %v750_v57 }
  0xec   : > { %766 = vadd.xlane.f32.xlu1 %v765_v51 }
  0xed   : > { %761 = vadd.xlane.f32.xlu0 %v760_v10 }
 0x159   : > { %v702_v25 = vpop.xlane.xlu1 %701 }
 0x15a   : > { %v771_v30 = vmul.f32 0.001953125, %v702_v25  ;;  %v692_v36 = vpop.xlane.xlu0 %691 }
 0x15b   : > { %v769_v56 = vmul.f32 0.001953125, %v692_v36 }
 0x15c   : > { %v6781_v60 = vsub.f32 %v6525_v0, %v771_v30  ;;  %v6784_v50 = vsub.f32 %v6528_v1, %v771_v30  ;;  %v6787_v45 = vsub.f32 %v6531_v2, %v771_v30  ;;  %v6790_v54 = vsub.f32 %v6542_v6, %v771_v30 }
 0x15d   : > { %v6793_v55 = vsub.f32 %v6536_v4, %v769_v56  ;;  %v6796_v10 = vsub.f32 %v6539_v5, %v769_v56  ;;  %v707_v51 = vpop.xlane.xlu1 %706  ;;  %v6799_v57 = vsub.f32 %v6545_v7, %v769_v56  ;;  %v6802_v0 = vsub.f32 %v6554_v11, %v769_v56 }
 0x15e   : > { %8299 = vst [vmem:[#allocation52_spill] sm:$0xff] %v6781_v60  ;;  %8300 = vst [vmem:[#allocation53_spill] sm:$0xff] %v6784_v50  ;;  %v772_v1 = vmul.f32 0.001953125, %v707_v51  ;;  %v697_v8 = vpop.xlane.xlu0 %696  ;;  %v857_v2 = vmul.f32 %v6781_v60, %v6781_v60  ;;  %v858_v6 = vmul.f32 %v6784_v50, %v6784_v50  ;;  %v859_v4 = vmul.f32 %v6787_v45, %v6787_v45 }
 0x15f   : > { %8301 = vst [vmem:[#allocation54_spill] sm:$0xff] %v6787_v45  ;;  %8302 = vst [vmem:[#allocation55_spill] sm:$0xff] %v6790_v54  ;;  %v770_v5 = vmul.f32 0.001953125, %v697_v8  ;;  %v849_v25 = vmul.f32 %v6793_v55, %v6793_v55  ;;  %v850_v7 = vmul.f32 %v6796_v10, %v6796_v10  ;;  %v851_v11 = vmul.f32 %v6799_v57, %v6799_v57 }
 0x160   : > { %8303 = vst [vmem:[#allocation56_spill] sm:$0xff] %v6793_v55  ;;  %8304 = vst [vmem:[#allocation57_spill] sm:$0xff] %v6796_v10  ;;  %v6817_v30 = vsub.f32 %v6550_v9, %v772_v1  ;;  %v6820_v36 = vsub.f32 %v6557_v12, %v772_v1  ;;  %v852_v56 = vmul.f32 %v6802_v0, %v6802_v0 }
 0x161   : > { %8305 = vst [vmem:[#allocation58_spill] sm:$0xff] %v6799_v57  ;;  %8306 = vst [vmem:[#allocation59_spill] sm:$0xff] %v6802_v0  ;;  %v860_v51 = vmul.f32 %v6790_v54, %v6790_v54  ;;  %v6827_v8 = vsub.f32 %v6566_v16, %v770_v5  ;;  %v6830_v45 = vsub.f32 %v6569_v17, %v770_v5  ;;  %v717_v50 = vpop.xlane.xlu1 %716 }
 0x162   : > { %v913_v60 = vadd.f32 %v850_v7, %v849_v25  ;;  %v923_v57 = vadd.f32 %v858_v6, %v857_v2  ;;  %v774_v9 = vmul.f32 0.001953125, %v717_v50  ;;  %v712_v10 = vpop.xlane.xlu0 %711  ;;  %v6833_v12 = vsub.f32 %v6572_v18, %v770_v5 }
 0x163   : > { %v6836_v55 = vsub.f32 %v6589_v26, %v770_v5  ;;  %v6839_v0 = vsub.f32 %v6560_v13, %v772_v1  ;;  %v773_v54 = vmul.f32 0.001953125, %v712_v10  ;;  %v853_v17 = vmul.f32 %v6827_v8, %v6827_v8 }
 0x164   : > { %v914_v16 = vadd.f32 %v913_v60, %v851_v11  ;;  %v924_v61 = vadd.f32 %v923_v57, %v859_v4  ;;  %v6844_v25 = vsub.f32 %v6581_v22, %v774_v9  ;;  %v6847_v50 = vsub.f32 %v6584_v23, %v774_v9 }
 0x165   : > { %v854_v18 = vmul.f32 %v6830_v45, %v6830_v45  ;;  %v855_v26 = vmul.f32 %v6833_v12, %v6833_v12  ;;  %v6854_v13 = vsub.f32 %v6597_v29, %v773_v54  ;;  %v6857_v60 = vsub.f32 %v6604_v32, %v773_v54  ;;  %v727_v10 = vpop.xlane.xlu1 %726 }
 0x166   : > { %v915_v57 = vadd.f32 %v914_v16, %v852_v56  ;;  %v925_v2 = vadd.f32 %v924_v61, %v860_v51  ;;  %v6859_v22 = vmul.f32 0.001953125, %v727_v10  ;;  %v722_v6 = vpop.xlane.xlu0 %721  ;;  %v856_v23 = vmul.f32 %v6836_v55, %v6836_v55 }
 0x167   : > { %v918_v4 = vadd.f32 %v854_v18, %v853_v17  ;;  %v6864_v5 = vsub.f32 %v6576_v20, %v772_v1  ;;  %v775_v7 = vmul.f32 0.001953125, %v722_v6  ;;  %v861_v29 = vmul.f32 %v6817_v30, %v6817_v30 }
 0x168   : > { %916 = vadd.xlane.f32.xlu0 %v915_v57  ;;  %v862_v32 = vmul.f32 %v6820_v36, %v6820_v36  ;;  %v863_v61 = vmul.f32 %v6839_v0, %v6839_v0  ;;  %v6874_v11 = vsub.f32 %v6614_v37, %v6859_v22  ;;  %v6878_v56 = vsub.f32 %v6617_v38, %v6859_v22 }
 0x169   : > { %v919_v20 = vadd.f32 %v918_v4, %v855_v26  ;;  %v864_v1 = vmul.f32 %v6864_v5, %v6864_v5  ;;  %v6883_v51 = vsub.f32 %v6629_v43, %v775_v7  ;;  %v6886_v16 = vsub.f32 %v6632_v44, %v775_v7  ;;  %v737_v17 = vpop.xlane.xlu1 %736 }
 0x16a   : > { %8307 = vst [vmem:[#allocation60_spill] sm:$0xff] %v6874_v11  ;;  %v928_v18 = vadd.f32 %v862_v32, %v861_v29  ;;  %v6889_v10 = vsub.f32 %v6607_v33, %v773_v54  ;;  %v6891_v37 = vmul.f32 0.001953125, %v737_v17  ;;  %v732_v57 = vpop.xlane.xlu0 %731  ;;  %v6894_v26 = vsub.f32 %v6624_v41, %v773_v54 }
 0x16b   : > { %v920_v38 = vadd.f32 %v919_v20, %v856_v23  ;;  %v865_v6 = vmul.f32 %v6854_v13, %v6854_v13  ;;  %v777_v43 = vmul.f32 0.001953125, %v732_v57  ;;  %v866_v44 = vmul.f32 %v6857_v60, %v6857_v60 }
 0x16c   : > { %926 = vadd.xlane.f32.xlu0 %v925_v2  ;;  %v929_v4 = vadd.f32 %v928_v18, %v863_v61  ;;  %v867_v33 = vmul.f32 %v6889_v10, %v6889_v10  ;;  %v6904_v29 = vsub.f32 %v6641_v48, %v6891_v37  ;;  %v6908_v41 = vsub.f32 %v6652_v53, %v6891_v37 }
 0x16d   : > { %921 = vadd.xlane.f32.xlu1 %v920_v38  ;;  %v868_v54 = vmul.f32 %v6894_v26, %v6894_v26  ;;  %v6913_v2 = vsub.f32 %v6592_v27, %v774_v9  ;;  %v6916_v23 = vsub.f32 %v6662_v58, %v777_v43  ;;  %v6919_v32 = vsub.f32 %v6665_v59, %v777_v43  ;;  %v747_v61 = vpop.xlane.xlu1 %746 }
 0x16e   : > { %8308 = vst [vmem:[#allocation61_spill] sm:$0xff] %v6908_v41  ;;  %v930_v48 = vadd.f32 %v929_v4, %v864_v1  ;;  %v933_v20 = vadd.f32 %v866_v44, %v865_v6  ;;  %v6921_v17 = vmul.f32 0.001953125, %v747_v61  ;;  %v742_v53 = vpop.xlane.xlu0 %741  ;;  %v6924_v18 = vsub.f32 %v6601_v31, %v774_v9 }
 0x16f   : > { %8309 = vst [vmem:[#allocation62_spill] sm:$0xff] %v6919_v32  ;;  %v869_v57 = vmul.f32 %v6844_v25, %v6844_v25  ;;  %v870_v27 = vmul.f32 %v6847_v50, %v6847_v50  ;;  %v6930_v58 = vmul.f32 0.001953125, %v742_v53  ;;  %v871_v59 = vmul.f32 %v6913_v2, %v6913_v2 }
 0x170   : > { %v934_v38 = vadd.f32 %v933_v20, %v867_v33  ;;  %v6935_v1 = vsub.f32 %v6636_v46, %v775_v7  ;;  %v6939_v6 = vsub.f32 %v6673_v62, %v6921_v17  ;;  %v6943_v31 = vsub.f32 %v6676_v63, %v6921_v17 }
 0x171   : > { %931 = vadd.xlane.f32.xlu1 %v930_v48  ;;  %v872_v9 = vmul.f32 %v6924_v18, %v6924_v18  ;;  %v938_v4 = vadd.f32 %v870_v27, %v869_v57  ;;  %v6949_v44 = vsub.f32 %v6679_v3, %v6930_v58  ;;  %v6953_v46 = vsub.f32 %v6692_v21, %v6930_v58  ;;  %v757_v62 = vpop.xlane.xlu1 %756 }
 0x172   : > { %v935_v33 = vadd.f32 %v934_v38, %v868_v54  ;;  %v6956_v61 = vsub.f32 %v6649_v52, %v775_v7  ;;  %v6958_v63 = vmul.f32 0.001953125, %v757_v62  ;;  %v752_v48 = vpop.xlane.xlu0 %751  ;;  %v873_v53 = vmul.f32 %v6883_v51, %v6883_v51  ;;  %v8313_v62 = vld [vmem:[#allocation38_spill] sm:$0xff] }
 0x173   : > { %8310 = vst [vmem:[#allocation63_spill] sm:$0xff] %v6949_v44  ;;  %8311 = vst [vmem:[#allocation64_spill] sm:$0xff] %v6953_v46  ;;  %v939_v20 = vadd.f32 %v938_v4, %v871_v59  ;;  %v874_v3 = vmul.f32 %v6886_v16, %v6886_v16  ;;  %v6964_v57 = vmul.f32 0.001953125, %v752_v48  ;;  %v875_v21 = vmul.f32 %v6935_v1, %v6935_v1 }
 0x174   : > { %936 = vadd.xlane.f32.xlu0 %v935_v33  ;;  %v876_v52 = vmul.f32 %v6956_v61, %v6956_v61  ;;  %v6972_v7 = vsub.f32 %v6620_v39, %v6859_v22  ;;  %v6976_v54 = vsub.f32 %v6702_v34, %v6958_v63  ;;  %v6980_v27 = vsub.f32 %v6705_v35, %v6958_v63 }
 0x175   : > { %v940_v38 = vadd.f32 %v939_v20, %v872_v9  ;;  %v943_v59 = vadd.f32 %v874_v3, %v873_v53  ;;  %v6984_v4 = vsub.f32 %v6711_v40, %v6964_v57  ;;  %v6988_v33 = vsub.f32 %v6714_v42, %v6964_v57  ;;  %v767_v39 = vpop.xlane.xlu1 %766  ;;  %v8315_v3 = vld [vmem:[#allocation40_spill] sm:$0xff] }
 0x176   : > { %8312 = vst [vmem:[#allocation65_spill] sm:$0xff] %v6972_v7  ;;  %v6992_v48 = vsub.f32 %v8313_v62, %v6859_v22  ;;  %v877_v34 = vmul.f32 %v6874_v11, %v6874_v11  ;;  %v6996_v9 = vmul.f32 0.001953125, %v767_v39  ;;  %v762_v20 = vpop.xlane.xlu0 %761  ;;  %v878_v40 = vmul.f32 %v6878_v56, %v6878_v56  ;;  %v8317_v11 = vld [vmem:[#allocation42_spill] sm:$0xff] }
 0x177   : > { %941 = vadd.xlane.f32.xlu1 %v940_v38  ;;  %v944_v35 = vadd.f32 %v943_v59, %v875_v21  ;;  %v879_v42 = vmul.f32 %v6972_v7, %v6972_v7  ;;  %v7002_v53 = vmul.f32 0.001953125, %v762_v20  ;;  %v7007_v62 = vsub.f32 %v8315_v3, %v777_v43  ;;  %v8321_v3 = vld [vmem:[#allocation49_spill] sm:$0xff] }
 0x178   : > { %8314 = vst [vmem:[#allocation38_spill] sm:$0xff] %v6992_v48  ;;  %v880_v22 = vmul.f32 %v6992_v48, %v6992_v48  ;;  %v7010_v38 = vsub.f32 %v8317_v11, %v777_v43  ;;  %v7014_v59 = vsub.f32 %v6734_v14, %v6996_v9  ;;  %v7018_v39 = vsub.f32 %v6737_v19, %v6996_v9 }
 0x179   : > { %8316 = vst [vmem:[#allocation40_spill] sm:$0xff] %v7007_v62  ;;  %v945_v21 = vadd.f32 %v944_v35, %v876_v52  ;;  %v948_v20 = vadd.f32 %v878_v40, %v877_v34  ;;  %v7022_v7 = vsub.f32 %v6743_v24, %v7002_v53  ;;  %v7026_v48 = vsub.f32 %v8321_v3, %v7002_v53  ;;  %v8322_v24 = vld [vmem:[#allocation39_spill] sm:$0xff]  ;;  %v8323_v40 = vld [vmem:[#allocation41_spill] sm:$0xff] }
 0x17a   : > { %8318 = vst [vmem:[#allocation42_spill] sm:$0xff] %v7010_v38  ;;  %8319 = vst [vmem:[#allocation66_spill] sm:$0xff] %v7014_v59  ;;  %v881_v11 = vmul.f32 %v6916_v23, %v6916_v23  ;;  %v882_v14 = vmul.f32 %v6919_v32, %v6919_v32  ;;  %v883_v19 = vmul.f32 %v7007_v62, %v7007_v62 }
 0x17b   : > { %8320 = vst [vmem:[#allocation67_spill] sm:$0xff] %v7018_v39  ;;  %946 = vadd.xlane.f32.xlu0 %v945_v21  ;;  %v949_v43 = vadd.f32 %v948_v20, %v879_v42  ;;  %v884_v52 = vmul.f32 %v7010_v38, %v7010_v38  ;;  %v7038_v34 = vsub.f32 %v8322_v24, %v6891_v37  ;;  %v8324_v38 = vld [vmem:[#allocation44_spill] sm:$0xff] }
 0x17c   : > { %v953_v35 = vadd.f32 %v882_v14, %v881_v11  ;;  %v7042_v3 = vsub.f32 %v8323_v40, %v6891_v37  ;;  %v885_v32 = vmul.f32 %v6904_v29, %v6904_v29  ;;  %v886_v42 = vmul.f32 %v6908_v41, %v6908_v41  ;;  %v8326_v11 = vld [vmem:[#allocation46_spill] sm:$0xff] }
 0x17d   : > { %v950_v21 = vadd.f32 %v949_v43, %v880_v22  ;;  %v887_v20 = vmul.f32 %v7038_v34, %v7038_v34  ;;  %v7052_v62 = vsub.f32 %v8324_v38, %v6930_v58  ;;  %v7056_v14 = vsub.f32 %v8326_v11, %v6930_v58  ;;  %v8328_v58 = vld [vmem:[#allocation43_spill] sm:$0xff] }
 0x17e   : > { %v954_v37 = vadd.f32 %v953_v35, %v883_v19  ;;  %v888_v24 = vmul.f32 %v7042_v3, %v7042_v3  ;;  %v958_v40 = vadd.f32 %v886_v42, %v885_v32  ;;  %v889_v41 = vmul.f32 %v6949_v44, %v6949_v44  ;;  %v8329_v32 = vld [vmem:[#allocation45_spill] sm:$0xff]  ;;  %v8330_v44 = vld [vmem:[#allocation48_spill] sm:$0xff] }
 0x17f   : > { %8325 = vst [vmem:[#allocation49_spill] sm:$0xff] %v7052_v62  ;;  %8327 = vst [vmem:[#allocation39_spill] sm:$0xff] %v7056_v14  ;;  %951 = vadd.xlane.f32.xlu1 %v950_v21  ;;  %v890_v22 = vmul.f32 %v6953_v46, %v6953_v46  ;;  %v891_v38 = vmul.f32 %v7052_v62, %v7052_v62  ;;  %v892_v43 = vmul.f32 %v7056_v14, %v7056_v14 }
 0x180   : > { %v7070_v19 = vsub.f32 %v8328_v58, %v6921_v17  ;;  %v955_v35 = vadd.f32 %v954_v37, %v884_v52  ;;  %v959_v11 = vadd.f32 %v958_v40, %v887_v20  ;;  %v7074_v42 = vsub.f32 %v8329_v32, %v6921_v17 }
 0x181   : > { %v893_v21 = vmul.f32 %v6939_v6, %v6939_v6  ;;  %v963_v46 = vadd.f32 %v890_v22, %v889_v41  ;;  %v894_v62 = vmul.f32 %v6943_v31, %v6943_v31  ;;  %v7084_v58 = vsub.f32 %v8330_v44, %v6964_v57 }
 0x182   : > { %v895_v14 = vmul.f32 %v7070_v19, %v7070_v19  ;;  %956 = vadd.xlane.f32.xlu0 %v955_v35  ;;  %v960_v52 = vadd.f32 %v959_v11, %v888_v24  ;;  %v896_v17 = vmul.f32 %v7074_v42, %v7074_v42  ;;  %v7090_v20 = vsub.f32 %v6763_v49, %v6964_v57  ;;  %v8331_v35 = vld [vmem:[#allocation47_spill] sm:$0xff] }
 0x183   : > { %v897_v41 = vmul.f32 %v6984_v4, %v6984_v4  ;;  %v964_v37 = vadd.f32 %v963_v46, %v891_v38  ;;  %v968_v40 = vadd.f32 %v894_v62, %v893_v21  ;;  %v898_v22 = vmul.f32 %v6988_v33, %v6988_v33 }
 0x184   : > { %v899_v44 = vmul.f32 %v7084_v58, %v7084_v58  ;;  %961 = vadd.xlane.f32.xlu1 %v960_v52  ;;  %v900_v24 = vmul.f32 %v7090_v20, %v7090_v20  ;;  %v7102_v11 = vsub.f32 %v8331_v35, %v6958_v63  ;;  %v7106_v49 = vsub.f32 %v6754_v15, %v6958_v63 }
 0x185   : > { %v901_v46 = vmul.f32 %v6976_v54, %v6976_v54  ;;  %v965_v57 = vadd.f32 %v964_v37, %v892_v43  ;;  %v969_v62 = vadd.f32 %v968_v40, %v895_v14  ;;  %v973_v38 = vadd.f32 %v898_v22, %v897_v41 }
 0x186   : > { %v902_v32 = vmul.f32 %v6980_v27, %v6980_v27  ;;  %v903_v21 = vmul.f32 %v7102_v11, %v7102_v11  ;;  %v904_v52 = vmul.f32 %v7106_v49, %v7106_v49  ;;  %v7118_v35 = vsub.f32 %v6766_v47, %v7002_v53  ;;  %v8332_v47 = vld [vmem:[#allocation50_spill] sm:$0xff] }
 0x187   : > { %v7122_v15 = vsub.f32 %v6776_v28, %v7002_v53  ;;  %966 = vadd.xlane.f32.xlu0 %v965_v57  ;;  %v970_v63 = vadd.f32 %v969_v62, %v896_v17  ;;  %v974_v14 = vadd.f32 %v973_v38, %v899_v44  ;;  %v905_v41 = vmul.f32 %v7022_v7, %v7022_v7  ;;  %v8334_v17 = vld [vmem:[#allocation51_spill] sm:$0xff] }
 0x188   : > { %v978_v43 = vadd.f32 %v902_v32, %v901_v46  ;;  %v906_v37 = vmul.f32 %v7026_v48, %v7026_v48  ;;  %v907_v40 = vmul.f32 %v7118_v35, %v7118_v35  ;;  %v7132_v22 = vsub.f32 %v8332_v47, %v6996_v9 }
 0x189   : > { %971 = vadd.xlane.f32.xlu1 %v970_v63  ;;  %v975_v28 = vadd.f32 %v974_v14, %v900_v24  ;;  %v7136_v44 = vsub.f32 %v8334_v17, %v6996_v9  ;;  %v909_v46 = vmul.f32 %v7014_v59, %v7014_v59  ;;  %v908_v57 = vmul.f32 %v7122_v15, %v7122_v15  ;;  %v8351_v59 = vld [vmem:[#allocation55_spill] sm:$0xff] }
 0x18a   : > { %8333 = vst [vmem:[#allocation41_spill] sm:$0xff] %v7132_v22  ;;  %v979_v53 = vadd.f32 %v978_v43, %v903_v21  ;;  %v983_v62 = vadd.f32 %v906_v37, %v905_v41  ;;  %v910_v38 = vmul.f32 %v7018_v39, %v7018_v39  ;;  %v911_v24 = vmul.f32 %v7132_v22, %v7132_v22  ;;  %v8350_v39 = vld [vmem:[#allocation54_spill] sm:$0xff] }
 0x18b   : > { %8335 = vst [vmem:[#allocation44_spill] sm:$0xff] %v7136_v44  ;;  %976 = vadd.xlane.f32.xlu0 %v975_v28  ;;  %v912_v21 = vmul.f32 %v7136_v44, %v7136_v44  ;;  %v8345_v44 = vld [vmem:[#allocation53_spill] sm:$0xff] }
 0x18c   : > { %v980_v9 = vadd.f32 %v979_v53, %v904_v52  ;;  %v984_v32 = vadd.f32 %v983_v62, %v907_v40  ;;  %v988_v63 = vadd.f32 %v910_v38, %v909_v46 }
 0x18e   : > { %981 = vadd.xlane.f32.xlu1 %v980_v9  ;;  %v985_v14 = vadd.f32 %v984_v32, %v908_v57  ;;  %v989_v43 = vadd.f32 %v988_v63, %v911_v24 }
 0x190   : > { %986 = vadd.xlane.f32.xlu0 %v985_v14  ;;  %v990_v41 = vadd.f32 %v989_v43, %v912_v21 }
 0x192   : > { %991 = vadd.xlane.f32.xlu1 %v990_v41 }
 0x1f1   : > { %v917_v52 = vpop.xlane.xlu0 %916 }
 0x1f2   : > { %v993_v37 = vmul.f32 0.001953125, %v917_v52 }
 0x1f4   : > { %v1009_v40 = vadd.f32 1e-05, %v993_v37 }
 0x1f5   : > { %v927_v47 = vpop.xlane.xlu0 %926 }
 0x1f6   : > { %v922_v28 = vpop.xlane.xlu1 %921  ;;  %v995_v53 = vmul.f32 0.001953125, %v927_v47  ;;  %5091 = vrsqrt.f32 %v1009_v40 }
 0x1f7   : > { %v994_v17 = vmul.f32 0.001953125, %v922_v28 }
 0x1f8   : > { %v1011_v46 = vadd.f32 1e-05, %v995_v53  ;;  %v8340_v53 = vld [vmem:[#allocation56_spill] sm:$0xff] }
 0x1f9   : > { %v1010_v57 = vadd.f32 1e-05, %v994_v17 }
 0x1fa   : > { %5093 = vrsqrt.f32 %v1011_v46  ;;  %v932_v62 = vpop.xlane.xlu1 %931  ;;  %v8341_v46 = vld [vmem:[#allocation57_spill] sm:$0xff] }
 0x1fb   : > { %5095 = vrsqrt.f32 %v1010_v57  ;;  %v996_v38 = vmul.f32 0.001953125, %v932_v62  ;;  %v8342_v62 = vld [vmem:[#allocation58_spill] sm:$0xff] }
 0x1fd   : > { %v1012_v24 = vadd.f32 1e-05, %v996_v38  ;;  %v937_v9 = vpop.xlane.xlu0 %936 }
 0x1fe   : > { %v997_v32 = vmul.f32 0.001953125, %v937_v9  ;;  %v8343_v9 = vld [vmem:[#allocation59_spill] sm:$0xff] }
 0x1ff   : > { %5097 = vrsqrt.f32 %v1012_v24 }
 0x200   : > { %v1013_v21 = vadd.f32 1e-05, %v997_v32  ;;  %v942_v63 = vpop.xlane.xlu1 %941 }
 0x201   : > { %v998_v14 = vmul.f32 0.001953125, %v942_v63 }
 0x202   : > { %5099 = vrsqrt.f32 %v1013_v21 }
 0x203   : > { %v1014_v43 = vadd.f32 1e-05, %v998_v14  ;;  %v5092_v52 = vpop.eup %5091 }
 0x204   : > { %v947_v41 = vpop.xlane.xlu0 %946  ;;  %v1041_v17 = vmul.f32 %v5092_v52, %v8340_v53  ;;  %v1042_v57 = vmul.f32 %v5092_v52, %v8341_v46  ;;  %v1043_v38 = vmul.f32 %v5092_v52, %v8342_v62  ;;  %v1044_v24 = vmul.f32 %v5092_v52, %v8343_v9 }
 0x205   : > { %5101 = vrsqrt.f32 %v1014_v43  ;;  %v999_v37 = vmul.f32 0.001953125, %v947_v41  ;;  %v8344_v41 = vld [vmem:[#allocation52_spill] sm:$0xff] }
 0x207   : > { %v5094_v40 = vpop.eup %5093  ;;  %v1015_v47 = vadd.f32 1e-05, %v999_v37 }
 0x208   : > { %v5096_v28 = vpop.eup %5095  ;;  %v952_v32 = vpop.xlane.xlu1 %951  ;;  %v1049_v37 = vmul.f32 %v5094_v40, %v8344_v41  ;;  %v1050_v22 = vmul.f32 %v5094_v40, %v8345_v44 }
 0x209   : > { %v1045_v63 = vmul.f32 %v5096_v28, %v6827_v8  ;;  %v1046_v21 = vmul.f32 %v5096_v28, %v6830_v45  ;;  %v1047_v14 = vmul.f32 %v5096_v28, %v6833_v12  ;;  %v1048_v43 = vmul.f32 %v5096_v28, %v6836_v55 }
 0x20a   : > { %5103 = vrsqrt.f32 %v1015_v47  ;;  %v1000_v53 = vmul.f32 0.001953125, %v952_v32  ;;  %v1051_v12 = vmul.f32 %v5094_v40, %v8350_v39  ;;  %v1052_v55 = vmul.f32 %v5094_v40, %v8351_v59 }
 0x20b   : > { %v7169_v46 = vpack.c.bf16 %v1045_v63, %v1041_v17  ;;  %v7171_v62 = vpack.c.bf16 %v1046_v21, %v1042_v57  ;;  %v7173_v52 = vpack.c.bf16 %v1047_v14, %v1043_v38  ;;  %v7175_v9 = vpack.c.bf16 %v1048_v43, %v1044_v24  ;;  %v957_v8 = vpop.xlane.xlu0 %956 }
 0x20c   : > { %v5098_v45 = vpop.eup %5097  ;;  %v1016_v28 = vadd.f32 1e-05, %v1000_v53  ;;  %v1001_v41 = vmul.f32 0.001953125, %v957_v8 }
 0x20d   : > { %8346 = vst [vmem:[#allocation46_spill] sm:$0xff] %v7169_v46  ;;  %8347 = vst [vmem:[#allocation43_spill] sm:$0xff] %v7171_v62  ;;  %v1053_v44 = vmul.f32 %v5098_v45, %v6817_v30  ;;  %v1054_v47 = vmul.f32 %v5098_v45, %v6820_v36  ;;  %v1055_v17 = vmul.f32 %v5098_v45, %v6839_v0  ;;  %v962_v38 = vpop.xlane.xlu1 %961 }
 0x20e   : > { %8348 = vst [vmem:[#allocation45_spill] sm:$0xff] %v7173_v52  ;;  %8349 = vst [vmem:[#allocation48_spill] sm:$0xff] %v7175_v9  ;;  %v1056_v57 = vmul.f32 %v5098_v45, %v6864_v5  ;;  %5105 = vrsqrt.f32 %v1016_v28  ;;  %v1017_v24 = vadd.f32 1e-05, %v1001_v41  ;;  %v1002_v32 = vmul.f32 0.001953125, %v962_v38 }
 0x20f   : > { %v5100_v63 = vpop.eup %5099  ;;  %v7183_v21 = vpack.c.bf16 %v1053_v44, %v1049_v37  ;;  %v7185_v39 = vpack.c.bf16 %v1054_v47, %v1050_v22  ;;  %v7187_v59 = vpack.c.bf16 %v1055_v17, %v1051_v12 }
 0x210   : > { %v7189_v40 = vpack.c.bf16 %v1056_v57, %v1052_v55  ;;  %v967_v30 = vpop.xlane.xlu0 %966  ;;  %5107 = vrsqrt.f32 %v1017_v24  ;;  %v1018_v36 = vadd.f32 1e-05, %v1002_v32  ;;  %v1057_v5 = vmul.f32 %v5100_v63, %v6854_v13 }
 0x211   : > { %8352 = vst [vmem:[#allocation47_spill] sm:$0xff] %v7183_v21  ;;  %8353 = vst [vmem:[#allocation50_spill] sm:$0xff] %v7185_v39  ;;  %v1003_v14 = vmul.f32 0.001953125, %v967_v30  ;;  %v1058_v43 = vmul.f32 %v5100_v63, %v6857_v60  ;;  %v1059_v53 = vmul.f32 %v5100_v63, %v6889_v10  ;;  %v1060_v37 = vmul.f32 %v5100_v63, %v6894_v26 }
 0x212   : > { %8354 = vst [vmem:[#allocation51_spill] sm:$0xff] %v7187_v59  ;;  %8355 = vst [vmem:[#allocation56_spill] sm:$0xff] %v7189_v40  ;;  %v5102_v0 = vpop.eup %5101  ;;  %v972_v8 = vpop.xlane.xlu1 %971  ;;  %5109 = vrsqrt.f32 %v1018_v36 }
 0x213   : > { %v1061_v22 = vmul.f32 %v5102_v0, %v6844_v25  ;;  %v1062_v45 = vmul.f32 %v5102_v0, %v6847_v50  ;;  %v1063_v12 = vmul.f32 %v5102_v0, %v6913_v2  ;;  %v1064_v55 = vmul.f32 %v5102_v0, %v6924_v18 }
 0x214   : > { %v1019_v28 = vadd.f32 1e-05, %v1003_v14  ;;  %v1004_v41 = vmul.f32 0.001953125, %v972_v8  ;;  %v977_v44 = vpop.xlane.xlu0 %976 }
 0x215   : > { %v7199_v13 = vpack.c.bf16 %v1061_v22, %v1057_v5  ;;  %v7201_v60 = vpack.c.bf16 %v1062_v45, %v1058_v43  ;;  %v7203_v10 = vpack.c.bf16 %v1063_v12, %v1059_v53  ;;  %v7205_v26 = vpack.c.bf16 %v1064_v55, %v1060_v37  ;;  %v8360_v5 = vld [vmem:[#allocation60_spill] sm:$0xff]  ;;  %v8361_v37 = vld [vmem:[#allocation65_spill] sm:$0xff]  ;;  %v8362_v22 = vld [vmem:[#allocation38_spill] sm:$0xff] }
 0x216   : > { %5111 = vrsqrt.f32 %v1019_v28  ;;  %v1020_v25 = vadd.f32 1e-05, %v1004_v41  ;;  %v1005_v47 = vmul.f32 0.001953125, %v977_v44 }
 0x217   : > { %8356 = vst [vmem:[#allocation57_spill] sm:$0xff] %v7199_v13  ;;  %8357 = vst [vmem:[#allocation58_spill] sm:$0xff] %v7201_v60  ;;  %v982_v50 = vpop.xlane.xlu1 %981  ;;  %v5104_v17 = vpop.eup %5103 }
 0x218   : > { %8358 = vst [vmem:[#allocation59_spill] sm:$0xff] %v7203_v10  ;;  %8359 = vst [vmem:[#allocation52_spill] sm:$0xff] %v7205_v26  ;;  %v1006_v2 = vmul.f32 0.001953125, %v982_v50  ;;  %5113 = vrsqrt.f32 %v1020_v25  ;;  %v1021_v18 = vadd.f32 1e-05, %v1005_v47  ;;  %v1065_v24 = vmul.f32 %v5104_v17, %v6883_v51  ;;  %v8367_v25 = vld [vmem:[#allocation62_spill] sm:$0xff] }
 0x219   : > { %v987_v38 = vpop.xlane.xlu0 %986  ;;  %v1066_v30 = vmul.f32 %v5104_v17, %v6886_v16  ;;  %v1067_v36 = vmul.f32 %v5104_v17, %v6935_v1  ;;  %v1068_v14 = vmul.f32 %v5104_v17, %v6956_v61  ;;  %v8368_v50 = vld [vmem:[#allocation40_spill] sm:$0xff] }
 0x21a   : > { %v1022_v57 = vadd.f32 1e-05, %v1006_v2  ;;  %v1007_v32 = vmul.f32 0.001953125, %v987_v38  ;;  %5115 = vrsqrt.f32 %v1021_v18  ;;  %v8369_v2 = vld [vmem:[#allocation42_spill] sm:$0xff]  ;;  %v8370_v38 = vld [vmem:[#allocation61_spill] sm:$0xff] }
 0x21b   : > { %v5106_v63 = vpop.eup %5105  ;;  %v992_v0 = vpop.xlane.xlu1 %991 }
 0x21c   : > { %v1069_v43 = vmul.f32 %v5106_v63, %v8360_v5  ;;  %v1070_v53 = vmul.f32 %v5106_v63, %v6878_v56  ;;  %v1071_v8 = vmul.f32 %v5106_v63, %v8361_v37  ;;  %v1072_v45 = vmul.f32 %v5106_v63, %v8362_v22 }
 0x21d   : > { %5117 = vrsqrt.f32 %v1022_v57  ;;  %v1023_v51 = vadd.f32 1e-05, %v1007_v32  ;;  %v1008_v12 = vmul.f32 0.001953125, %v992_v0  ;;  %v5108_v55 = vpop.eup %5107 }
 0x21e   : > { %v7215_v28 = vpack.c.bf16 %v1069_v43, %v1065_v24  ;;  %v7217_v16 = vpack.c.bf16 %v1070_v53, %v1066_v30  ;;  %v7219_v1 = vpack.c.bf16 %v1071_v8, %v1067_v36  ;;  %v7221_v61 = vpack.c.bf16 %v1072_v45, %v1068_v14  ;;  %v8375_v43 = vld [vmem:[#allocation63_spill] sm:$0xff]  ;;  %v8377_v8 = vld [vmem:[#allocation49_spill] sm:$0xff] }
 0x21f   : > { %5119 = vrsqrt.f32 %v1023_v51  ;;  %v1024_v41 = vadd.f32 1e-05, %v1008_v12  ;;  %v5110_v44 = vpop.eup %5109  ;;  %v1073_v56 = vmul.f32 %v5108_v55, %v6916_v23  ;;  %v1074_v47 = vmul.f32 %v5108_v55, %v8367_v25 }
 0x220   : > { %8363 = vst [vmem:[#allocation53_spill] sm:$0xff] %v7215_v28  ;;  %8364 = vst [vmem:[#allocation54_spill] sm:$0xff] %v7217_v16  ;;  %v1075_v17 = vmul.f32 %v5108_v55, %v8368_v50  ;;  %v1076_v18 = vmul.f32 %v5108_v55, %v8369_v2  ;;  %v1077_v57 = vmul.f32 %v5110_v44, %v6904_v29  ;;  %v8376_v29 = vld [vmem:[#allocation64_spill] sm:$0xff] }
 0x221   : > { %8365 = vst [vmem:[#allocation55_spill] sm:$0xff] %v7219_v1  ;;  %8366 = vst [vmem:[#allocation60_spill] sm:$0xff] %v7221_v61  ;;  %v1078_v24 = vmul.f32 %v5110_v44, %v8370_v38  ;;  %v1079_v32 = vmul.f32 %v5110_v44, %v7038_v34  ;;  %v1080_v63 = vmul.f32 %v5110_v44, %v7042_v3  ;;  %5121 = vrsqrt.f32 %v1024_v41  ;;  %v8378_v34 = vld [vmem:[#allocation39_spill] sm:$0xff] }
 0x222   : > { %v7231_v36 = vpack.c.bf16 %v1077_v57, %v1073_v56 }
 0x223   : > { %v5112_v30 = vpop.eup %5111  ;;  %v7233_v14 = vpack.c.bf16 %v1078_v24, %v1074_v47  ;;  %v7235_v23 = vpack.c.bf16 %v1079_v32, %v1075_v17  ;;  %v7237_v0 = vpack.c.bf16 %v1080_v63, %v1076_v18 }
 0x224   : > { %8371 = vst [vmem:[#allocation65_spill] sm:$0xff] %v7231_v36  ;;  %v1081_v53 = vmul.f32 %v5112_v30, %v8375_v43  ;;  %v1082_v37 = vmul.f32 %v5112_v30, %v8376_v29  ;;  %v1083_v22 = vmul.f32 %v5112_v30, %v8377_v8  ;;  %v1084_v45 = vmul.f32 %v5112_v30, %v8378_v34  ;;  %v8388_v30 = vld [vmem:[#allocation67_spill] sm:$0xff]  ;;  %v8389_v43 = vld [vmem:[#allocation41_spill] sm:$0xff]  ;;  %v8390_v29 = vld [vmem:[#allocation44_spill] sm:$0xff] }
 0x225   : > { %8372 = vst [vmem:[#allocation38_spill] sm:$0xff] %v7233_v14  ;;  %8373 = vst [vmem:[#allocation62_spill] sm:$0xff] %v7235_v23  ;;  %v5114_v5 = vpop.eup %5113 }
 0x226   : > { %8374 = vst [vmem:[#allocation40_spill] sm:$0xff] %v7237_v0  ;;  %v1085_v3 = vmul.f32 %v5114_v5, %v6939_v6  ;;  %v1086_v51 = vmul.f32 %v5114_v5, %v6943_v31  ;;  %v1087_v12 = vmul.f32 %v5114_v5, %v7070_v19  ;;  %v1088_v55 = vmul.f32 %v5114_v5, %v7074_v42 }
 0x227   : > { %v5116_v41 = vpop.eup %5115 }
 0x228   : > { %v7247_v44 = vpack.c.bf16 %v1085_v3, %v1081_v53  ;;  %v7249_v56 = vpack.c.bf16 %v1086_v51, %v1082_v37  ;;  %v7251_v25 = vpack.c.bf16 %v1087_v12, %v1083_v22  ;;  %v7253_v47 = vpack.c.bf16 %v1088_v55, %v1084_v45 }
 0x229   : > { %v1089_v17 = vmul.f32 %v5116_v41, %v6984_v4  ;;  %v1090_v6 = vmul.f32 %v5116_v41, %v6988_v33  ;;  %v1091_v31 = vmul.f32 %v5116_v41, %v7084_v58  ;;  %v1092_v19 = vmul.f32 %v5116_v41, %v7090_v20 }
 0x22a   : > { %8379 = vst [vmem:[#allocation42_spill] sm:$0xff] %v7247_v44  ;;  %8380 = vst [vmem:[#allocation61_spill] sm:$0xff] %v7249_v56  ;;  %v5118_v50 = vpop.eup %5117 }
 0x22b   : > { %8381 = vst [vmem:[#allocation63_spill] sm:$0xff] %v7251_v25  ;;  %8382 = vst [vmem:[#allocation64_spill] sm:$0xff] %v7253_v47  ;;  %v1093_v42 = vmul.f32 %v5118_v50, %v6976_v54  ;;  %v1094_v2 = vmul.f32 %v5118_v50, %v6980_v27  ;;  %v1095_v18 = vmul.f32 %v5118_v50, %v7102_v11 }
 0x22c   : > { %v1096_v57 = vmul.f32 %v5118_v50, %v7106_v49  ;;  %v5120_v38 = vpop.eup %5119  ;;  %v8387_v49 = vld [vmem:[#allocation66_spill] sm:$0xff] }
 0x22d   : > { %v7263_v24 = vpack.c.bf16 %v1093_v42, %v1089_v17  ;;  %v7265_v32 = vpack.c.bf16 %v1094_v2, %v1090_v6  ;;  %v7267_v4 = vpack.c.bf16 %v1095_v18, %v1091_v31  ;;  %v1097_v20 = vmul.f32 %v5120_v38, %v7022_v7 }
 0x22e   : > { %v7269_v33 = vpack.c.bf16 %v1096_v57, %v1092_v19  ;;  %v5122_v58 = vpop.eup %5121  ;;  %v1098_v54 = vmul.f32 %v5120_v38, %v7026_v48  ;;  %v1099_v27 = vmul.f32 %v5120_v38, %v7118_v35  ;;  %v1100_v11 = vmul.f32 %v5120_v38, %v7122_v15 }
 0x22f   : > { %8383 = vst [vmem:[#allocation49_spill] sm:$0xff] %v7263_v24  ;;  %8384 = vst [vmem:[#allocation39_spill] sm:$0xff] %v7265_v32  ;;  %v1101_v63 = vmul.f32 %v5122_v58, %v8387_v49  ;;  %v1102_v5 = vmul.f32 %v5122_v58, %v8388_v30  ;;  %v1103_v53 = vmul.f32 %v5122_v58, %v8389_v43 }
 0x230   : > { %8385 = vst [vmem:[#allocation68_spill] sm:$0xff] %v7267_v4  ;;  %8386 = vst [vmem:[#allocation69_spill] sm:$0xff] %v7269_v33  ;;  %v1104_v37 = vmul.f32 %v5122_v58, %v8390_v29  ;;  %1142 = sbr.rel (%p7155_p0) target bundleno = 569 (0x239), region = 108 }
 0x231   : > { %v7279_v8 = vpack.c.bf16 %v1101_v63, %v1097_v20  ;;  %v7281_v22 = vpack.c.bf16 %v1102_v5, %v1098_v54  ;;  %v7283_v34 = vpack.c.bf16 %v1103_v53, %v1099_v27 }
 0x232   : > { %v7285_v7 = vpack.c.bf16 %v1104_v37, %v1100_v11 }
 0x233   : > { %8391 = vst [vmem:[#allocation66_spill] sm:$0xff] %v7279_v8  ;;  %8392 = vst [vmem:[#allocation67_spill] sm:$0xff] %v7281_v22 }
 0x234   : > { %8393 = vst [vmem:[#allocation41_spill] sm:$0xff] %v7283_v34  ;;  %8394 = vst [vmem:[#allocation44_spill] sm:$0xff] %v7285_v7 }
 0x235   : > { %v1143_v48 = vlaneseq  ;;  %vm1148_vm0 = vcmask 0   ;;  %v6134_v35 = vmov 0.0  }
 0x236   : > { %1149 = vst.msk [vmem:[#allocation3] sm:$0x1] %vm1148_vm0, %v6134_v35 }
 0x237   : > { %vm1145_vm1 = vcmp.lt.s32.totalorder %v1143_v48, 256 }
 0x238   : > { %1147 = vst.msk [vmem:[#allocation2] sm:$0x3] %vm1145_vm1, %v6134_v35 }
 0x239 PF: > { %s8395_s14 = sld [smem:[#allocation30_spill]] }
 0x23f   : > { %p4514_p5 = scmp.ne.s32.totalorder %s8395_s14, 0 }
 0x241   : > { %1152 = sbr.rel (%p4514_p5) target bundleno = 1162 (0x48a), region = 112 }
 0x246   : > { %v5123_v15 = vld [vmem:[#allocation11 + $0x74] ss:$8 sps:$4 sm:$0xff]   ;;  %1582 = vmatprep.mubr.bf16.mxu0 %v7171_v62  ;;  %1695 = vmatprep.mubr.bf16.mxu1 %v7175_v9  ;;  %v5127_v3 = vld [vmem:[#allocation11 + $0x70] ss:$8 sps:$4 sm:$0xff]   ;;  %v5129_v12 = vld [vmem:[#allocation11 + $0x64] ss:$8 sps:$4 sm:$0xff]  }
 0x247   : > { %v5125_v45 = vld [vmem:[#allocation11 + $0x174] ss:$8 sps:$4 sm:$0xff]   ;;  %1550 = vmatprep.subr.bf16.mxu0 %v5123_v15  ;;  %v5128_v51 = vld [vmem:[#allocation11 + $0x170] ss:$8 sps:$4 sm:$0xff]   ;;  %v5131_v55 = vld [vmem:[#allocation11 + $0x164] ss:$8 sps:$4 sm:$0xff]  }
 0x248   : > { %1663 = vmatprep.subr.bf16.mxu1 %v5125_v45  ;;  %1551 = vmatpush1.bf16.msra.mxu0 %v5127_v3  ;;  %v5133_v41 = vld [vmem:[#allocation11 + $0x60] ss:$8 sps:$4 sm:$0xff]   ;;  %v5135_v17 = vld [vmem:[#allocation11 + $0x54] ss:$8 sps:$4 sm:$0xff]   ;;  %v5139_v31 = vld [vmem:[#allocation11 + $0x50] ss:$8 sps:$4 sm:$0xff]  }
 0x249   : > { %1664 = vmatpush1.bf16.msra.mxu1 %v5128_v51  ;;  %1552 = vmatprep.subr.bf16.mxu0 %v5129_v12  ;;  %v5134_v50 = vld [vmem:[#allocation11 + $0x160] ss:$8 sps:$4 sm:$0xff]   ;;  %v5137_v6 = vld [vmem:[#allocation11 + $0x154] ss:$8 sps:$4 sm:$0xff]   ;;  %v5140_v19 = vld [vmem:[#allocation11 + $0x150] ss:$8 sps:$4 sm:$0xff]  }
 0x24a   : > { %1665 = vmatprep.subr.bf16.mxu1 %v5131_v55  ;;  %v5141_v42 = vld [vmem:[#allocation11 + $0x44] ss:$8 sps:$4 sm:$0xff]   ;;  %v5145_v18 = vld [vmem:[#allocation11 + $0x40] ss:$8 sps:$4 sm:$0xff]   ;;  %v5147_v38 = vld [vmem:[#allocation11 + $0x34] ss:$8 sps:$4 sm:$0xff]  }
 0x24b   : > { %v5143_v2 = vld [vmem:[#allocation11 + $0x144] ss:$8 sps:$4 sm:$0xff]   ;;  %v5146_v57 = vld [vmem:[#allocation11 + $0x140] ss:$8 sps:$4 sm:$0xff]   ;;  %v5149_v58 = vld [vmem:[#allocation11 + $0x134] ss:$8 sps:$4 sm:$0xff]  }
 0x24c   : > { %1553 = vmatpush1.bf16.msra.mxu0 %v5133_v41  ;;  %v5151_v20 = vld [vmem:[#allocation11 + $0x30] ss:$8 sps:$4 sm:$0xff]   ;;  %v5153_v27 = vld [vmem:[#allocation11 + $0x24] ss:$8 sps:$4 sm:$0xff]   ;;  %v5157_v49 = vld [vmem:[#allocation11 + $0x20] ss:$8 sps:$4 sm:$0xff]  }
 0x24d   : > { %1666 = vmatpush1.bf16.msra.mxu1 %v5134_v50  ;;  %1554 = vmatprep.subr.bf16.mxu0 %v5135_v17  ;;  %v5152_v54 = vld [vmem:[#allocation11 + $0x130] ss:$8 sps:$4 sm:$0xff]   ;;  %v5155_v11 = vld [vmem:[#allocation11 + $0x124] ss:$8 sps:$4 sm:$0xff]   ;;  %v5158_v63 = vld [vmem:[#allocation11 + $0x120] ss:$8 sps:$4 sm:$0xff]  }
 0x24e   : > { %1667 = vmatprep.subr.bf16.mxu1 %v5137_v6  ;;  %v5159_v30 = vld [vmem:[#allocation11 + $0x14] ss:$8 sps:$4 sm:$0xff]   ;;  %v5163_v43 = vld [vmem:[#allocation11 + $0x10] ss:$8 sps:$4 sm:$0xff]   ;;  %v5165_v29 = vld [vmem:[#allocation11 + $0x4] ss:$8 sps:$4 sm:$0xff]  }
 0x24f   : > { %v5161_v5 = vld [vmem:[#allocation11 + $0x114] ss:$8 sps:$4 sm:$0xff]   ;;  %v5164_v53 = vld [vmem:[#allocation11 + $0x110] ss:$8 sps:$4 sm:$0xff]   ;;  %v5167_v37 = vld [vmem:[#allocation11 + $0x104] ss:$8 sps:$4 sm:$0xff]  }
 0x250   : > { %1555 = vmatpush1.bf16.msra.mxu0 %v5139_v31  ;;  %v5169_v48 = vld [vmem:[#allocation11] ss:$8 sps:$4 sm:$0xff]   ;;  %v5171_v15 = vld [vmem:[#allocation11 + $0xf4] ss:$8 sps:$4 sm:$0xff]   ;;  %v5175_v3 = vld [vmem:[#allocation11 + $0xf0] ss:$8 sps:$4 sm:$0xff]  }
 0x251   : > { %1668 = vmatpush1.bf16.msra.mxu1 %v5140_v19  ;;  %1556 = vmatprep.subr.bf16.mxu0 %v5141_v42  ;;  %v5170_v35 = vld [vmem:[#allocation11 + $0x100] ss:$8 sps:$4 sm:$0xff]   ;;  %v5173_v45 = vld [vmem:[#allocation11 + $0x1f4] ss:$8 sps:$4 sm:$0xff]   ;;  %v5176_v51 = vld [vmem:[#allocation11 + $0x1f0] ss:$8 sps:$4 sm:$0xff]  }
 0x252   : > { %1669 = vmatprep.subr.bf16.mxu1 %v5143_v2  ;;  %v5177_v12 = vld [vmem:[#allocation11 + $0xe4] ss:$8 sps:$4 sm:$0xff]   ;;  %v5181_v41 = vld [vmem:[#allocation11 + $0xe0] ss:$8 sps:$4 sm:$0xff]   ;;  %v5183_v17 = vld [vmem:[#allocation11 + $0xd4] ss:$8 sps:$4 sm:$0xff]  }
 0x253   : > { %v5179_v55 = vld [vmem:[#allocation11 + $0x1e4] ss:$8 sps:$4 sm:$0xff]   ;;  %v5182_v50 = vld [vmem:[#allocation11 + $0x1e0] ss:$8 sps:$4 sm:$0xff]   ;;  %v5185_v6 = vld [vmem:[#allocation11 + $0x1d4] ss:$8 sps:$4 sm:$0xff]  }
 0x254   : > { %1557 = vmatpush1.bf16.msra.mxu0 %v5145_v18  ;;  %v5187_v31 = vld [vmem:[#allocation11 + $0xd0] ss:$8 sps:$4 sm:$0xff]   ;;  %v5189_v42 = vld [vmem:[#allocation11 + $0xc4] ss:$8 sps:$4 sm:$0xff]   ;;  %v5193_v18 = vld [vmem:[#allocation11 + $0xc0] ss:$8 sps:$4 sm:$0xff]  }
 0x255   : > { %1670 = vmatpush1.bf16.msra.mxu1 %v5146_v57  ;;  %1558 = vmatprep.subr.bf16.mxu0 %v5147_v38  ;;  %v5188_v19 = vld [vmem:[#allocation11 + $0x1d0] ss:$8 sps:$4 sm:$0xff]   ;;  %v5191_v2 = vld [vmem:[#allocation11 + $0x1c4] ss:$8 sps:$4 sm:$0xff]   ;;  %v5194_v57 = vld [vmem:[#allocation11 + $0x1c0] ss:$8 sps:$4 sm:$0xff]  }
 0x256   : > { %1671 = vmatprep.subr.bf16.mxu1 %v5149_v58  ;;  %v5195_v38 = vld [vmem:[#allocation11 + $0xb4] ss:$8 sps:$4 sm:$0xff]   ;;  %vm2033_vm2 = vcmask 1040384   ;;  %s8398_s5 = sld [smem:[#allocation77_spill]]  ;;  %vm2038_vm3 = vcmask 0  }
 0x257   : > { %v5197_v58 = vld [vmem:[#allocation11 + $0x1b4] ss:$8 sps:$4 sm:$0xff]  }
 0x258   : > { %1559 = vmatpush1.bf16.msra.mxu0 %v5151_v20  ;;  %v5199_v20 = vld [vmem:[#allocation11 + $0xb0] ss:$8 sps:$4 sm:$0xff]  }
 0x259   : > { %1672 = vmatpush1.bf16.msra.mxu1 %v5152_v54  ;;  %1560 = vmatprep.subr.bf16.mxu0 %v5153_v27  ;;  %v5200_v54 = vld [vmem:[#allocation11 + $0x1b0] ss:$8 sps:$4 sm:$0xff]   ;;  %v5201_v27 = vld [vmem:[#allocation11 + $0xa4] ss:$8 sps:$4 sm:$0xff]  }
 0x25a   : > { %1673 = vmatprep.subr.bf16.mxu1 %v5155_v11  ;;  %v5203_v11 = vld [vmem:[#allocation11 + $0x1a4] ss:$8 sps:$4 sm:$0xff]  }
 0x25c   : > { %1561 = vmatpush1.bf16.msra.mxu0 %v5157_v49  ;;  %v5205_v49 = vld [vmem:[#allocation11 + $0xa0] ss:$8 sps:$4 sm:$0xff]  }
 0x25d   : > { %1674 = vmatpush1.bf16.msra.mxu1 %v5158_v63  ;;  %1562 = vmatprep.subr.bf16.mxu0 %v5159_v30  ;;  %v5206_v63 = vld [vmem:[#allocation11 + $0x1a0] ss:$8 sps:$4 sm:$0xff]   ;;  %v5207_v30 = vld [vmem:[#allocation11 + $0x94] ss:$8 sps:$4 sm:$0xff]  }
 0x25e   : > { %1675 = vmatprep.subr.bf16.mxu1 %v5161_v5  ;;  %v5209_v5 = vld [vmem:[#allocation11 + $0x194] ss:$8 sps:$4 sm:$0xff]  }
 0x260   : > { %1563 = vmatpush1.bf16.msra.mxu0 %v5163_v43  ;;  %v5211_v43 = vld [vmem:[#allocation11 + $0x90] ss:$8 sps:$4 sm:$0xff]  }
 0x261   : > { %1676 = vmatpush1.bf16.msra.mxu1 %v5164_v53  ;;  %1564 = vmatprep.subr.bf16.mxu0 %v5165_v29  ;;  %v5212_v53 = vld [vmem:[#allocation11 + $0x190] ss:$8 sps:$4 sm:$0xff]   ;;  %v5213_v29 = vld [vmem:[#allocation11 + $0x84] ss:$8 sps:$4 sm:$0xff]  }
 0x262   : > { %1677 = vmatprep.subr.bf16.mxu1 %v5167_v37  ;;  %v5215_v37 = vld [vmem:[#allocation11 + $0x184] ss:$8 sps:$4 sm:$0xff]  }
 0x264   : > { %1565 = vmatpush1.bf16.msra.mxu0 %v5169_v48  ;;  %v5217_v48 = vld [vmem:[#allocation11 + $0x80] ss:$8 sps:$4 sm:$0xff]  }
 0x265   : > { %1678 = vmatpush1.bf16.msra.mxu1 %v5170_v35  ;;  %1566 = vmatprep.subr.bf16.mxu0 %v5171_v15  ;;  %v5218_v35 = vld [vmem:[#allocation11 + $0x180] ss:$8 sps:$4 sm:$0xff]   ;;  %v8194_v15 = vlaneseq }
 0x266   : > { %1679 = vmatprep.subr.bf16.mxu1 %v5173_v45 }
 0x267   : > { %v7326_v45 = vshrl.u32 %v8194_v15, 7 }
 0x268   : > { %1567 = vmatpush2.bf16.msra.mxu0 %v5175_v3  ;;  %v6135_v3 = vmov 0.0  }
 0x269   : > { %1680 = vmatpush2.bf16.msra.mxu1 %v5176_v51  ;;  %1568 = vmatprep.subr.bf16.mxu0 %v5177_v12  ;;  %8396 = vst [vmem:[#allocation70_spill] sm:$0xff] %v7326_v45  ;;  %v7329_v51 = vld [vmem:[%s6502_s26] sm:$0x1]  ;;  %v1222_v12 = vsub.s32 0, %v7326_v45 }
 0x26a   : > { %1681 = vmatprep.subr.bf16.mxu1 %v5179_v55  ;;  %8397 = vst [vmem:[#allocation71_spill] sm:$0xff] %v7329_v51  ;;  %v2034_v55 = vsel %vm2033_vm2, %v7329_v51, 0.0 }
 0x26b   : > { %2035 = vadd.xlane.f32.xlu0 %v2034_v55 }
 0x26c   : > { %1569 = vmatpush2.bf16.msra.mxu0 %v5181_v41  ;;  %v1218_v41 = vld [vmem:[%s8398_s5] sm:$0x3] }
 0x26d   : > { %1682 = vmatpush2.bf16.msra.mxu1 %v5182_v50  ;;  %1570 = vmatprep.subr.bf16.mxu0 %v5183_v17  ;;  %v1226_v50 = vsub.s32 1, %v7326_v45  ;;  %v7337_v17 = vrot.slane %v1218_v41, %v1222_v12 }
 0x26e   : > { %1683 = vmatprep.subr.bf16.mxu1 %v5185_v6 }
 0x26f   : > { %v7339_v6 = vrot.slane %v1218_v41, %v1226_v50 }
 0x270   : > { %1571 = vmatpush2.bf16.msra.mxu0 %v5187_v31 }
 0x271   : > { %1684 = vmatpush2.bf16.msra.mxu1 %v5188_v19  ;;  %1572 = vmatprep.subr.bf16.mxu0 %v5189_v42 }
 0x272   : > { %1685 = vmatprep.subr.bf16.mxu1 %v5191_v2 }
 0x274   : > { %1573 = vmatpush2.bf16.msra.mxu0 %v5193_v18 }
 0x275   : > { %1686 = vmatpush2.bf16.msra.mxu1 %v5194_v57  ;;  %1574 = vmatprep.subr.bf16.mxu0 %v5195_v38 }
 0x276   : > { %1687 = vmatprep.subr.bf16.mxu1 %v5197_v58 }
 0x278   : > { %1575 = vmatpush2.bf16.msra.mxu0 %v5199_v20 }
 0x279   : > { %1688 = vmatpush2.bf16.msra.mxu1 %v5200_v54  ;;  %1576 = vmatprep.subr.bf16.mxu0 %v5201_v27 }
 0x27a   : > { %1689 = vmatprep.subr.bf16.mxu1 %v5203_v11 }
 0x27c   : > { %1577 = vmatpush2.bf16.msra.mxu0 %v5205_v49 }
 0x27d   : > { %1690 = vmatpush2.bf16.msra.mxu1 %v5206_v63  ;;  %1578 = vmatprep.subr.bf16.mxu0 %v5207_v30 }
 0x27e   : > { %1691 = vmatprep.subr.bf16.mxu1 %v5209_v5 }
 0x280   : > { %1579 = vmatpush2.bf16.msra.mxu0 %v5211_v43 }
 0x281   : > { %1692 = vmatpush2.bf16.msra.mxu1 %v5212_v53  ;;  %1580 = vmatprep.subr.bf16.mxu0 %v5213_v29 }
 0x282   : > { %1693 = vmatprep.subr.bf16.mxu1 %v5215_v37 }
 0x284   : > { %1581 = vmatpush2.bf16.msra.mxu0 %v5217_v48 }
 0x285   : > { %1694 = vmatpush2.bf16.msra.mxu1 %v5218_v35 }
 0x287   : > { %1583 = vmatmul.mubr.bf16.vlgmr.msra.gmra.mxu0 %v7169_v46 }
 0x288   : > { %1696 = vmatmul.mubr.bf16.vlgmr.msra.gmra.mxu1 %v7173_v52  ;;  %1592 = vmatprep.mubr.bf16.mxu0 %v7185_v39 }
 0x289   : > { %1705 = vmatprep.mubr.bf16.mxu1 %v7189_v40 }
 0x28f   : > { %1593 = vmatmul.mubr.bf16.gmra.mxu0 %v7183_v21 }
 0x290   : > { %1706 = vmatmul.mubr.bf16.gmra.mxu1 %v7187_v59  ;;  %1602 = vmatprep.mubr.bf16.mxu0 %v7201_v60 }
 0x291   : > { %1715 = vmatprep.mubr.bf16.mxu1 %v7205_v26 }
 0x297   : > { %1603 = vmatmul.mubr.bf16.gmra.mxu0 %v7199_v13 }
 0x298   : > { %1716 = vmatmul.mubr.bf16.gmra.mxu1 %v7203_v10  ;;  %1612 = vmatprep.mubr.bf16.mxu0 %v7217_v16 }
 0x299   : > { %1725 = vmatprep.mubr.bf16.mxu1 %v7221_v61 }
 0x29f   : > { %1613 = vmatmul.mubr.bf16.gmra.mxu0 %v7215_v28 }
 0x2a0   : > { %1726 = vmatmul.mubr.bf16.gmra.mxu1 %v7219_v1  ;;  %1622 = vmatprep.mubr.bf16.mxu0 %v7233_v14 }
 0x2a1   : > { %1735 = vmatprep.mubr.bf16.mxu1 %v7237_v0 }
 0x2a7   : > { %1623 = vmatmul.mubr.bf16.gmra.mxu0 %v7231_v36 }
 0x2a8   : > { %1736 = vmatmul.mubr.bf16.gmra.mxu1 %v7235_v23  ;;  %1632 = vmatprep.mubr.bf16.mxu0 %v7249_v56 }
 0x2a9   : > { %1745 = vmatprep.mubr.bf16.mxu1 %v7253_v47 }
 0x2af   : > { %1633 = vmatmul.mubr.bf16.gmra.mxu0 %v7247_v44 }
 0x2b0   : > { %1746 = vmatmul.mubr.bf16.gmra.mxu1 %v7251_v25  ;;  %1642 = vmatprep.mubr.bf16.mxu0 %v7265_v32 }
 0x2b1   : > { %1755 = vmatprep.mubr.bf16.mxu1 %v7269_v33 }
 0x2b7   : > { %1643 = vmatmul.mubr.bf16.gmra.mxu0 %v7263_v24 }
 0x2b8   : > { %1756 = vmatmul.mubr.bf16.gmra.mxu1 %v7267_v4  ;;  %1652 = vmatprep.mubr.bf16.mxu0 %v7281_v22 }
 0x2b9   : > { %1765 = vmatprep.mubr.bf16.mxu1 %v7285_v7 }
 0x2bf   : > { %1653 = vmatmul.mubr.bf16.gmra.mxu0 %v7279_v8 }
 0x2c0   : > { %1766 = vmatmul.mubr.bf16.gmra.mxu1 %v7283_v34  ;;  %2001 = vmatprep.mubr.f32.mxu0 %v6135_v3 }
 0x347   : > { %v1584_v31 = vpop.f32.mrf.mxu0 }
 0x348   : > { %v1697_v19 = vpop.f32.mrf.mxu1  ;;  %v1585_v42 = vadd.f32 %v1584_v31, %v7337_v17 }
 0x349   : > { %v1586_v2 = vpop.f32.mrf.mxu0 }
 0x34a   : > { %v1699_v18 = vpop.f32.mrf.mxu1  ;;  %v7342_v57 = vadd.f32 %v1697_v19, %v1585_v42  ;;  %v1587_v38 = vadd.f32 %v1586_v2, %v7339_v6 }
 0x34b   : > { %v1588_v58 = vpop.f32.mrf.mxu0 }
 0x34c   : > { %v1701_v20 = vpop.f32.mrf.mxu1  ;;  %v7345_v54 = vadd.f32 %v1699_v18, %v1587_v38  ;;  %v1589_v27 = vadd.f32 %v1588_v58, %v7337_v17 }
 0x34d   : > { %v1590_v11 = vpop.f32.mrf.mxu0 }
 0x34e   : > { %v1703_v49 = vpop.f32.mrf.mxu1  ;;  %v7348_v63 = vadd.f32 %v1701_v20, %v1589_v27  ;;  %v1591_v30 = vadd.f32 %v1590_v11, %v7339_v6 }
 0x34f   : > { %v1594_v5 = vpop.f32.mrf.mxu0 }
 0x350   : > { %v1707_v43 = vpop.f32.mrf.mxu1  ;;  %v1595_v53 = vadd.f32 %v1594_v5, %v7337_v17  ;;  %v7352_v29 = vadd.f32 %v1703_v49, %v1591_v30 }
 0x351   : > { %v1596_v37 = vpop.f32.mrf.mxu0 }
 0x352   : > { %v1709_v48 = vpop.f32.mrf.mxu1  ;;  %v7354_v35 = vadd.f32 %v1707_v43, %v1595_v53  ;;  %v1597_v3 = vadd.f32 %v1596_v37, %v7339_v6 }
 0x353   : > { %v1598_v12 = vpop.f32.mrf.mxu0 }
 0x354   : > { %v1711_v55 = vpop.f32.mrf.mxu1  ;;  %v7357_v41 = vadd.f32 %v1709_v48, %v1597_v3  ;;  %v1599_v50 = vadd.f32 %v1598_v12, %v7337_v17 }
 0x355   : > { %v1600_v31 = vpop.f32.mrf.mxu0 }
 0x356   : > { %v1713_v19 = vpop.f32.mrf.mxu1  ;;  %v7360_v42 = vadd.f32 %v1711_v55, %v1599_v50  ;;  %v1601_v2 = vadd.f32 %v1600_v31, %v7339_v6 }
 0x357   : > { %v1604_v18 = vpop.f32.mrf.mxu0 }
 0x358   : > { %v1717_v38 = vpop.f32.mrf.mxu1  ;;  %v1605_v58 = vadd.f32 %v1604_v18, %v7337_v17  ;;  %v7364_v20 = vadd.f32 %v1713_v19, %v1601_v2 }
 0x359   : > { %v1606_v27 = vpop.f32.mrf.mxu0 }
 0x35a   : > { %v1719_v11 = vpop.f32.mrf.mxu1  ;;  %v7366_v49 = vadd.f32 %v1717_v38, %v1605_v58  ;;  %v1607_v30 = vadd.f32 %v1606_v27, %v7339_v6 }
 0x35b   : > { %v7369_v5 = vpop.f32.mrf.mxu0 }
 0x35c   : > { %v7371_v43 = vpop.f32.mrf.mxu1  ;;  %v7373_v53 = vadd.f32 %v1719_v11, %v1607_v30 }
 0x35d   : > { %v7375_v37 = vpop.f32.mrf.mxu0 }
 0x35e   : > { %v7377_v48 = vpop.f32.mrf.mxu1 }
 0x35f   : > { %v7379_v3 = vpop.f32.mrf.mxu0 }
 0x360   : > { %v7381_v12 = vpop.f32.mrf.mxu1 }
 0x361   : > { %v7383_v55 = vpop.f32.mrf.mxu0 }
 0x362   : > { %v7385_v50 = vpop.f32.mrf.mxu1 }
 0x363   : > { %v7387_v31 = vpop.f32.mrf.mxu0 }
 0x364   : > { %v7389_v19 = vpop.f32.mrf.mxu1 }
 0x365   : > { %v7391_v2 = vpop.f32.mrf.mxu0 }
 0x366   : > { %v7393_v18 = vpop.f32.mrf.mxu1 }
 0x367   : > { %v7395_v38 = vpop.f32.mrf.mxu0 }
 0x368   : > { %v7397_v58 = vpop.f32.mrf.mxu1 }
 0x369   : > { %v1626_v27 = vpop.f32.mrf.mxu0 }
 0x36a   : > { %v7399_v11 = vpop.f32.mrf.mxu1 }
 0x36b   : > { %v1628_v30 = vpop.f32.mrf.mxu0 }
 0x36c   : > { %v7401_v15 = vpop.f32.mrf.mxu1 }
 0x36d   : > { %v1630_v34 = vpop.f32.mrf.mxu0 }
 0x36e   : > { %v7403_v8 = vpop.f32.mrf.mxu1 }
 0x36f   : > { %v1634_v7 = vpop.f32.mrf.mxu0 }
 0x370   : > { %v1747_v22 = vpop.f32.mrf.mxu1 }
 0x371   : > { %v1636_v4 = vpop.f32.mrf.mxu0 }
 0x372   : > { %v1749_v24 = vpop.f32.mrf.mxu1 }
 0x373   : > { %v1638_v33 = vpop.f32.mrf.mxu0 }
 0x374   : > { %v1751_v32 = vpop.f32.mrf.mxu1 }
 0x375   : > { %v1640_v25 = vpop.f32.mrf.mxu0 }
 0x376   : > { %v1753_v44 = vpop.f32.mrf.mxu1 }
 0x377   : > { %v1644_v47 = vpop.f32.mrf.mxu0 }
 0x378   : > { %v1757_v56 = vpop.f32.mrf.mxu1  ;;  %v1645_v46 = vadd.f32 %v1644_v47, %v7337_v17 }
 0x379   : > { %v1646_v23 = vpop.f32.mrf.mxu0 }
 0x37a   : > { %v1759_v36 = vpop.f32.mrf.mxu1  ;;  %v1647_v39 = vadd.f32 %v1646_v23, %v7339_v6  ;;  %v7433_v51 = vadd.f32 %v1757_v56, %v1645_v46  ;;  %v1625_v56 = vadd.f32 %v7395_v38, %v7337_v17  ;;  %v1617_v38 = vadd.f32 %v7383_v55, %v7339_v6 }
 0x37b   : > { %v1648_v0 = vpop.f32.mrf.mxu0 }
 0x37c   : > { %v1761_v14 = vpop.f32.mrf.mxu1  ;;  %v1649_v21 = vadd.f32 %v1648_v0, %v7337_v17  ;;  %v1627_v0 = vadd.f32 %v1626_v27, %v7339_v6  ;;  %v1832_v27 = vmul.f32 0.70710677, %v7433_v51 }
 0x37d   : > { %v1650_v1 = vpop.f32.mrf.mxu0 }
 0x37e   : > { %v1763_v28 = vpop.f32.mrf.mxu1  ;;  %v1651_v61 = vadd.f32 %v1650_v1, %v7339_v6  ;;  %v7422_v23 = vadd.f32 %v1761_v14, %v1649_v21 }
 0x37f   : > { %v1654_v16 = vpop.f32.mrf.mxu0 }
 0x380   : > { %v1767_v10 = vpop.f32.mrf.mxu1  ;;  %v1655_v13 = vadd.f32 %v1654_v16, %v7337_v17  ;;  %v7407_v26 = vadd.f32 %v1763_v28, %v1651_v61  ;;  %v1641_v16 = vadd.f32 %v1640_v25, %v7339_v6  ;;  %v1631_v25 = vadd.f32 %v1630_v34, %v7339_v6 }
 0x381   : > { %v1656_v60 = vpop.f32.mrf.mxu0  ;;  %v1834_v34 = vmul.f32 0.70710677, %v7422_v23 }
 0x382   : > { %v1769_v59 = vpop.f32.mrf.mxu1  ;;  %v1657_v40 = vadd.f32 %v1656_v60, %v7339_v6  ;;  %v7413_v9 = vadd.f32 %v1767_v10, %v1655_v13  ;;  %v1835_v28 = vmul.f32 0.70710677, %v7407_v26  ;;  %v1639_v60 = vadd.f32 %v1638_v33, %v7337_v17 }
 0x383   : > { %v1658_v52 = vpop.f32.mrf.mxu0  ;;  %v1637_v13 = vadd.f32 %v1636_v4, %v7339_v6  ;;  %v7436_v14 = vadd.f32 %v1753_v44, %v1641_v16  ;;  %v1619_v16 = vadd.f32 %v7387_v31, %v7337_v17  ;;  %v7475_v31 = vadd.f32 %v7397_v58, %v1625_v56 }
 0x384   : > { %v7415_v1 = vadd.f32 %v1769_v59, %v1657_v40  ;;  %v1771_v62 = vpop.f32.mrf.mxu1  ;;  %v1659_v61 = vadd.f32 %v1658_v52, %v7337_v17  ;;  %v7426_v59 = vadd.f32 %v1759_v36, %v1647_v39  ;;  %v1635_v52 = vadd.f32 %v1634_v7, %v7337_v17 }
 0x385   : > { %v1660_v45 = vpop.f32.mrf.mxu0  ;;  %v1836_v33 = vmul.f32 0.70710677, %v7413_v9  ;;  %5219 = verf.f32 %v1835_v28  ;;  %v7442_v36 = vadd.f32 %v1751_v32, %v1639_v60  ;;  %v7445_v7 = vadd.f32 %v1749_v24, %v1637_v13 }
 0x386   : > { %v1837_v47 = vmul.f32 0.70710677, %v7415_v1  ;;  %v7428_v40 = vadd.f32 %v1771_v62, %v1659_v61  ;;  %v1661_v10 = vadd.f32 %v1660_v45, %v7339_v6  ;;  %v1773_v21 = vpop.f32.mrf.mxu1  ;;  %v1629_v62 = vadd.f32 %v1628_v30, %v7337_v17 }
 0x387   : > { %v1833_v46 = vmul.f32 0.70710677, %v7426_v59  ;;  %v7451_v45 = vadd.f32 %v1747_v22, %v1635_v52  ;;  %v1621_v32 = vadd.f32 %v7391_v2, %v7339_v6  ;;  %v7457_v30 = vadd.f32 %v7403_v8, %v1631_v25 }
 0x388   : > { %v1838_v4 = vmul.f32 0.70710677, %v7428_v40  ;;  %v7439_v39 = vadd.f32 %v1773_v21, %v1661_v10  ;;  %5221 = verf.f32 %v1837_v47  ;;  %v1831_v24 = vmul.f32 0.70710677, %v7436_v14 }
 0x389   : > { %v7463_v28 = vadd.f32 %v7401_v15, %v1629_v62  ;;  %v1830_v22 = vmul.f32 0.70710677, %v7442_v36  ;;  %v7469_v2 = vadd.f32 %v7399_v11, %v1627_v0  ;;  %v1829_v8 = vmul.f32 0.70710677, %v7445_v7 }
 0x38a   : > { %5223 = verf.f32 %v1838_v4  ;;  %v1839_v44 = vmul.f32 0.70710677, %v7439_v39  ;;  %v1615_v61 = vadd.f32 %v7379_v3, %v7337_v17  ;;  %v1828_v15 = vmul.f32 0.70710677, %v7451_v45 }
 0x38b   : > { %5225 = verf.f32 %v1836_v33  ;;  %v1611_v60 = vadd.f32 %v7375_v37, %v7339_v6  ;;  %v7481_v55 = vadd.f32 %v7393_v18, %v1621_v32  ;;  %v1827_v11 = vmul.f32 0.70710677, %v7457_v30 }
 0x38c   : > { %5227 = verf.f32 %v1839_v44  ;;  %v1609_v0 = vadd.f32 %v7369_v5, %v7337_v17  ;;  %v7487_v3 = vadd.f32 %v7389_v19, %v1619_v16  ;;  %v1826_v58 = vmul.f32 0.70710677, %v7463_v28 }
 0x38d   : > { %5229 = verf.f32 %v1834_v34  ;;  %v7491_v47 = vadd.f32 %v7385_v50, %v1617_v38  ;;  %v1825_v6 = vmul.f32 0.70710677, %v7469_v2  ;;  %v7495_v37 = vadd.f32 %v7381_v12, %v1615_v61 }
 0x38e   : > { %5231 = verf.f32 %v1833_v46  ;;  %v1824_v18 = vmul.f32 0.70710677, %v7475_v31  ;;  %v7499_v17 = vmul.f32 0.70710677, %v7342_v57  ;;  %v7502_v5 = vadd.f32 %v7377_v48, %v1611_v60 }
 0x38f   : > { %5233 = verf.f32 %v1832_v27  ;;  %v1823_v19 = vmul.f32 0.70710677, %v7481_v55  ;;  %v7506_v13 = vmul.f32 0.70710677, %v7345_v54  ;;  %v7509_v10 = vadd.f32 %v7371_v43, %v1609_v0 }
 0x390   : > { %5235 = verf.f32 %v1831_v24  ;;  %v1822_v12 = vmul.f32 0.70710677, %v7487_v3  ;;  %v7513_v52 = vmul.f32 0.70710677, %v7348_v63  ;;  %v7516_v48 = vmul.f32 0.70710677, %v7352_v29 }
 0x391   : > { %5237 = verf.f32 %v1830_v22  ;;  %v1821_v33 = vmul.f32 0.70710677, %v7491_v47  ;;  %v7520_v4 = vmul.f32 0.70710677, %v7354_v35  ;;  %v1813_v43 = vmul.f32 0.70710677, %v7357_v41 }
 0x392   : > { %5239 = verf.f32 %v1829_v8  ;;  %v5220_v50 = vpop.eup %5219  ;;  %v1820_v62 = vmul.f32 0.70710677, %v7495_v37  ;;  %v1814_v46 = vmul.f32 0.70710677, %v7360_v42  ;;  %v1815_v44 = vmul.f32 0.70710677, %v7364_v20 }
 0x393   : > { %5241 = verf.f32 %v1828_v15  ;;  %v1819_v56 = vmul.f32 0.70710677, %v7502_v5  ;;  %v1817_v32 = vmul.f32 0.70710677, %v7373_v53  ;;  %v1818_v24 = vmul.f32 0.70710677, %v7509_v10 }
 0x394   : > { %5243 = verf.f32 %v1827_v11  ;;  %v1807_v38 = vmul.f32 0.5, %v7439_v39  ;;  %v1816_v60 = vmul.f32 0.70710677, %v7366_v49  ;;  %v1806_v0 = vmul.f32 0.5, %v7428_v40 }
 0x395   : > { %5245 = verf.f32 %v1826_v58  ;;  %v5222_v25 = vpop.eup %5221  ;;  %v1804_v39 = vmul.f32 0.5, %v7413_v9 }
 0x396   : > { %5247 = verf.f32 %v1825_v6  ;;  %v1901_v61 = vadd.f32 1.0, %v5222_v25  ;;  %v1805_v6 = vmul.f32 0.5, %v7415_v1  ;;  %v1802_v1 = vmul.f32 0.5, %v7422_v23 }
 0x397   : > { %v5224_v21 = vpop.eup %5223  ;;  %5249 = verf.f32 %v1824_v18  ;;  %v1799_v23 = vmul.f32 0.5, %v7436_v14 }
 0x398   : > { %v5226_v34 = vpop.eup %5225  ;;  %5251 = verf.f32 %v1823_v19  ;;  %v1902_v16 = vadd.f32 1.0, %v5224_v21  ;;  %v1899_v19 = vadd.f32 1.0, %v5220_v50 }
 0x399   : > { %v5228_v27 = vpop.eup %5227  ;;  %5253 = verf.f32 %v1822_v12  ;;  %v1900_v11 = vadd.f32 1.0, %v5226_v34 }
 0x39a   : > { %v5230_v22 = vpop.eup %5229  ;;  %5255 = verf.f32 %v1821_v33  ;;  %v1903_v8 = vadd.f32 1.0, %v5228_v27  ;;  %v1934_v21 = vmul.f32 %v1902_v16, %v1806_v0  ;;  %v1803_v27 = vmul.f32 0.5, %v7407_v26 }
 0x39b   : > { %v5232_v15 = vpop.eup %5231  ;;  %5257 = verf.f32 %v1820_v62  ;;  %v1898_v33 = vadd.f32 1.0, %v5230_v22  ;;  %v1933_v62 = vmul.f32 %v1901_v61, %v1805_v6  ;;  %v1800_v22 = vmul.f32 0.5, %v7433_v51 }
 0x39c   : > { %v5234_v58 = vpop.eup %5233  ;;  %5259 = verf.f32 %v1819_v56  ;;  %v1935_v18 = vmul.f32 %v1903_v8, %v1807_v38  ;;  %v1897_v34 = vadd.f32 1.0, %v5232_v15  ;;  %v1932_v38 = vmul.f32 %v1900_v11, %v1804_v39 }
 0x39d   : > { %v5236_v12 = vpop.eup %5235  ;;  %5261 = verf.f32 %v1818_v24  ;;  %v1896_v56 = vadd.f32 1.0, %v5234_v58  ;;  %v1801_v24 = vmul.f32 0.5, %v7426_v59  ;;  %v1931_v9 = vmul.f32 %v1899_v19, %v1803_v27 }
 0x39e   : > { %v5238_v25 = vpop.eup %5237  ;;  %5263 = verf.f32 %v1817_v32  ;;  %1937 = vmatprep.subr.mxu0 %v1935_v18  ;;  %v1895_v16 = vadd.f32 1.0, %v5236_v12  ;;  %v1930_v8 = vmul.f32 %v1898_v33, %v1802_v1  ;;  %v1798_v11 = vmul.f32 0.5, %v7442_v36 }
 0x39f   : > { %v5240_v40 = vpop.eup %5239  ;;  %5265 = verf.f32 %v1816_v60  ;;  %1938 = vmatpush1.msra.mxu0 %v1934_v21  ;;  %v1894_v26 = vadd.f32 1.0, %v5238_v25  ;;  %v1929_v15 = vmul.f32 %v1897_v34, %v1801_v24  ;;  %v1928_v0 = vmul.f32 %v1896_v56, %v1800_v22 }
 0x3a0   : > { %v5242_v50 = vpop.eup %5241  ;;  %5267 = verf.f32 %v1815_v44  ;;  %1939 = vmatprep.subr.mxu0 %v1933_v62  ;;  %v1893_v60 = vadd.f32 1.0, %v5240_v40  ;;  %v1797_v51 = vmul.f32 0.5, %v7445_v7  ;;  %v1796_v18 = vmul.f32 0.5, %v7451_v45 }
 0x3a1   : > { %v5244_v32 = vpop.eup %5243  ;;  %5269 = verf.f32 %v1814_v46  ;;  %1940 = vmatpush1.msra.mxu0 %v1932_v38  ;;  %v1892_v59 = vadd.f32 1.0, %v5242_v50  ;;  %v1795_v36 = vmul.f32 0.5, %v7457_v30  ;;  %v1794_v39 = vmul.f32 0.5, %v7463_v28 }
 0x3a2   : > { %v5246_v61 = vpop.eup %5245  ;;  %5271 = verf.f32 %v1813_v43  ;;  %1941 = vmatprep.subr.mxu0 %v1931_v9  ;;  %v1927_v43 = vmul.f32 %v1895_v16, %v1799_v23  ;;  %v1891_v58 = vadd.f32 1.0, %v5244_v32  ;;  %v1793_v45 = vmul.f32 0.5, %v7469_v2 }
 0x3a3   : > { %v5248_v44 = vpop.eup %5247  ;;  %5273 = verf.f32 %v7520_v4  ;;  %1942 = vmatpush1.msra.mxu0 %v1930_v8  ;;  %v1890_v6 = vadd.f32 1.0, %v5246_v61  ;;  %v1926_v4 = vmul.f32 %v1894_v26, %v1798_v11  ;;  %v1792_v30 = vmul.f32 0.5, %v7475_v31 }
 0x3a4   : > { %v5250_v46 = vpop.eup %5249  ;;  %5275 = verf.f32 %v7516_v48  ;;  %1943 = vmatprep.subr.mxu0 %v1929_v15  ;;  %v1925_v48 = vmul.f32 %v1893_v60, %v1797_v51  ;;  %v1889_v12 = vadd.f32 1.0, %v5248_v44  ;;  %v1923_v25 = vmul.f32 %v1891_v58, %v1795_v36 }
 0x3a5   : > { %v5252_v14 = vpop.eup %5251  ;;  %5277 = verf.f32 %v7513_v52  ;;  %1944 = vmatpush1.msra.mxu0 %v1928_v0  ;;  %v1888_v33 = vadd.f32 1.0, %v5250_v46  ;;  %v1924_v52 = vmul.f32 %v1892_v59, %v1796_v18  ;;  %v1922_v34 = vmul.f32 %v1890_v6, %v1794_v39 }
 0x3a6   : > { %v5254_v19 = vpop.eup %5253  ;;  %5279 = verf.f32 %v7506_v13  ;;  %1945 = vmatprep.subr.mxu0 %v1927_v43  ;;  %v1887_v27 = vadd.f32 1.0, %v5252_v14  ;;  %v1921_v56 = vmul.f32 %v1889_v12, %v1793_v45  ;;  %v1790_v50 = vmul.f32 0.5, %v7487_v3 }
 0x3a7   : > { %v5256_v7 = vpop.eup %5255  ;;  %5281 = verf.f32 %v7499_v17  ;;  %1946 = vmatpush1.msra.mxu0 %v1926_v4  ;;  %v1886_v62 = vadd.f32 1.0, %v5254_v19  ;;  %v1791_v17 = vmul.f32 0.5, %v7481_v55  ;;  %v1920_v2 = vmul.f32 %v1888_v33, %v1792_v30 }
 0x3a8   : > { %v5258_v21 = vpop.eup %5257  ;;  %1947 = vmatprep.subr.mxu0 %v1925_v48  ;;  %v1885_v28 = vadd.f32 1.0, %v5256_v7  ;;  %v1789_v9 = vmul.f32 0.5, %v7491_v47  ;;  %v1788_v22 = vmul.f32 0.5, %v7495_v37  ;;  %v1787_v61 = vmul.f32 0.5, %v7502_v5 }
 0x3a9   : > { %v5260_v13 = vpop.eup %5259  ;;  %1948 = vmatpush1.msra.mxu0 %v1924_v52  ;;  %v1884_v38 = vadd.f32 1.0, %v5258_v21  ;;  %v1919_v16 = vmul.f32 %v1887_v27, %v1791_v17  ;;  %v1918_v55 = vmul.f32 %v1886_v62, %v1790_v50  ;;  %v1786_v44 = vmul.f32 0.5, %v7509_v10 }
 0x3aa   : > { %v5262_v40 = vpop.eup %5261  ;;  %1949 = vmatprep.subr.mxu0 %v1923_v25  ;;  %v1883_v31 = vadd.f32 1.0, %v5260_v13  ;;  %v1917_v23 = vmul.f32 %v1885_v28, %v1789_v9  ;;  %v1785_v11 = vmul.f32 0.5, %v7373_v53  ;;  %v1784_v43 = vmul.f32 0.5, %v7366_v49 }
 0x3ab   : > { %v5264_v1 = vpop.eup %5263  ;;  %1950 = vmatpush1.msra.mxu0 %v1922_v34  ;;  %v1882_v26 = vadd.f32 1.0, %v5262_v40  ;;  %v1916_v47 = vmul.f32 %v1884_v38, %v1788_v22  ;;  %v1783_v14 = vmul.f32 0.5, %v7364_v20  ;;  %v1782_v19 = vmul.f32 0.5, %v7360_v42  ;;  %v2032_v34 = vld [vmem:[#allocation3] sm:$0x1] }
 0x3ac   : > { %v5266_v24 = vpop.eup %5265  ;;  %1951 = vmatprep.subr.mxu0 %v1921_v56  ;;  %v1881_v3 = vadd.f32 1.0, %v5264_v1  ;;  %v1915_v0 = vmul.f32 %v1883_v31, %v1787_v61  ;;  %v1781_v48 = vmul.f32 0.5, %v7357_v41  ;;  %v1780_v33 = vmul.f32 0.5, %v7354_v35 }
 0x3ad   : > { %v5268_v32 = vpop.eup %5267  ;;  %1952 = vmatpush1.msra.mxu0 %v1920_v2  ;;  %v1880_v60 = vadd.f32 1.0, %v5266_v24  ;;  %v1914_v5 = vmul.f32 %v1882_v26, %v1786_v44  ;;  %v1779_v20 = vmul.f32 0.5, %v7352_v29  ;;  %v1778_v42 = vmul.f32 0.5, %v7348_v63  ;;  %v8399_v29 = vld [vmem:[#allocation71_spill] sm:$0xff]  ;;  %v2036_v63 = vpop.xlane.xlu0 %2035  ;;  %v1936_v24 = vld [vmem:[#allocation2] sm:$0x3] }
 0x3ae   : > { %v5270_v8 = vpop.eup %5269  ;;  %1953 = vmatprep.subr.mxu0 %v1919_v16  ;;  %v1879_v37 = vadd.f32 1.0, %v5268_v32  ;;  %v1913_v6 = vmul.f32 %v1881_v3, %v1785_v11  ;;  %v1777_v41 = vmul.f32 0.5, %v7345_v54  ;;  %v1776_v13 = vmul.f32 0.5, %v7342_v57  ;;  %v8400_v57 = vld [vmem:[#allocation70_spill] sm:$0xff] }
 0x3af   : > { %v5272_v15 = vpop.eup %5271  ;;  %1954 = vmatpush1.msra.mxu0 %v1918_v55  ;;  %v1878_v51 = vadd.f32 1.0, %v5270_v8  ;;  %v1912_v53 = vmul.f32 %v1880_v60, %v1784_v43  ;;  %v2037_v40 = vadd.f32 %v2036_v63, %v2032_v34  ;;  %v6136_v54 = vmov 1966171168  }
 0x3b0   : > { %v5274_v59 = vpop.eup %5273  ;;  %1955 = vmatprep.subr.mxu0 %v1917_v23  ;;  %v1877_v10 = vadd.f32 1.0, %v5272_v15  ;;  %v1911_v12 = vmul.f32 %v1879_v37, %v1783_v14  ;;  %v2012_v17 = vunpack.c.l.s4 %v6136_v54  ;;  %v8401_v16 = vlaneseq }
 0x3b1   : > { %v5276_v46 = vpop.eup %5275  ;;  %1956 = vmatpush1.msra.mxu0 %v1916_v47  ;;  %v1876_v4 = vadd.f32 1.0, %v5274_v59  ;;  %v1910_v39 = vmul.f32 %v1878_v51, %v1782_v19  ;;  %2039 = vst.msk [vmem:[#allocation3] sm:$0x1] %vm2038_vm3, %v2037_v40 }
 0x3b2   : > { %v5278_v58 = vpop.eup %5277  ;;  %1957 = vmatprep.subr.mxu0 %v1915_v0  ;;  %v1875_v49 = vadd.f32 1.0, %v5276_v46  ;;  %v1909_v52 = vmul.f32 %v1877_v10, %v1781_v48  ;;  %v2013_v56 = vunpack.c.0.s8 %v2012_v17  ;;  %vm2029_vm4 = vcmp.lt.s32.totalorder %v8401_v16, 256 }
 0x3b3   : > { %v5280_v18 = vpop.eup %5279  ;;  %1958 = vmatpush1.msra.mxu0 %v1914_v5  ;;  %v1874_v7 = vadd.f32 1.0, %v5278_v58  ;;  %v1908_v25 = vmul.f32 %v1876_v4, %v1780_v33 }
 0x3b4   : > { %v5282_v36 = vpop.eup %5281  ;;  %1959 = vmatprep.subr.mxu0 %v1913_v6  ;;  %v1873_v21 = vadd.f32 1.0, %v5280_v18  ;;  %v1907_v27 = vmul.f32 %v1875_v49, %v1779_v20  ;;  %v2016_v1 = vsub.s32 %v2013_v56, %v8400_v57 }
 0x3b5   : > { %1960 = vmatpush1.msra.mxu0 %v1912_v53  ;;  %v1872_v45 = vadd.f32 1.0, %v5282_v36  ;;  %v1906_v62 = vmul.f32 %v1874_v7, %v1778_v42 }
 0x3b6   : > { %1961 = vmatprep.subr.mxu0 %v1911_v12  ;;  %v1905_v35 = vmul.f32 %v1873_v21, %v1777_v41 }
 0x3b7   : > { %1962 = vmatpush1.msra.mxu0 %v1910_v39  ;;  %v1904_v30 = vmul.f32 %v1872_v45, %v1776_v13 }
 0x3b8   : > { %1963 = vmatprep.subr.mxu0 %v1909_v52 }
 0x3b9   : > { %1964 = vmatpush1.msra.mxu0 %v1908_v25 }
 0x3ba   : > { %1965 = vmatprep.subr.mxu0 %v1907_v27 }
 0x3bb   : > { %1966 = vmatpush1.msra.mxu0 %v1906_v62 }
 0x3bc   : > { %1967 = vmatprep.subr.mxu0 %v1905_v35 }
 0x3bd   : > { %1968 = vmatpush1.msra.mxu0 %v1904_v30 }
 0x3be   : > { %2002 = vmatmul.mubr.f32.vlgmr.msra.gmra.mxu0 %v8399_v29 }
 0x47e   : > { %v2003_v28 = vpop.f32.mrf.mxu0 }
 0x480   : > { %v2005_v38 = vpop.f32.mrf.mxu0 }
 0x481   : > { %v2010_v50 = vcombine.low %v2003_v28, %v2005_v38 }
 0x483   : > { %v2017_v2 = vrot.slane %v2010_v50, %v2016_v1 }
 0x485   : > { %v2024_v9 = vrot.slane %v2017_v2, %v2016_v1 }
 0x487   : > { %v2026_v31 = vadd.f32 %v2024_v9, %v1936_v24 }
 0x489   : > { %2031 = vst.msk [vmem:[#allocation2] sm:$0x3] %vm2029_vm4, %v2026_v31 }
 0x48a PF: > { %s8402_s8 = sld [smem:[#allocation30_spill]] }
 0x490   : > { %p4579_p2 = scmp.ne.s32.totalorder %s8402_s8, 1 }
 0x491   : > { %s8403_s11 = sld [smem:[#allocation29_spill]] (!%p4579_p2) }
 0x492   : > { %2043 = sbr.rel (%p4579_p2) target bundleno = 2851 (0xb23), region = 116 }
 0x497   : > { %p4580_p8 = scmp.ne.s32.totalorder %s8403_s11, 0 }
 0x498   : > { %s8404_s2 = sld [smem:[#allocation80_spill]] (!%p4580_p8) }
 0x499   : > { %2046 = sbr.rel (%p4580_p8) target bundleno = 1534 (0x5fe), region = 120 }
 0x49e   : > { %v2048_v32 = vld [vmem:[#allocation3] sm:$0x1]  ;;  %v6137_v26 = vmov 0   ;;  %v5284_v22 = vld [vmem:[#allocation14 + $0x74] ss:$8 sps:$4 sm:$0xff]   ;;  %v2055_v20 = vlaneseq }
 0x49f   : > { %5283 = vset.pattern.permute.xlu0 %v6137_v26  ;;  %5332 = vrcp.f32 %v2048_v32  ;;  %v5286_v55 = vld [vmem:[#allocation14 + $0x70] ss:$8 sps:$4 sm:$0xff]   ;;  %v5287_v8 = vld [vmem:[#allocation14 + $0x64] ss:$8 sps:$4 sm:$0xff]   ;;  %2277 = vmatprep.subr.bf16.mxu0 %v5284_v22  ;;  %v5289_v61 = vld [vmem:[#allocation14 + $0x60] ss:$8 sps:$4 sm:$0xff]  }
 0x4a0   : > { %2278 = vmatpush1.bf16.msra.mxu0 %v5286_v55  ;;  %v5290_v23 = vld [vmem:[#allocation14 + $0x54] ss:$8 sps:$4 sm:$0xff]   ;;  %v5292_v3 = vld [vmem:[#allocation14 + $0x50] ss:$8 sps:$4 sm:$0xff]   ;;  %v5293_v15 = vld [vmem:[#allocation14 + $0x44] ss:$8 sps:$4 sm:$0xff]  }
 0x4a1   : > { %2279 = vmatprep.subr.bf16.mxu0 %v5287_v8  ;;  %v5295_v60 = vld [vmem:[#allocation14 + $0x40] ss:$8 sps:$4 sm:$0xff]   ;;  %v5296_v44 = vld [vmem:[#allocation14 + $0x34] ss:$8 sps:$4 sm:$0xff]   ;;  %v5298_v59 = vld [vmem:[#allocation14 + $0x30] ss:$8 sps:$4 sm:$0xff]  }
 0x4a2   : > { %v5299_v11 = vld [vmem:[#allocation14 + $0x24] ss:$8 sps:$4 sm:$0xff]   ;;  %v5301_v0 = vld [vmem:[#allocation14 + $0x20] ss:$8 sps:$4 sm:$0xff]   ;;  %v5302_v37 = vld [vmem:[#allocation14 + $0x14] ss:$8 sps:$4 sm:$0xff]  }
 0x4a3   : > { %v5304_v46 = vld [vmem:[#allocation14 + $0x10] ss:$8 sps:$4 sm:$0xff]   ;;  %v5305_v51 = vld [vmem:[#allocation14 + $0x4] ss:$8 sps:$4 sm:$0xff]   ;;  %v5307_v43 = vld [vmem:[#allocation14] ss:$8 sps:$4 sm:$0xff]  }
 0x4a4   : > { %2280 = vmatpush1.bf16.msra.mxu0 %v5289_v61  ;;  %v5308_v5 = vld [vmem:[#allocation14 + $0xf4] ss:$8 sps:$4 sm:$0xff]   ;;  %v5310_v58 = vld [vmem:[#allocation14 + $0xf0] ss:$8 sps:$4 sm:$0xff]   ;;  %v5311_v14 = vld [vmem:[#allocation14 + $0xe4] ss:$8 sps:$4 sm:$0xff]  }
 0x4a5   : > { %2281 = vmatprep.subr.bf16.mxu0 %v5290_v23  ;;  %v5313_v6 = vld [vmem:[#allocation14 + $0xe0] ss:$8 sps:$4 sm:$0xff]   ;;  %v5314_v10 = vld [vmem:[#allocation14 + $0xd4] ss:$8 sps:$4 sm:$0xff]   ;;  %v5316_v18 = vld [vmem:[#allocation14 + $0xd0] ss:$8 sps:$4 sm:$0xff]  }
 0x4a6   : > { %v5317_v4 = vld [vmem:[#allocation14 + $0xc4] ss:$8 sps:$4 sm:$0xff]   ;;  %v5319_v19 = vld [vmem:[#allocation14 + $0xc0] ss:$8 sps:$4 sm:$0xff]   ;;  %v5320_v53 = vld [vmem:[#allocation14 + $0xb4] ss:$8 sps:$4 sm:$0xff]  }
 0x4a7   : > { %v5322_v36 = vld [vmem:[#allocation14 + $0xb0] ss:$8 sps:$4 sm:$0xff]   ;;  %v5323_v48 = vld [vmem:[#allocation14 + $0xa4] ss:$8 sps:$4 sm:$0xff]   ;;  %v5325_v12 = vld [vmem:[#allocation14 + $0xa0] ss:$8 sps:$4 sm:$0xff]  }
 0x4a8   : > { %2282 = vmatpush1.bf16.msra.mxu0 %v5292_v3  ;;  %v5326_v49 = vld [vmem:[#allocation14 + $0x94] ss:$8 sps:$4 sm:$0xff]   ;;  %v5328_v7 = vld [vmem:[#allocation14 + $0x90] ss:$8 sps:$4 sm:$0xff]   ;;  %v5329_v33 = vld [vmem:[#allocation14 + $0x84] ss:$8 sps:$4 sm:$0xff]  }
 0x4a9   : > { %2283 = vmatprep.subr.bf16.mxu0 %v5293_v15  ;;  %v5331_v39 = vld [vmem:[#allocation14 + $0x80] ss:$8 sps:$4 sm:$0xff]   ;;  %v2056_v52 = vshrl.u32 %v2055_v20, 7  ;;  %v2047_v42 = vld [vmem:[#allocation2] sm:$0x3]  ;;  %vm2338_vm5 = vcmp.lt.s32.totalorder %v2055_v20, 256 }
 0x4aa   : > { %v6138_v29 = vmov 1966171168   ;;  %v2105_v63 = vld [vmem:[%s8404_s2] sm:$0x3] }
 0x4ab   : > { %v2057_v21 = vsub.s32 0, %v2056_v52  ;;  %v2067_v41 = vsub.s32 1, %v2056_v52  ;;  %v2322_v34 = vunpack.c.l.s4 %v6138_v29 }
 0x4ac   : > { %v5333_v47 = vpop.eup %5332  ;;  %2284 = vmatpush1.bf16.msra.mxu0 %v5295_v60 }
 0x4ad   : > { %2052 = vperm.xlu0 %5283, %v5333_v47   ;;  %2285 = vmatprep.subr.bf16.mxu0 %v5296_v44  ;;  %v2270_v40 = vrot.slane %v2105_v63, %v2057_v21  ;;  %v2274_v54 = vrot.slane %v2105_v63, %v2067_v41  ;;  %v2323_v17 = vunpack.c.0.s8 %v2322_v34 }
 0x4af   : > { %v2326_v38 = vsub.s32 %v2323_v17, %v2056_v52 }
 0x4b0   : > { %2286 = vmatpush1.bf16.msra.mxu0 %v5298_v59 }
 0x4b1   : > { %2287 = vmatprep.subr.bf16.mxu0 %v5299_v11 }
 0x4b4   : > { %2288 = vmatpush1.bf16.msra.mxu0 %v5301_v0 }
 0x4b5   : > { %2289 = vmatprep.subr.bf16.mxu0 %v5302_v37 }
 0x4b8   : > { %2290 = vmatpush1.bf16.msra.mxu0 %v5304_v46 }
 0x4b9   : > { %2291 = vmatprep.subr.bf16.mxu0 %v5305_v51 }
 0x4bc   : > { %2292 = vmatpush1.bf16.msra.mxu0 %v5307_v43 }
 0x4bd   : > { %2293 = vmatprep.subr.bf16.mxu0 %v5308_v5 }
 0x4c0   : > { %2294 = vmatpush2.bf16.msra.mxu0 %v5310_v58 }
 0x4c1   : > { %2295 = vmatprep.subr.bf16.mxu0 %v5311_v14 }
 0x4c4   : > { %2296 = vmatpush2.bf16.msra.mxu0 %v5313_v6 }
 0x4c5   : > { %2297 = vmatprep.subr.bf16.mxu0 %v5314_v10 }
 0x4c8   : > { %2298 = vmatpush2.bf16.msra.mxu0 %v5316_v18 }
 0x4c9   : > { %2299 = vmatprep.subr.bf16.mxu0 %v5317_v4 }
 0x4cc   : > { %2300 = vmatpush2.bf16.msra.mxu0 %v5319_v19 }
 0x4cd   : > { %2301 = vmatprep.subr.bf16.mxu0 %v5320_v53 }
 0x4d0   : > { %2302 = vmatpush2.bf16.msra.mxu0 %v5322_v36 }
 0x4d1   : > { %2303 = vmatprep.subr.bf16.mxu0 %v5323_v48 }
 0x4d4   : > { %2304 = vmatpush2.bf16.msra.mxu0 %v5325_v12 }
 0x4d5   : > { %2305 = vmatprep.subr.bf16.mxu0 %v5326_v49 }
 0x4d8   : > { %2306 = vmatpush2.bf16.msra.mxu0 %v5328_v7 }
 0x4d9   : > { %2307 = vmatprep.subr.bf16.mxu0 %v5329_v33 }
 0x4dc   : > { %2308 = vmatpush2.bf16.msra.mxu0 %v5331_v39 }
 0x528   : > { %v2053_v45 = vpop.permute.xlu0 %2052 }
 0x529   : > { %v2058_v25 = vrot.slane %v2053_v45, %v2057_v21 }
 0x52b   : > { %v2059_v27 = vmul.f32 %v2058_v25, %v2047_v42 }
 0x52d   : > { %v2068_v13 = vrot.slane %v2059_v27, %v2067_v41  ;;  %v2064_v62 = vrot.slane %v2059_v27, %v2057_v21 }
 0x52f   : > { %v2072_v35 = vpack.c.bf16 %v2068_v13, %v2068_v13  ;;  %v2071_v30 = vpack.c.bf16 %v2064_v62, %v2064_v62 }
 0x531   : > { %2309 = vmatprep.mubr.bf16.mxu0 %v2072_v35 }
 0x532   : > { %2310 = vmatmul.mubr.bf16.vlgmr.msra.gmra.mxu0 %v2071_v30 }
 0x5f2   : > { %v2311_v56 = vpop.f32.mrf.mxu0 }
 0x5f3   : > { %v2312_v57 = vadd.f32 %v2311_v56, %v2270_v40 }
 0x5f4   : > { %v2313_v28 = vpop.f32.mrf.mxu0 }
 0x5f5   : > { %v2314_v1 = vadd.f32 %v2313_v28, %v2274_v54 }
 0x5f6   : > { %v2315_v50 = vpop.f32.mrf.mxu0 }
 0x5f7   : > { %v2320_v2 = vcombine.low %v2312_v57, %v2314_v1 }
 0x5f8   : > { %v2316_v24 = vpop.f32.mrf.mxu0 }
 0x5f9   : > { %v2327_v9 = vrot.slane %v2320_v2, %v2326_v38 }
 0x5fb   : > { %v2334_v16 = vrot.slane %v2327_v9, %v2326_v38 }
 0x5fd   : > { %2340 = vst.msk [vmem:[#allocation4] sm:$0x3] %vm2338_vm5, %v2334_v16 }
 0x5fe PF: > { %v5334_v31 = vld [vmem:[#allocation10 + $0x74] ss:$8 sps:$4 sm:$0xff]   ;;  %v8405_v32 = vld [vmem:[#allocation43_spill] sm:$0xff]  ;;  %v5338_v55 = vld [vmem:[#allocation10 + $0x70] ss:$8 sps:$4 sm:$0xff]   ;;  %s8437_s26 = sld [smem:[#allocation75_spill]] }
 0x5ff   : > { %2769 = vmatprep.mubr.bf16.mxu0 %v8405_v32  ;;  %v8406_v26 = vld [vmem:[#allocation48_spill] sm:$0xff]  ;;  %2737 = vmatprep.subr.bf16.mxu0 %v5334_v31  ;;  %v5340_v61 = vld [vmem:[#allocation10 + $0x64] ss:$8 sps:$4 sm:$0xff]   ;;  %v5344_v3 = vld [vmem:[#allocation10 + $0x60] ss:$8 sps:$4 sm:$0xff]   ;;  %s8438_s28 = sld [smem:[#allocation82_spill]] }
 0x600   : > { %2882 = vmatprep.mubr.bf16.mxu1 %v8406_v26  ;;  %v5336_v22 = vld [vmem:[#allocation10 + $0x174] ss:$8 sps:$4 sm:$0xff]   ;;  %v5339_v8 = vld [vmem:[#allocation10 + $0x170] ss:$8 sps:$4 sm:$0xff]   ;;  %2738 = vmatpush1.bf16.msra.mxu0 %v5338_v55  ;;  %v5342_v23 = vld [vmem:[#allocation10 + $0x164] ss:$8 sps:$4 sm:$0xff]  }
 0x601   : > { %2850 = vmatprep.subr.bf16.mxu1 %v5336_v22  ;;  %2739 = vmatprep.subr.bf16.mxu0 %v5340_v61  ;;  %v5345_v15 = vld [vmem:[#allocation10 + $0x160] ss:$8 sps:$4 sm:$0xff]   ;;  %v5346_v60 = vld [vmem:[#allocation10 + $0x54] ss:$8 sps:$4 sm:$0xff]   ;;  %v5350_v47 = vld [vmem:[#allocation10 + $0x50] ss:$8 sps:$4 sm:$0xff]  }
 0x602   : > { %2851 = vmatpush1.bf16.msra.mxu1 %v5339_v8  ;;  %v5348_v44 = vld [vmem:[#allocation10 + $0x154] ss:$8 sps:$4 sm:$0xff]   ;;  %v5351_v59 = vld [vmem:[#allocation10 + $0x150] ss:$8 sps:$4 sm:$0xff]   ;;  %v5352_v11 = vld [vmem:[#allocation10 + $0x44] ss:$8 sps:$4 sm:$0xff]  }
 0x603   : > { %2852 = vmatprep.subr.bf16.mxu1 %v5342_v23  ;;  %v5354_v0 = vld [vmem:[#allocation10 + $0x144] ss:$8 sps:$4 sm:$0xff]   ;;  %v5356_v37 = vld [vmem:[#allocation10 + $0x40] ss:$8 sps:$4 sm:$0xff]   ;;  %v5358_v51 = vld [vmem:[#allocation10 + $0x34] ss:$8 sps:$4 sm:$0xff]  }
 0x604   : > { %2740 = vmatpush1.bf16.msra.mxu0 %v5344_v3  ;;  %v5357_v46 = vld [vmem:[#allocation10 + $0x140] ss:$8 sps:$4 sm:$0xff]   ;;  %v5360_v43 = vld [vmem:[#allocation10 + $0x134] ss:$8 sps:$4 sm:$0xff]   ;;  %v5362_v5 = vld [vmem:[#allocation10 + $0x30] ss:$8 sps:$4 sm:$0xff]  }
 0x605   : > { %2741 = vmatprep.subr.bf16.mxu0 %v5346_v60  ;;  %v5363_v58 = vld [vmem:[#allocation10 + $0x130] ss:$8 sps:$4 sm:$0xff]   ;;  %v5364_v14 = vld [vmem:[#allocation10 + $0x24] ss:$8 sps:$4 sm:$0xff]   ;;  %v5368_v10 = vld [vmem:[#allocation10 + $0x20] ss:$8 sps:$4 sm:$0xff]  }
 0x606   : > { %2853 = vmatpush1.bf16.msra.mxu1 %v5345_v15  ;;  %v5366_v6 = vld [vmem:[#allocation10 + $0x124] ss:$8 sps:$4 sm:$0xff]   ;;  %v5369_v18 = vld [vmem:[#allocation10 + $0x120] ss:$8 sps:$4 sm:$0xff]   ;;  %v5370_v4 = vld [vmem:[#allocation10 + $0x14] ss:$8 sps:$4 sm:$0xff]  }
 0x607   : > { %2854 = vmatprep.subr.bf16.mxu1 %v5348_v44  ;;  %v5372_v19 = vld [vmem:[#allocation10 + $0x114] ss:$8 sps:$4 sm:$0xff]   ;;  %v5374_v53 = vld [vmem:[#allocation10 + $0x10] ss:$8 sps:$4 sm:$0xff]   ;;  %v5376_v48 = vld [vmem:[#allocation10 + $0x4] ss:$8 sps:$4 sm:$0xff]  }
 0x608   : > { %2742 = vmatpush1.bf16.msra.mxu0 %v5350_v47  ;;  %v5375_v36 = vld [vmem:[#allocation10 + $0x110] ss:$8 sps:$4 sm:$0xff]   ;;  %v5378_v12 = vld [vmem:[#allocation10 + $0x104] ss:$8 sps:$4 sm:$0xff]   ;;  %v5380_v49 = vld [vmem:[#allocation10] ss:$8 sps:$4 sm:$0xff]  }
 0x609   : > { %2743 = vmatprep.subr.bf16.mxu0 %v5352_v11  ;;  %v5381_v7 = vld [vmem:[#allocation10 + $0x100] ss:$8 sps:$4 sm:$0xff]   ;;  %v5382_v33 = vld [vmem:[#allocation10 + $0xf4] ss:$8 sps:$4 sm:$0xff]   ;;  %v5386_v20 = vld [vmem:[#allocation10 + $0xf0] ss:$8 sps:$4 sm:$0xff]  }
 0x60a   : > { %2855 = vmatpush1.bf16.msra.mxu1 %v5351_v59  ;;  %v5384_v39 = vld [vmem:[#allocation10 + $0x1f4] ss:$8 sps:$4 sm:$0xff]   ;;  %v5387_v52 = vld [vmem:[#allocation10 + $0x1f0] ss:$8 sps:$4 sm:$0xff]   ;;  %v5388_v21 = vld [vmem:[#allocation10 + $0xe4] ss:$8 sps:$4 sm:$0xff]  }
 0x60b   : > { %2856 = vmatprep.subr.bf16.mxu1 %v5354_v0  ;;  %v5390_v45 = vld [vmem:[#allocation10 + $0x1e4] ss:$8 sps:$4 sm:$0xff]   ;;  %v5392_v42 = vld [vmem:[#allocation10 + $0xe0] ss:$8 sps:$4 sm:$0xff]   ;;  %v5394_v41 = vld [vmem:[#allocation10 + $0xd4] ss:$8 sps:$4 sm:$0xff]  }
 0x60c   : > { %2744 = vmatpush1.bf16.msra.mxu0 %v5356_v37  ;;  %v5393_v25 = vld [vmem:[#allocation10 + $0x1e0] ss:$8 sps:$4 sm:$0xff]   ;;  %v5396_v27 = vld [vmem:[#allocation10 + $0x1d4] ss:$8 sps:$4 sm:$0xff]   ;;  %v5398_v13 = vld [vmem:[#allocation10 + $0xd0] ss:$8 sps:$4 sm:$0xff]  }
 0x60d   : > { %2745 = vmatprep.subr.bf16.mxu0 %v5358_v51  ;;  %v5399_v62 = vld [vmem:[#allocation10 + $0x1d0] ss:$8 sps:$4 sm:$0xff]   ;;  %v5400_v35 = vld [vmem:[#allocation10 + $0xc4] ss:$8 sps:$4 sm:$0xff]   ;;  %v5404_v29 = vld [vmem:[#allocation10 + $0xc0] ss:$8 sps:$4 sm:$0xff]  }
 0x60e   : > { %2857 = vmatpush1.bf16.msra.mxu1 %v5357_v46  ;;  %v5402_v30 = vld [vmem:[#allocation10 + $0x1c4] ss:$8 sps:$4 sm:$0xff]   ;;  %v5405_v34 = vld [vmem:[#allocation10 + $0x1c0] ss:$8 sps:$4 sm:$0xff]   ;;  %v5406_v63 = vld [vmem:[#allocation10 + $0xb4] ss:$8 sps:$4 sm:$0xff]  }
 0x60f   : > { %2858 = vmatprep.subr.bf16.mxu1 %v5360_v43  ;;  %v5408_v40 = vld [vmem:[#allocation10 + $0x1b4] ss:$8 sps:$4 sm:$0xff]   ;;  %v5410_v54 = vld [vmem:[#allocation10 + $0xb0] ss:$8 sps:$4 sm:$0xff]   ;;  %v5412_v56 = vld [vmem:[#allocation10 + $0xa4] ss:$8 sps:$4 sm:$0xff]  }
 0x610   : > { %2746 = vmatpush1.bf16.msra.mxu0 %v5362_v5  ;;  %v5411_v17 = vld [vmem:[#allocation10 + $0x1b0] ss:$8 sps:$4 sm:$0xff]   ;;  %v5414_v28 = vld [vmem:[#allocation10 + $0x1a4] ss:$8 sps:$4 sm:$0xff]   ;;  %v5416_v57 = vld [vmem:[#allocation10 + $0xa0] ss:$8 sps:$4 sm:$0xff]  }
 0x611   : > { %2747 = vmatprep.subr.bf16.mxu0 %v5364_v14  ;;  %v5417_v1 = vld [vmem:[#allocation10 + $0x1a0] ss:$8 sps:$4 sm:$0xff]   ;;  %v5418_v38 = vld [vmem:[#allocation10 + $0x94] ss:$8 sps:$4 sm:$0xff]   ;;  %v5422_v2 = vld [vmem:[#allocation10 + $0x90] ss:$8 sps:$4 sm:$0xff]  }
 0x612   : > { %2859 = vmatpush1.bf16.msra.mxu1 %v5363_v58  ;;  %v5420_v50 = vld [vmem:[#allocation10 + $0x194] ss:$8 sps:$4 sm:$0xff]   ;;  %v5423_v24 = vld [vmem:[#allocation10 + $0x190] ss:$8 sps:$4 sm:$0xff]   ;;  %v5424_v9 = vld [vmem:[#allocation10 + $0x84] ss:$8 sps:$4 sm:$0xff]  }
 0x613   : > { %2860 = vmatprep.subr.bf16.mxu1 %v5366_v6  ;;  %v5426_v16 = vld [vmem:[#allocation10 + $0x184] ss:$8 sps:$4 sm:$0xff]   ;;  %v5428_v31 = vld [vmem:[#allocation10 + $0x80] ss:$8 sps:$4 sm:$0xff]   ;;  %v5432_v26 = vld [vmem:[#allocation13 + $0x74] ss:$8 sps:$4 sm:$0xff]  }
 0x614   : > { %2748 = vmatpush1.bf16.msra.mxu0 %v5368_v10  ;;  %v5429_v32 = vld [vmem:[#allocation10 + $0x180] ss:$8 sps:$4 sm:$0xff]   ;;  %v5430_v22 = vld [vmem:[#allocation13 + $0x70] ss:$8 sps:$4 sm:$0xff]   ;;  %v5435_v55 = vld [vmem:[#allocation13 + $0x64] ss:$8 sps:$4 sm:$0xff]  }
 0x615   : > { %2749 = vmatprep.subr.bf16.mxu0 %v5370_v4  ;;  %v8407_v8 = vld [vmem:[#allocation46_spill] sm:$0xff]  ;;  %v8408_v61 = vld [vmem:[#allocation45_spill] sm:$0xff]  ;;  %v8410_v15 = vld [vmem:[#allocation56_spill] sm:$0xff]  ;;  %s8439_s14 = sld [smem:[#allocation84_spill]] }
 0x616   : > { %2861 = vmatpush1.bf16.msra.mxu1 %v5369_v18  ;;  %v5433_v23 = vld [vmem:[#allocation13 + $0x60] ss:$8 sps:$4 sm:$0xff]   ;;  %v5438_v60 = vld [vmem:[#allocation13 + $0x54] ss:$8 sps:$4 sm:$0xff]   ;;  %v5436_v44 = vld [vmem:[#allocation13 + $0x50] ss:$8 sps:$4 sm:$0xff]  }
 0x617   : > { %2862 = vmatprep.subr.bf16.mxu1 %v5372_v19  ;;  %v8409_v3 = vld [vmem:[#allocation50_spill] sm:$0xff]  ;;  %v8411_v59 = vld [vmem:[#allocation47_spill] sm:$0xff]  ;;  %v8414_v37 = vld [vmem:[#allocation52_spill] sm:$0xff] }
 0x618   : > { %2750 = vmatpush1.bf16.msra.mxu0 %v5374_v53  ;;  %v5441_v47 = vld [vmem:[#allocation13 + $0x44] ss:$8 sps:$4 sm:$0xff]   ;;  %v5439_v46 = vld [vmem:[#allocation13 + $0x40] ss:$8 sps:$4 sm:$0xff]   ;;  %v5444_v51 = vld [vmem:[#allocation13 + $0x34] ss:$8 sps:$4 sm:$0xff]  }
 0x619   : > { %2751 = vmatprep.subr.bf16.mxu0 %v5376_v48  ;;  %v8412_v11 = vld [vmem:[#allocation51_spill] sm:$0xff]  ;;  %v8413_v0 = vld [vmem:[#allocation58_spill] sm:$0xff]  ;;  %v5442_v43 = vld [vmem:[#allocation13 + $0x30] ss:$8 sps:$4 sm:$0xff]  }
 0x61a   : > { %2863 = vmatpush1.bf16.msra.mxu1 %v5375_v36  ;;  %v5447_v5 = vld [vmem:[#allocation13 + $0x24] ss:$8 sps:$4 sm:$0xff]   ;;  %v8415_v58 = vld [vmem:[#allocation57_spill] sm:$0xff]  ;;  %v8418_v10 = vld [vmem:[#allocation60_spill] sm:$0xff] }
 0x61b   : > { %2864 = vmatprep.subr.bf16.mxu1 %v5378_v12  ;;  %v8416_v14 = vld [vmem:[#allocation59_spill] sm:$0xff]  ;;  %v8417_v6 = vld [vmem:[#allocation54_spill] sm:$0xff]  ;;  %v5450_v4 = vld [vmem:[#allocation13 + $0x14] ss:$8 sps:$4 sm:$0xff]  }
 0x61c   : > { %2752 = vmatpush1.bf16.msra.mxu0 %v5380_v49  ;;  %v5445_v18 = vld [vmem:[#allocation13 + $0x20] ss:$8 sps:$4 sm:$0xff]   ;;  %v5448_v19 = vld [vmem:[#allocation13 + $0x10] ss:$8 sps:$4 sm:$0xff]   ;;  %v5453_v53 = vld [vmem:[#allocation13 + $0x4] ss:$8 sps:$4 sm:$0xff]  }
 0x61d   : > { %2753 = vmatprep.subr.bf16.mxu0 %v5382_v33  ;;  %v8419_v36 = vld [vmem:[#allocation53_spill] sm:$0xff]  ;;  %v8420_v48 = vld [vmem:[#allocation55_spill] sm:$0xff]  ;;  %v8421_v12 = vld [vmem:[#allocation38_spill] sm:$0xff] }
 0x61e   : > { %2865 = vmatpush1.bf16.msra.mxu1 %v5381_v7  ;;  %v8422_v49 = vld [vmem:[#allocation40_spill] sm:$0xff]  ;;  %v5451_v7 = vld [vmem:[#allocation13] ss:$8 sps:$4 sm:$0xff]   ;;  %v8423_v33 = vld [vmem:[#allocation65_spill] sm:$0xff] }
 0x61f   : > { %2866 = vmatprep.subr.bf16.mxu1 %v5384_v39  ;;  %v8424_v39 = vld [vmem:[#allocation62_spill] sm:$0xff] }
 0x620   : > { %2754 = vmatpush2.bf16.msra.mxu0 %v5386_v20  ;;  %v8425_v20 = vld [vmem:[#allocation61_spill] sm:$0xff] }
 0x621   : > { %2755 = vmatprep.subr.bf16.mxu0 %v5388_v21  ;;  %v8427_v21 = vld [vmem:[#allocation42_spill] sm:$0xff] }
 0x622   : > { %2867 = vmatpush2.bf16.msra.mxu1 %v5387_v52  ;;  %v8426_v52 = vld [vmem:[#allocation64_spill] sm:$0xff] }
 0x623   : > { %2868 = vmatprep.subr.bf16.mxu1 %v5390_v45  ;;  %v8428_v45 = vld [vmem:[#allocation63_spill] sm:$0xff] }
 0x624   : > { %2756 = vmatpush2.bf16.msra.mxu0 %v5392_v42  ;;  %v8429_v42 = vld [vmem:[#allocation39_spill] sm:$0xff] }
 0x625   : > { %2757 = vmatprep.subr.bf16.mxu0 %v5394_v41  ;;  %v8431_v41 = vld [vmem:[#allocation49_spill] sm:$0xff] }
 0x626   : > { %2869 = vmatpush2.bf16.msra.mxu1 %v5393_v25  ;;  %v8430_v25 = vld [vmem:[#allocation69_spill] sm:$0xff] }
 0x627   : > { %2870 = vmatprep.subr.bf16.mxu1 %v5396_v27  ;;  %v8432_v27 = vld [vmem:[#allocation68_spill] sm:$0xff] }
 0x628   : > { %2758 = vmatpush2.bf16.msra.mxu0 %v5398_v13  ;;  %v8433_v13 = vld [vmem:[#allocation67_spill] sm:$0xff] }
 0x629   : > { %2759 = vmatprep.subr.bf16.mxu0 %v5400_v35  ;;  %v8435_v35 = vld [vmem:[#allocation66_spill] sm:$0xff] }
 0x62a   : > { %2871 = vmatpush2.bf16.msra.mxu1 %v5399_v62  ;;  %v8434_v62 = vld [vmem:[#allocation44_spill] sm:$0xff] }
 0x62b   : > { %2872 = vmatprep.subr.bf16.mxu1 %v5402_v30  ;;  %v8436_v30 = vld [vmem:[#allocation41_spill] sm:$0xff] }
 0x62c   : > { %2760 = vmatpush2.bf16.msra.mxu0 %v5404_v29  ;;  %v5456_v29 = vld [vmem:[#allocation13 + $0xf4] ss:$8 sps:$4 sm:$0xff]  }
 0x62d   : > { %2761 = vmatprep.subr.bf16.mxu0 %v5406_v63  ;;  %v5459_v63 = vld [vmem:[#allocation13 + $0xe4] ss:$8 sps:$4 sm:$0xff]  }
 0x62e   : > { %2873 = vmatpush2.bf16.msra.mxu1 %v5405_v34  ;;  %v5454_v34 = vld [vmem:[#allocation13 + $0xf0] ss:$8 sps:$4 sm:$0xff]  }
 0x62f   : > { %2874 = vmatprep.subr.bf16.mxu1 %v5408_v40  ;;  %v5457_v40 = vld [vmem:[#allocation13 + $0xe0] ss:$8 sps:$4 sm:$0xff]  }
 0x630   : > { %2762 = vmatpush2.bf16.msra.mxu0 %v5410_v54  ;;  %v5462_v54 = vld [vmem:[#allocation13 + $0xd4] ss:$8 sps:$4 sm:$0xff]  }
 0x631   : > { %2763 = vmatprep.subr.bf16.mxu0 %v5412_v56  ;;  %v5465_v56 = vld [vmem:[#allocation13 + $0xc4] ss:$8 sps:$4 sm:$0xff]  }
 0x632   : > { %2875 = vmatpush2.bf16.msra.mxu1 %v5411_v17  ;;  %v5460_v17 = vld [vmem:[#allocation13 + $0xd0] ss:$8 sps:$4 sm:$0xff]  }
 0x633   : > { %2876 = vmatprep.subr.bf16.mxu1 %v5414_v28  ;;  %v5463_v28 = vld [vmem:[#allocation13 + $0xc0] ss:$8 sps:$4 sm:$0xff]  }
 0x634   : > { %2764 = vmatpush2.bf16.msra.mxu0 %v5416_v57  ;;  %v5468_v57 = vld [vmem:[#allocation13 + $0xb4] ss:$8 sps:$4 sm:$0xff]  }
 0x635   : > { %2765 = vmatprep.subr.bf16.mxu0 %v5418_v38  ;;  %v5471_v38 = vld [vmem:[#allocation13 + $0xa4] ss:$8 sps:$4 sm:$0xff]  }
 0x636   : > { %2877 = vmatpush2.bf16.msra.mxu1 %v5417_v1  ;;  %v5466_v1 = vld [vmem:[#allocation13 + $0xb0] ss:$8 sps:$4 sm:$0xff]  }
 0x637   : > { %2878 = vmatprep.subr.bf16.mxu1 %v5420_v50  ;;  %v5469_v50 = vld [vmem:[#allocation13 + $0xa0] ss:$8 sps:$4 sm:$0xff]  }
 0x638   : > { %2766 = vmatpush2.bf16.msra.mxu0 %v5422_v2  ;;  %v5474_v2 = vld [vmem:[#allocation13 + $0x94] ss:$8 sps:$4 sm:$0xff]  }
 0x639   : > { %2767 = vmatprep.subr.bf16.mxu0 %v5424_v9  ;;  %v5477_v9 = vld [vmem:[#allocation13 + $0x84] ss:$8 sps:$4 sm:$0xff]  }
 0x63a   : > { %2879 = vmatpush2.bf16.msra.mxu1 %v5423_v24  ;;  %v5472_v24 = vld [vmem:[#allocation13 + $0x90] ss:$8 sps:$4 sm:$0xff]  }
 0x63b   : > { %2880 = vmatprep.subr.bf16.mxu1 %v5426_v16  ;;  %v5475_v16 = vld [vmem:[#allocation13 + $0x80] ss:$8 sps:$4 sm:$0xff]  }
 0x63c   : > { %2768 = vmatpush2.bf16.msra.mxu0 %v5428_v31  ;;  %v5478_v31 = vld [vmem:[#allocation16 + $0x78] sm:$0xff]  }
 0x63d   : > { %3343 = vmatprep.subr.bf16.mxu0 %v5432_v26  ;;  %v5480_v26 = vld [vmem:[#allocation16 + $0x70] sm:$0xff]  }
 0x63e   : > { %2881 = vmatpush2.bf16.msra.mxu1 %v5429_v32  ;;  %v5479_v32 = vld [vmem:[#allocation16 + $0x38] sm:$0xff]  }
 0x63f   : > { %2770 = vmatmul.mubr.bf16.vlgmr.msra.gmra.mxu0 %v8407_v8  ;;  %4742 = vmatprep.subr.bf16.mxu1 %v5478_v31  ;;  %v5483_v8 = vld [vmem:[#allocation16 + $0x28] sm:$0xff]  }
 0x640   : > { %2779 = vmatprep.mubr.bf16.mxu0 %v8409_v3  ;;  %3344 = vmatpush1.bf16.msra.mxu0 %v5430_v22  ;;  %v5481_v22 = vld [vmem:[#allocation16 + $0x30] sm:$0xff]   ;;  %v5486_v3 = vld [vmem:[#allocation16 + $0x58] sm:$0xff]  }
 0x641   : > { %2883 = vmatmul.mubr.bf16.vlgmr.msra.gmra.mxu1 %v8408_v61  ;;  %3345 = vmatprep.subr.bf16.mxu0 %v5435_v55  ;;  %v5482_v55 = vld [vmem:[#allocation16 + $0x68] sm:$0xff]   ;;  %v5484_v61 = vld [vmem:[#allocation16 + $0x60] sm:$0xff]  }
 0x642   : > { %2892 = vmatprep.mubr.bf16.mxu1 %v8410_v15  ;;  %4743 = vmatpush3.bf16.msra.mxu1 %v5479_v32  ;;  %v2407_v15 = vlaneseq }
 0x643   : > { %4744 = vmatprep.subr.bf16.mxu1 %v5480_v26 }
 0x644   : > { %3346 = vmatpush1.bf16.msra.mxu0 %v5433_v23  ;;  %v5485_v23 = vld [vmem:[#allocation16 + $0x20] sm:$0xff]  }
 0x645   : > { %3347 = vmatprep.subr.bf16.mxu0 %v5438_v60  ;;  %v7607_v60 = vshrl.u32 %v2407_v15, 7 }
 0x646   : > { %4745 = vmatpush3.bf16.msra.mxu1 %v5481_v22 }
 0x647   : > { %2780 = vmatmul.mubr.bf16.gmra.mxu0 %v8411_v59  ;;  %4746 = vmatprep.subr.bf16.mxu1 %v5482_v55  ;;  %v2413_v59 = vsub.s32 1, %v7607_v60 }
 0x648   : > { %2789 = vmatprep.mubr.bf16.mxu0 %v8413_v0  ;;  %3348 = vmatpush1.bf16.msra.mxu0 %v5436_v44  ;;  %v2409_v44 = vsub.s32 0, %v7607_v60 }
 0x649   : > { %2893 = vmatmul.mubr.bf16.gmra.mxu1 %v8412_v11  ;;  %3349 = vmatprep.subr.bf16.mxu0 %v5441_v47  ;;  %v2405_v47 = vld [vmem:[%s8437_s26] sm:$0x3] }
 0x64a   : > { %2902 = vmatprep.mubr.bf16.mxu1 %v8414_v37  ;;  %4747 = vmatpush3.bf16.msra.mxu1 %v5483_v8  ;;  %v7616_v11 = vrot.slane %v2405_v47, %v2409_v44  ;;  %v7620_v0 = vrot.slane %v2405_v47, %v2413_v59 }
 0x64b   : > { %4748 = vmatprep.subr.bf16.mxu1 %v5484_v61 }
 0x64c   : > { %3350 = vmatpush1.bf16.msra.mxu0 %v5439_v46 }
 0x64d   : > { %3351 = vmatprep.subr.bf16.mxu0 %v5444_v51 }
 0x64e   : > { %4749 = vmatpush3.bf16.msra.mxu1 %v5485_v23 }
 0x64f   : > { %2790 = vmatmul.mubr.bf16.gmra.mxu0 %v8415_v58  ;;  %4750 = vmatprep.subr.bf16.mxu1 %v5486_v3 }
 0x650   : > { %2799 = vmatprep.mubr.bf16.mxu0 %v8417_v6  ;;  %3352 = vmatpush1.bf16.msra.mxu0 %v5442_v43 }
 0x651   : > { %2903 = vmatmul.mubr.bf16.gmra.mxu1 %v8416_v14  ;;  %3353 = vmatprep.subr.bf16.mxu0 %v5447_v5 }
 0x652   : > { %2912 = vmatprep.mubr.bf16.mxu1 %v8418_v10 }
 0x654   : > { %3354 = vmatpush1.bf16.msra.mxu0 %v5445_v18 }
 0x655   : > { %3355 = vmatprep.subr.bf16.mxu0 %v5450_v4 }
 0x657   : > { %2800 = vmatmul.mubr.bf16.gmra.mxu0 %v8419_v36 }
 0x658   : > { %2809 = vmatprep.mubr.bf16.mxu0 %v8421_v12  ;;  %3356 = vmatpush1.bf16.msra.mxu0 %v5448_v19 }
 0x659   : > { %2913 = vmatmul.mubr.bf16.gmra.mxu1 %v8420_v48  ;;  %3357 = vmatprep.subr.bf16.mxu0 %v5453_v53 }
 0x65a   : > { %2922 = vmatprep.mubr.bf16.mxu1 %v8422_v49 }
 0x65c   : > { %3358 = vmatpush1.bf16.msra.mxu0 %v5451_v7 }
 0x65d   : > { %3359 = vmatprep.subr.bf16.mxu0 %v5456_v29 }
 0x65f   : > { %2810 = vmatmul.mubr.bf16.gmra.mxu0 %v8423_v33 }
 0x660   : > { %2819 = vmatprep.mubr.bf16.mxu0 %v8425_v20  ;;  %3360 = vmatpush2.bf16.msra.mxu0 %v5454_v34 }
 0x661   : > { %2923 = vmatmul.mubr.bf16.gmra.mxu1 %v8424_v39  ;;  %3361 = vmatprep.subr.bf16.mxu0 %v5459_v63 }
 0x662   : > { %2932 = vmatprep.mubr.bf16.mxu1 %v8426_v52 }
 0x664   : > { %3362 = vmatpush2.bf16.msra.mxu0 %v5457_v40 }
 0x665   : > { %3363 = vmatprep.subr.bf16.mxu0 %v5462_v54 }
 0x667   : > { %2820 = vmatmul.mubr.bf16.gmra.mxu0 %v8427_v21 }
 0x668   : > { %2829 = vmatprep.mubr.bf16.mxu0 %v8429_v42  ;;  %3364 = vmatpush2.bf16.msra.mxu0 %v5460_v17 }
 0x669   : > { %2933 = vmatmul.mubr.bf16.gmra.mxu1 %v8428_v45  ;;  %3365 = vmatprep.subr.bf16.mxu0 %v5465_v56 }
 0x66a   : > { %2942 = vmatprep.mubr.bf16.mxu1 %v8430_v25 }
 0x66c   : > { %3366 = vmatpush2.bf16.msra.mxu0 %v5463_v28 }
 0x66d   : > { %3367 = vmatprep.subr.bf16.mxu0 %v5468_v57 }
 0x66f   : > { %2830 = vmatmul.mubr.bf16.gmra.mxu0 %v8431_v41 }
 0x670   : > { %2839 = vmatprep.mubr.bf16.mxu0 %v8433_v13  ;;  %3368 = vmatpush2.bf16.msra.mxu0 %v5466_v1 }
 0x671   : > { %2943 = vmatmul.mubr.bf16.gmra.mxu1 %v8432_v27  ;;  %3369 = vmatprep.subr.bf16.mxu0 %v5471_v38 }
 0x672   : > { %2952 = vmatprep.mubr.bf16.mxu1 %v8434_v62 }
 0x674   : > { %3370 = vmatpush2.bf16.msra.mxu0 %v5469_v50 }
 0x675   : > { %3371 = vmatprep.subr.bf16.mxu0 %v5474_v2 }
 0x677   : > { %2840 = vmatmul.mubr.bf16.gmra.mxu0 %v8435_v35 }
 0x678   : > { %3372 = vmatpush2.bf16.msra.mxu0 %v5472_v24 }
 0x679   : > { %2953 = vmatmul.mubr.bf16.gmra.mxu1 %v8436_v30  ;;  %3373 = vmatprep.subr.bf16.mxu0 %v5477_v9 }
 0x67c   : > { %3374 = vmatpush2.bf16.msra.mxu0 %v5475_v16 }
 0x6ff   : > { %v2771_v37 = vpop.f32.mrf.mxu0 }
 0x700   : > { %v2772_v51 = vadd.f32 %v2771_v37, %v7616_v11 }
 0x701   : > { %v2884_v46 = vpop.f32.mrf.mxu1  ;;  %v2773_v43 = vpop.f32.mrf.mxu0 }
 0x702   : > { %v7623_v58 = vadd.f32 %v2884_v46, %v2772_v51  ;;  %v2774_v14 = vadd.f32 %v2773_v43, %v7620_v0 }
 0x703   : > { %v2886_v5 = vpop.f32.mrf.mxu1  ;;  %v2775_v6 = vpop.f32.mrf.mxu0 }
 0x704   : > { %v2887_v18 = vadd.f32 %v2886_v5, %v2774_v14  ;;  %v2776_v4 = vadd.f32 %v2775_v6, %v7616_v11  ;;  %v2995_v19 = vmul.f32 0.70710677, %v7623_v58 }
 0x705   : > { %v2888_v10 = vpop.f32.mrf.mxu1  ;;  %v2777_v53 = vpop.f32.mrf.mxu0 }
 0x706   : > { %v2996_v48 = vmul.f32 0.70710677, %v2887_v18  ;;  %v2889_v12 = vadd.f32 %v2888_v10, %v2776_v4  ;;  %v2778_v49 = vadd.f32 %v2777_v53, %v7620_v0  ;;  %v2964_v43 = vmul.f32 0.5, %v2887_v18 }
 0x707   : > { %v2890_v36 = vpop.f32.mrf.mxu1  ;;  %v2781_v7 = vpop.f32.mrf.mxu0 }
 0x708   : > { %5502 = verf.f32 %v2996_v48  ;;  %v2997_v39 = vmul.f32 0.70710677, %v2889_v12  ;;  %v2782_v20 = vadd.f32 %v2781_v7, %v7616_v11  ;;  %v2891_v52 = vadd.f32 %v2890_v36, %v2778_v49 }
 0x709   : > { %v2894_v33 = vpop.f32.mrf.mxu1  ;;  %5504 = verf.f32 %v2995_v19  ;;  %v2783_v21 = vpop.f32.mrf.mxu0  ;;  %v2965_v10 = vmul.f32 0.5, %v2889_v12 }
 0x70a   : > { %5506 = verf.f32 %v2997_v39  ;;  %v2784_v42 = vadd.f32 %v2783_v21, %v7620_v0  ;;  %v2998_v25 = vmul.f32 0.70710677, %v2891_v52  ;;  %v7631_v41 = vadd.f32 %v2894_v33, %v2782_v20 }
 0x70b   : > { %v2896_v45 = vpop.f32.mrf.mxu1  ;;  %v2785_v27 = vpop.f32.mrf.mxu0  ;;  %v2966_v18 = vmul.f32 0.5, %v2891_v52 }
 0x70c   : > { %v7633_v62 = vadd.f32 %v2896_v45, %v2784_v42  ;;  %v2786_v35 = vadd.f32 %v2785_v27, %v7616_v11  ;;  %5508 = verf.f32 %v2998_v25  ;;  %v2999_v40 = vmul.f32 0.70710677, %v7631_v41 }
 0x70d   : > { %v2898_v13 = vpop.f32.mrf.mxu1  ;;  %v2787_v30 = vpop.f32.mrf.mxu0  ;;  %v2963_v45 = vmul.f32 0.5, %v7623_v58 }
 0x70e   : > { %v3000_v34 = vmul.f32 0.70710677, %v7633_v62  ;;  %v7637_v63 = vadd.f32 %v2898_v13, %v2786_v35  ;;  %v2788_v54 = vadd.f32 %v2787_v30, %v7620_v0 }
 0x70f   : > { %v2900_v29 = vpop.f32.mrf.mxu1  ;;  %v2791_v17 = vpop.f32.mrf.mxu0 }
 0x710   : > { %v3001_v28 = vmul.f32 0.70710677, %v7637_v63  ;;  %v2792_v57 = vadd.f32 %v2791_v17, %v7616_v11  ;;  %5510 = verf.f32 %v3000_v34  ;;  %v7643_v1 = vadd.f32 %v2900_v29, %v2788_v54 }
 0x711   : > { %v2904_v56 = vpop.f32.mrf.mxu1  ;;  %v2793_v38 = vpop.f32.mrf.mxu0 }
 0x712   : > { %5512 = verf.f32 %v3001_v28  ;;  %v7645_v2 = vadd.f32 %v2904_v56, %v2792_v57  ;;  %v2794_v24 = vadd.f32 %v2793_v38, %v7620_v0  ;;  %v3002_v9 = vmul.f32 0.70710677, %v7643_v1 }
 0x713   : > { %v2906_v50 = vpop.f32.mrf.mxu1  ;;  %5514 = verf.f32 %v2999_v40  ;;  %v2795_v16 = vpop.f32.mrf.mxu0 }
 0x714   : > { %v7649_v32 = vadd.f32 %v2906_v50, %v2794_v24  ;;  %5516 = verf.f32 %v3002_v9  ;;  %v3003_v22 = vmul.f32 0.70710677, %v7645_v2  ;;  %v2796_v55 = vadd.f32 %v2795_v16, %v7616_v11 }
 0x715   : > { %v2908_v31 = vpop.f32.mrf.mxu1  ;;  %v5503_v26 = vpop.eup %5502 }
 0x716   : > { %v2797_v8 = vpop.f32.mrf.mxu0  ;;  %v5505_v23 = vpop.eup %5504  ;;  %v3004_v15 = vmul.f32 0.70710677, %v7649_v32  ;;  %v7654_v47 = vadd.f32 %v2908_v31, %v2796_v55  ;;  %v3060_v5 = vadd.f32 1.0, %v5503_v26  ;;  %5518 = verf.f32 %v3003_v22 }
 0x717   : > { %v2910_v61 = vpop.f32.mrf.mxu1  ;;  %v5507_v3 = vpop.eup %5506  ;;  %v2798_v37 = vadd.f32 %v2797_v8, %v7620_v0  ;;  %v3059_v49 = vadd.f32 1.0, %v5505_v23  ;;  %v2969_v26 = vmul.f32 0.5, %v7637_v63  ;;  %v2970_v22 = vmul.f32 0.5, %v7643_v1 }
 0x718   : > { %v2801_v46 = vpop.f32.mrf.mxu0  ;;  %v3061_v14 = vadd.f32 1.0, %v5507_v3  ;;  %v3005_v4 = vmul.f32 0.70710677, %v7654_v47  ;;  %5520 = verf.f32 %v3004_v15  ;;  %v3092_v42 = vmul.f32 %v3060_v5, %v2964_v43 }
 0x719   : > { %v2914_v51 = vpop.f32.mrf.mxu1  ;;  %v2802_v6 = vadd.f32 %v2801_v46, %v7616_v11  ;;  %v7659_v19 = vadd.f32 %v2910_v61, %v2798_v37  ;;  %v5509_v48 = vpop.eup %5508  ;;  %v3091_v52 = vmul.f32 %v3059_v49, %v2963_v45  ;;  %v2967_v5 = vmul.f32 0.5, %v7631_v41 }
 0x71a   : > { %v2803_v53 = vpop.f32.mrf.mxu0  ;;  %v3062_v39 = vadd.f32 1.0, %v5509_v48  ;;  %5522 = verf.f32 %v3005_v4  ;;  %v3093_v25 = vmul.f32 %v3061_v14, %v2965_v10  ;;  %v2968_v14 = vmul.f32 0.5, %v7633_v62 }
 0x71b   : > { %v2916_v36 = vpop.f32.mrf.mxu1  ;;  %v7661_v7 = vadd.f32 %v2914_v51, %v2802_v6  ;;  %v2804_v33 = vadd.f32 %v2803_v53, %v7620_v0  ;;  %v3006_v20 = vmul.f32 0.70710677, %v7659_v19 }
 0x71c   : > { %v2805_v12 = vpop.f32.mrf.mxu0  ;;  %v3094_v27 = vmul.f32 %v3062_v39, %v2966_v18  ;;  %v3123_v24 = vpack.c.bf16 %v3093_v25, %v3091_v52  ;;  %v2973_v25 = vmul.f32 0.5, %v7654_v47 }
 0x71d   : > { %v2918_v21 = vpop.f32.mrf.mxu1  ;;  %5524 = verf.f32 %v3006_v20  ;;  %v7666_v13 = vadd.f32 %v2916_v36, %v2804_v33  ;;  %v2806_v35 = vadd.f32 %v2805_v12, %v7616_v11  ;;  %v5511_v34 = vpop.eup %5510  ;;  %v3007_v40 = vmul.f32 0.70710677, %v7661_v7 }
 0x71e   : > { %v2807_v30 = vpop.f32.mrf.mxu0  ;;  %v3124_v38 = vpack.c.bf16 %v3094_v27, %v3092_v42  ;;  %v3064_v3 = vadd.f32 1.0, %v5511_v34  ;;  %v2974_v34 = vmul.f32 0.5, %v7659_v19 }
 0x71f   : > { %v2920_v29 = vpop.f32.mrf.mxu1  ;;  %v2808_v54 = vadd.f32 %v2807_v30, %v7620_v0  ;;  %v5513_v17 = vpop.eup %5512  ;;  %v3008_v56 = vmul.f32 0.70710677, %v7666_v13  ;;  %v7672_v58 = vadd.f32 %v2918_v21, %v2806_v35 }
 0x720   : > { %v2811_v28 = vpop.f32.mrf.mxu0  ;;  %v5515_v50 = vpop.eup %5514  ;;  %v3065_v9 = vadd.f32 1.0, %v5513_v17  ;;  %3375 = vmatprep.mubr.bf16.mxu0 %v3124_v38  ;;  %v3096_v18 = vmul.f32 %v3064_v3, %v2968_v14 }
 0x721   : > { %v2924_v57 = vpop.f32.mrf.mxu1  ;;  %v7674_v16 = vadd.f32 %v2920_v29, %v2808_v54  ;;  %v2812_v31 = vadd.f32 %v2811_v28, %v7616_v11  ;;  %5526 = verf.f32 %v3008_v56  ;;  %v3009_v55 = vmul.f32 0.70710677, %v7672_v58  ;;  %v5517_v23 = vpop.eup %5516  ;;  %3376 = vmatmul.mubr.bf16.vlgmr.msra.gmra.mxu0 %v3123_v24 }
 0x722   : > { %v2813_v8 = vpop.f32.mrf.mxu0  ;;  %5528 = verf.f32 %v3007_v40  ;;  %v3063_v46 = vadd.f32 1.0, %v5515_v50  ;;  %v3066_v51 = vadd.f32 1.0, %v5517_v23  ;;  %v3097_v6 = vmul.f32 %v3065_v9, %v2969_v26 }
 0x723   : > { %v2926_v61 = vpop.f32.mrf.mxu1  ;;  %v3010_v15 = vmul.f32 0.70710677, %v7674_v16  ;;  %v7681_v37 = vadd.f32 %v2924_v57, %v2812_v31  ;;  %5530 = verf.f32 %v3009_v55  ;;  %v2814_v63 = vadd.f32 %v2813_v8, %v7620_v0  ;;  %v5519_v33 = vpop.eup %5518 }
 0x724   : > { %v2815_v1 = vpop.f32.mrf.mxu0  ;;  %v3098_v10 = vmul.f32 %v3066_v51, %v2970_v22  ;;  %v3095_v12 = vmul.f32 %v3063_v46, %v2967_v5  ;;  %v3067_v47 = vadd.f32 1.0, %v5519_v33  ;;  %v2971_v31 = vmul.f32 0.5, %v7645_v2 }
 0x725   : > { %v2928_v43 = vpop.f32.mrf.mxu1  ;;  %5532 = verf.f32 %v3010_v15  ;;  %v3011_v4 = vmul.f32 0.70710677, %v7681_v37  ;;  %v7687_v53 = vadd.f32 %v2926_v61, %v2814_v63  ;;  %v2816_v36 = vadd.f32 %v2815_v1, %v7616_v11  ;;  %v5521_v20 = vpop.eup %5520 }
 0x726   : > { %v2817_v48 = vpop.f32.mrf.mxu0  ;;  %v3126_v30 = vpack.c.bf16 %v3098_v10, %v3096_v18  ;;  %v3125_v54 = vpack.c.bf16 %v3097_v6, %v3095_v12  ;;  %v3068_v56 = vadd.f32 1.0, %v5521_v20  ;;  %v2972_v26 = vmul.f32 0.5, %v7649_v32 }
 0x727   : > { %v2930_v49 = vpop.f32.mrf.mxu1  ;;  %v2818_v39 = vadd.f32 %v2817_v48, %v7620_v0  ;;  %v3012_v41 = vmul.f32 0.70710677, %v7687_v53  ;;  %v7692_v62 = vadd.f32 %v2928_v43, %v2816_v36  ;;  %v5523_v42 = vpop.eup %5522  ;;  %5534 = verf.f32 %v3011_v4 }
 0x728   : > { %v2821_v21 = vpop.f32.mrf.mxu0  ;;  %v3069_v29 = vadd.f32 1.0, %v5523_v42  ;;  %3385 = vmatprep.mubr.bf16.mxu0 %v3126_v30  ;;  %v3100_v46 = vmul.f32 %v3068_v56, %v2972_v26  ;;  %v2976_v51 = vmul.f32 0.5, %v7666_v13  ;;  %v3099_v2 = vmul.f32 %v3067_v47, %v2971_v31 }
 0x729   : > { %v2934_v45 = vpop.f32.mrf.mxu1  ;;  %v7695_v27 = vadd.f32 %v2930_v49, %v2818_v39  ;;  %v2822_v35 = vadd.f32 %v2821_v21, %v7616_v11  ;;  %5536 = verf.f32 %v3012_v41  ;;  %v3013_v28 = vmul.f32 0.70710677, %v7692_v62  ;;  %3386 = vmatmul.mubr.bf16.gmra.mxu0 %v3125_v54 }
 0x72a   : > { %v2823_v52 = vpop.f32.mrf.mxu0  ;;  %v5525_v17 = vpop.eup %5524  ;;  %v3101_v22 = vmul.f32 %v3069_v29, %v2973_v25  ;;  %v2977_v33 = vmul.f32 0.5, %v7672_v58  ;;  %v2978_v41 = vmul.f32 0.5, %v7674_v16 }
 0x72b   : > { %v2936_v40 = vpop.f32.mrf.mxu1  ;;  %v3014_v57 = vmul.f32 0.70710677, %v7695_v27  ;;  %v3070_v38 = vadd.f32 1.0, %v5525_v17  ;;  %v7701_v50 = vadd.f32 %v2934_v45, %v2822_v35  ;;  %v2824_v24 = vadd.f32 %v2823_v52, %v7620_v0 }
 0x72c   : > { %v2825_v19 = vpop.f32.mrf.mxu0  ;;  %5538 = verf.f32 %v3013_v28  ;;  %v3127_v12 = vpack.c.bf16 %v3101_v22, %v3099_v2 }
 0x72d   : > { %v2938_v9 = vpop.f32.mrf.mxu1  ;;  %v3102_v55 = vmul.f32 %v3070_v38, %v2974_v34  ;;  %5540 = verf.f32 %v3014_v57  ;;  %v7706_v8 = vadd.f32 %v2936_v40, %v2824_v24  ;;  %v2826_v61 = vadd.f32 %v2825_v19, %v7616_v11 }
 0x72e   : > { %v2827_v23 = vpop.f32.mrf.mxu0  ;;  %v5527_v15 = vpop.eup %5526  ;;  %v3015_v32 = vmul.f32 0.70710677, %v7701_v50  ;;  %v2975_v40 = vmul.f32 0.5, %v7661_v7 }
 0x72f   : > { %v2940_v3 = vpop.f32.mrf.mxu1  ;;  %v2828_v63 = vadd.f32 %v2827_v23, %v7620_v0  ;;  %v5529_v1 = vpop.eup %5528  ;;  %v3016_v43 = vmul.f32 0.70710677, %v7706_v8  ;;  %v7713_v5 = vadd.f32 %v2938_v9, %v2826_v61  ;;  %v3072_v4 = vadd.f32 1.0, %v5527_v15 }
 0x730   : > { %v2831_v14 = vpop.f32.mrf.mxu0  ;;  %v5531_v10 = vpop.eup %5530  ;;  %v3128_v49 = vpack.c.bf16 %v3102_v55, %v3100_v46  ;;  %v3071_v25 = vadd.f32 1.0, %v5529_v1  ;;  %v2981_v55 = vmul.f32 0.5, %v7692_v62 }
 0x731   : > { %v2944_v6 = vpop.f32.mrf.mxu1  ;;  %v7715_v36 = vadd.f32 %v2940_v3, %v2828_v63  ;;  %v2832_v48 = vadd.f32 %v2831_v14, %v7616_v11  ;;  %v3073_v18 = vadd.f32 1.0, %v5531_v10  ;;  %5542 = verf.f32 %v3016_v43 }
 0x732   : > { %v5533_v13 = vpop.eup %5532  ;;  %v2833_v39 = vpop.f32.mrf.mxu0  ;;  %v3017_v45 = vmul.f32 0.70710677, %v7713_v5  ;;  %3395 = vmatprep.mubr.bf16.mxu0 %v3128_v49  ;;  %5544 = verf.f32 %v3015_v32  ;;  %v3104_v34 = vmul.f32 %v3072_v4, %v2976_v51  ;;  %v3103_v9 = vmul.f32 %v3071_v25, %v2975_v40 }
 0x733   : > { %v2946_v20 = vpop.f32.mrf.mxu1  ;;  %v3074_v21 = vadd.f32 1.0, %v5533_v13  ;;  %v3018_v42 = vmul.f32 0.70710677, %v7715_v36  ;;  %v7722_v35 = vadd.f32 %v2944_v6, %v2832_v48  ;;  %v2834_v30 = vadd.f32 %v2833_v39, %v7620_v0  ;;  %3396 = vmatmul.mubr.bf16.gmra.mxu0 %v3127_v12 }
 0x734   : > { %v2835_v58 = vpop.f32.mrf.mxu0  ;;  %5546 = verf.f32 %v3017_v45  ;;  %v3105_v54 = vmul.f32 %v3073_v18, %v2977_v33  ;;  %v5535_v57 = vpop.eup %5534  ;;  %v2982_v51 = vmul.f32 0.5, %v7695_v27  ;;  %v2980_v27 = vmul.f32 0.5, %v7687_v53 }
 0x735   : > { %v2948_v29 = vpop.f32.mrf.mxu1  ;;  %v3106_v52 = vmul.f32 %v3074_v21, %v2978_v41  ;;  %v2836_v16 = vadd.f32 %v2835_v58, %v7616_v11  ;;  %5548 = verf.f32 %v3018_v42  ;;  %v7727_v17 = vadd.f32 %v2946_v20, %v2834_v30 }
 0x736   : > { %v2837_v56 = vpop.f32.mrf.mxu0  ;;  %v5537_v19 = vpop.eup %5536  ;;  %v3019_v31 = vmul.f32 0.70710677, %v7722_v35  ;;  %v3075_v46 = vadd.f32 1.0, %v5535_v57  ;;  %v3129_v2 = vpack.c.bf16 %v3105_v54, %v3103_v9  ;;  %v2979_v33 = vmul.f32 0.5, %v7681_v37 }
 0x737   : > { %v2950_v28 = vpop.f32.mrf.mxu1  ;;  %v7729_v47 = vadd.f32 %v2948_v29, %v2836_v16  ;;  %v2838_v38 = vadd.f32 %v2837_v56, %v7620_v0  ;;  %v3130_v24 = vpack.c.bf16 %v3106_v52, %v3104_v34  ;;  %v3020_v26 = vmul.f32 0.70710677, %v7727_v17 }
 0x738   : > { %v2841_v22 = vpop.f32.mrf.mxu0  ;;  %v3076_v43 = vadd.f32 1.0, %v5537_v19  ;;  %v3107_v25 = vmul.f32 %v3075_v46, %v2979_v33  ;;  %v2984_v16 = vmul.f32 0.5, %v7706_v8  ;;  %v2983_v9 = vmul.f32 0.5, %v7701_v50 }
 0x739   : > { %v2954_v7 = vpop.f32.mrf.mxu1  ;;  %v3021_v61 = vmul.f32 0.70710677, %v7729_v47  ;;  %v7736_v23 = vadd.f32 %v2950_v28, %v2838_v38  ;;  %v2842_v3 = vadd.f32 %v2841_v22, %v7616_v11  ;;  %3405 = vmatprep.mubr.bf16.mxu0 %v3130_v24  ;;  %v5539_v15 = vpop.eup %5538  ;;  %5550 = verf.f32 %v3020_v26 }
 0x73a   : > { %v2843_v63 = vpop.f32.mrf.mxu0  ;;  %v5541_v32 = vpop.eup %5540  ;;  %v3077_v14 = vadd.f32 1.0, %v5539_v15  ;;  %v3108_v21 = vmul.f32 %v3076_v43, %v2980_v27  ;;  %v2986_v24 = vmul.f32 0.5, %v7715_v36  ;;  %v2988_v36 = vmul.f32 0.5, %v7727_v17 }
 0x73b   : > { %v2956_v1 = vpop.f32.mrf.mxu1  ;;  %5552 = verf.f32 %v3021_v61  ;;  %v3022_v62 = vmul.f32 0.70710677, %v7736_v23  ;;  %v3078_v6 = vadd.f32 1.0, %v5541_v32  ;;  %v7741_v10 = vadd.f32 %v2954_v7, %v2842_v3  ;;  %3406 = vmatmul.mubr.bf16.gmra.mxu0 %v3129_v2 }
 0x73c   : > { %5554 = verf.f32 %v3019_v31  ;;  %v2844_v4 = vadd.f32 %v2843_v63, %v7620_v0  ;;  %v2845_v48 = vpop.f32.mrf.mxu0  ;;  %v3109_v18 = vmul.f32 %v3077_v14, %v2981_v55  ;;  %v2990_v63 = vmul.f32 0.5, %v7736_v23 }
 0x73d   : > { %v2958_v49 = vpop.f32.mrf.mxu1  ;;  %5556 = verf.f32 %v3022_v62  ;;  %v2846_v13 = vadd.f32 %v2845_v48, %v7616_v11  ;;  %v3110_v39 = vmul.f32 %v3078_v6, %v2982_v51  ;;  %v3023_v30 = vmul.f32 0.70710677, %v7741_v10 }
 0x73e   : > { %v7747_v20 = vadd.f32 %v2956_v1, %v2844_v4  ;;  %v2847_v12 = vpop.f32.mrf.mxu0  ;;  %v5543_v41 = vpop.eup %5542  ;;  %v3131_v54 = vpack.c.bf16 %v3109_v18, %v3107_v25  ;;  %v2989_v50 = vmul.f32 0.5, %v7729_v47  ;;  %v2987_v14 = vmul.f32 0.5, %v7722_v35 }
 0x73f   : > { %v7749_v45 = vadd.f32 %v2958_v49, %v2846_v13  ;;  %v2848_v42 = vadd.f32 %v2847_v12, %v7620_v0  ;;  %v2960_v58 = vpop.f32.mrf.mxu1  ;;  %v5545_v11 = vpop.eup %5544  ;;  %v3132_v34 = vpack.c.bf16 %v3110_v39, %v3108_v21  ;;  %v3080_v40 = vadd.f32 1.0, %v5543_v41 }
 0x740   : > { %v3024_v53 = vmul.f32 0.70710677, %v7747_v20  ;;  %v2985_v0 = vmul.f32 0.5, %v7713_v5  ;;  %v3079_v38 = vadd.f32 1.0, %v5545_v11  ;;  %v2992_v18 = vmul.f32 0.5, %v7747_v20  ;;  %v5487_v11 = vld [vmem:[#allocation16 + $0x18] sm:$0xff]  }
 0x741   : > { %v3025_v37 = vmul.f32 0.70710677, %v7749_v45  ;;  %v2961_v29 = vadd.f32 %v2960_v58, %v2848_v42  ;;  %v5547_v52 = vpop.eup %5546  ;;  %3415 = vmatprep.mubr.bf16.mxu0 %v3132_v34  ;;  %v3112_v8 = vmul.f32 %v3080_v40, %v2984_v16  ;;  %v2993_v41 = vmul.f32 0.5, %v7749_v45  ;;  %4751 = vmatpush3.bf16.msra.mxu1 %v5487_v11  ;;  %v5489_v20 = vld [vmem:[#allocation16 + $0x10] sm:$0xff]   ;;  %v5491_v34 = vld [vmem:[#allocation16 + $0x8] sm:$0xff]   ;;  %v5492_v45 = vld [vmem:[#allocation16 + $0x40] sm:$0xff]  }
 0x742   : > { %5558 = verf.f32 %v3024_v53  ;;  %v5549_v56 = vpop.eup %5548  ;;  %v3081_v28 = vadd.f32 1.0, %v5547_v52  ;;  %v3111_v55 = vmul.f32 %v3079_v38, %v2983_v9  ;;  %v2991_v42 = vmul.f32 0.5, %v7741_v10  ;;  %v5493_v52 = vld [vmem:[#allocation16] sm:$0xff]   ;;  %v3171_v10 = vld [vmem:[#allocation4] sm:$0x3] }
 0x743   : > { %5560 = verf.f32 %v3025_v37  ;;  %v3026_v57 = vmul.f32 0.70710677, %v2961_v29  ;;  %v3082_v19 = vadd.f32 1.0, %v5549_v56  ;;  %3416 = vmatmul.mubr.bf16.gmra.mxu0 %v3131_v54  ;;  %v2994_v39 = vmul.f32 0.5, %v2961_v29  ;;  %v5488_v37 = vld [vmem:[#allocation16 + $0x50] sm:$0xff]   ;;  %v5490_v29 = vld [vmem:[#allocation16 + $0x48] sm:$0xff]  }
 0x744   : > { %5562 = verf.f32 %v3023_v30  ;;  %v3113_v31 = vmul.f32 %v3081_v28, %v2985_v0  ;;  %4752 = vmatprep.subr.bf16.mxu1 %v5488_v37  ;;  %v7768_v16 = vrot.slane %v3171_v10, %v2409_v44  ;;  %v7772_v40 = vrot.slane %v3171_v10, %v2413_v59 }
 0x745   : > { %5564 = verf.f32 %v3026_v57  ;;  %v3114_v26 = vmul.f32 %v3082_v19, %v2986_v24  ;;  %4753 = vmatpush3.bf16.msra.mxu1 %v5489_v20 }
 0x746   : > { %v5551_v22 = vpop.eup %5550  ;;  %v3133_v51 = vpack.c.bf16 %v3113_v31, %v3111_v55  ;;  %4754 = vmatprep.subr.bf16.mxu1 %v5490_v29 }
 0x747   : > { %v3134_v5 = vpack.c.bf16 %v3114_v26, %v3112_v8  ;;  %v3084_v3 = vadd.f32 1.0, %v5551_v22 }
 0x748   : > { %v5553_v7 = vpop.eup %5552 }
 0x749   : > { %v5555_v61 = vpop.eup %5554  ;;  %v3085_v46 = vadd.f32 1.0, %v5553_v7  ;;  %3425 = vmatprep.mubr.bf16.mxu0 %v3134_v5  ;;  %v3116_v32 = vmul.f32 %v3084_v3, %v2988_v36  ;;  %4755 = vmatpush3.bf16.msra.mxu1 %v5491_v34 }
 0x74a   : > { %v5557_v15 = vpop.eup %5556  ;;  %v3083_v2 = vadd.f32 1.0, %v5555_v61  ;;  %4756 = vmatprep.subr.bf16.mxu1 %v5492_v45 }
 0x74b   : > { %v3086_v1 = vadd.f32 1.0, %v5557_v15  ;;  %3426 = vmatmul.mubr.bf16.gmra.mxu0 %v3133_v51  ;;  %v3117_v62 = vmul.f32 %v3085_v46, %v2989_v50 }
 0x74c   : > { %v3115_v49 = vmul.f32 %v3083_v2, %v2987_v14 }
 0x74d   : > { %v3118_v43 = vmul.f32 %v3086_v1, %v2990_v63  ;;  %4757 = vmatpush3.bf16.msra.mxu1 %v5493_v52 }
 0x74e   : > { %v3135_v23 = vpack.c.bf16 %v3117_v62, %v3115_v49 }
 0x74f   : > { %v5559_v6 = vpop.eup %5558  ;;  %v3136_v4 = vpack.c.bf16 %v3118_v43, %v3116_v32 }
 0x750   : > { %v5561_v48 = vpop.eup %5560  ;;  %v3088_v13 = vadd.f32 1.0, %v5559_v6 }
 0x751   : > { %v5563_v27 = vpop.eup %5562  ;;  %3435 = vmatprep.mubr.bf16.mxu0 %v3136_v4  ;;  %v3089_v33 = vadd.f32 1.0, %v5561_v48 }
 0x752   : > { %v5565_v17 = vpop.eup %5564  ;;  %v3087_v12 = vadd.f32 1.0, %v5563_v27  ;;  %v3120_v35 = vmul.f32 %v3088_v13, %v2992_v18 }
 0x753   : > { %v3090_v47 = vadd.f32 1.0, %v5565_v17  ;;  %3436 = vmatmul.mubr.bf16.gmra.mxu0 %v3135_v23  ;;  %v3121_v25 = vmul.f32 %v3089_v33, %v2993_v41 }
 0x754   : > { %v3119_v53 = vmul.f32 %v3087_v12, %v2991_v42 }
 0x755   : > { %v3122_v21 = vmul.f32 %v3090_v47, %v2994_v39 }
 0x756   : > { %v3137_v58 = vpack.c.bf16 %v3121_v25, %v3119_v53 }
 0x757   : > { %v3138_v30 = vpack.c.bf16 %v3122_v21, %v3120_v35 }
 0x759   : > { %3445 = vmatprep.mubr.bf16.mxu0 %v3138_v30 }
 0x75b   : > { %3446 = vmatmul.mubr.bf16.gmra.mxu0 %v3137_v58 }
 0x7e1   : > { %v3377_v54 = vpop.f32.mrf.mxu0 }
 0x7e2   : > { %v3378_v56 = vadd.f32 %v3377_v54, %v7768_v16 }
 0x7e3   : > { %v3379_v0 = vpop.f32.mrf.mxu0 }
 0x7e4   : > { %v3380_v28 = vadd.f32 %v3379_v0, %v7772_v40  ;;  %v3488_v57 = vmul.f32 0.70710677, %v3378_v56  ;;  %v3456_v48 = vmul.f32 0.5, %v3378_v56 }
 0x7e5   : > { %v3381_v38 = vpop.f32.mrf.mxu0 }
 0x7e6   : > { %v3489_v24 = vmul.f32 0.70710677, %v3380_v28  ;;  %v3382_v19 = vadd.f32 %v3381_v38, %v7768_v16  ;;  %v3457_v47 = vmul.f32 0.5, %v3380_v28 }
 0x7e7   : > { %v3383_v9 = vpop.f32.mrf.mxu0 }
 0x7e8   : > { %5566 = verf.f32 %v3489_v24  ;;  %v3490_v8 = vmul.f32 0.70710677, %v3382_v19  ;;  %v3384_v44 = vadd.f32 %v3383_v9, %v7772_v40  ;;  %v3458_v27 = vmul.f32 0.5, %v3382_v19 }
 0x7e9   : > { %5568 = verf.f32 %v3488_v57  ;;  %v3387_v59 = vpop.f32.mrf.mxu0 }
 0x7ea   : > { %5570 = verf.f32 %v3490_v8  ;;  %v3491_v60 = vmul.f32 0.70710677, %v3384_v44  ;;  %v7779_v31 = vadd.f32 %v3387_v59, %v7768_v16  ;;  %v3459_v12 = vmul.f32 0.5, %v3384_v44 }
 0x7eb   : > { %v3389_v26 = vpop.f32.mrf.mxu0 }
 0x7ec   : > { %5572 = verf.f32 %v3491_v60  ;;  %v3492_v22 = vmul.f32 0.70710677, %v7779_v31  ;;  %v7783_v7 = vadd.f32 %v3389_v26, %v7772_v40 }
 0x7ed   : > { %v3391_v55 = vpop.f32.mrf.mxu0 }
 0x7ee   : > { %v3493_v5 = vmul.f32 0.70710677, %v7783_v7  ;;  %v3392_v61 = vadd.f32 %v3391_v55, %v7768_v16  ;;  %5574 = verf.f32 %v3492_v22  ;;  %v3460_v55 = vmul.f32 0.5, %v7779_v31 }
 0x7ef   : > { %v3393_v3 = vpop.f32.mrf.mxu0 }
 0x7f0   : > { %v3494_v15 = vmul.f32 0.70710677, %v3392_v61  ;;  %v3394_v46 = vadd.f32 %v3393_v3, %v7772_v40  ;;  %5576 = verf.f32 %v3493_v5  ;;  %v3462_v57 = vmul.f32 0.5, %v3392_v61 }
 0x7f1   : > { %v3461_v5 = vmul.f32 0.5, %v7783_v7 }
 0x7f2   : > { %5578 = verf.f32 %v3494_v15  ;;  %v3495_v36 = vmul.f32 0.70710677, %v3394_v46  ;;  %v3463_v59 = vmul.f32 0.5, %v3394_v46 }
 0x7f3   : > { %v3397_v51 = vpop.f32.mrf.mxu0 }
 0x7f4   : > { %v7789_v63 = vadd.f32 %v3397_v51, %v7768_v16  ;;  %5580 = verf.f32 %v3495_v36 }
 0x7f5   : > { %v3399_v1 = vpop.f32.mrf.mxu0  ;;  %v5567_v2 = vpop.eup %5566 }
 0x7f6   : > { %v7792_v50 = vadd.f32 %v3399_v1, %v7772_v40  ;;  %v5569_v32 = vpop.eup %5568  ;;  %v3496_v43 = vmul.f32 0.70710677, %v7789_v63  ;;  %v3553_v49 = vadd.f32 1.0, %v5567_v2 }
 0x7f7   : > { %v3401_v14 = vpop.f32.mrf.mxu0  ;;  %v5571_v62 = vpop.eup %5570  ;;  %v3552_v23 = vadd.f32 1.0, %v5569_v32 }
 0x7f8   : > { %v3497_v6 = vmul.f32 0.70710677, %v7792_v50  ;;  %v7797_v4 = vadd.f32 %v3401_v14, %v7768_v16  ;;  %v3554_v13 = vadd.f32 1.0, %v5571_v62  ;;  %v3585_v30 = vmul.f32 %v3553_v49, %v3457_v47 }
 0x7f9   : > { %v3403_v17 = vpop.f32.mrf.mxu0  ;;  %v5573_v33 = vpop.eup %5572  ;;  %v3584_v11 = vmul.f32 %v3552_v23, %v3456_v48  ;;  %v3465_v62 = vmul.f32 0.5, %v7792_v50 }
 0x7fa   : > { %5582 = verf.f32 %v3497_v6  ;;  %v3498_v18 = vmul.f32 0.70710677, %v7797_v4  ;;  %v7801_v39 = vadd.f32 %v3403_v17, %v7772_v40  ;;  %v3555_v41 = vadd.f32 1.0, %v5573_v33 }
 0x7fb   : > { %5584 = verf.f32 %v3496_v43  ;;  %v3407_v35 = vpop.f32.mrf.mxu0  ;;  %v3586_v21 = vmul.f32 %v3554_v13, %v3458_v27  ;;  %v5575_v20 = vpop.eup %5574  ;;  %v3466_v47 = vmul.f32 0.5, %v7797_v4 }
 0x7fc   : > { %5586 = verf.f32 %v3498_v18  ;;  %v3499_v42 = vmul.f32 0.70710677, %v7801_v39  ;;  %v7805_v25 = vadd.f32 %v3407_v35, %v7768_v16  ;;  %v3587_v53 = vmul.f32 %v3555_v41, %v3459_v12 }
 0x7fd   : > { %v3409_v58 = vpop.f32.mrf.mxu0  ;;  %v5577_v52 = vpop.eup %5576  ;;  %v3616_v10 = vpack.c.bf16 %v3586_v21, %v3584_v11  ;;  %v3556_v9 = vadd.f32 1.0, %v5575_v20  ;;  %v3467_v41 = vmul.f32 0.5, %v7801_v39 }
 0x7fe   : > { %5588 = verf.f32 %v3499_v42  ;;  %v3500_v37 = vmul.f32 0.70710677, %v7805_v25  ;;  %v7809_v29 = vadd.f32 %v3409_v58, %v7772_v40  ;;  %v3617_v45 = vpack.c.bf16 %v3587_v53, %v3585_v30 }
 0x7ff   : > { %v3411_v34 = vpop.f32.mrf.mxu0  ;;  %v5579_v56 = vpop.eup %5578  ;;  %v3557_v8 = vadd.f32 1.0, %v5577_v52  ;;  %v3588_v2 = vmul.f32 %v3556_v9, %v3460_v55  ;;  %v3464_v42 = vmul.f32 0.5, %v7789_v63 }
 0x800   : > { %v7812_v54 = vadd.f32 %v3411_v34, %v7768_v16  ;;  %v3501_v0 = vmul.f32 0.70710677, %v7809_v29  ;;  %3799 = vmatprep.mubr.bf16.mxu1 %v3617_v45  ;;  %v3558_v38 = vadd.f32 1.0, %v5579_v56  ;;  %5590 = verf.f32 %v3500_v37 }
 0x801   : > { %v3413_v28 = vpop.f32.mrf.mxu0  ;;  %3800 = vmatmul.mubr.bf16.vlgmr.msra.gmra.mxu1 %v3616_v10  ;;  %v5581_v19 = vpop.eup %5580  ;;  %v3589_v32 = vmul.f32 %v3557_v8, %v3461_v5  ;;  %v3469_v5 = vmul.f32 0.5, %v7809_v29 }
 0x802   : > { %v3502_v24 = vmul.f32 0.70710677, %v7812_v54  ;;  %5592 = verf.f32 %v3501_v0  ;;  %v7817_v44 = vadd.f32 %v3413_v28, %v7772_v40  ;;  %v3559_v26 = vadd.f32 1.0, %v5581_v19 }
 0x803   : > { %v3417_v60 = vpop.f32.mrf.mxu0  ;;  %v3590_v61 = vmul.f32 %v3558_v38, %v3462_v57 }
 0x804   : > { %5594 = verf.f32 %v3502_v24  ;;  %v7820_v22 = vadd.f32 %v3417_v60, %v7768_v16  ;;  %v3503_v3 = vmul.f32 0.70710677, %v7817_v44  ;;  %v3591_v51 = vmul.f32 %v3559_v26, %v3463_v59 }
 0x805   : > { %v3419_v15 = vpop.f32.mrf.mxu0  ;;  %v3618_v27 = vpack.c.bf16 %v3590_v61, %v3588_v2  ;;  %v3470_v26 = vmul.f32 0.5, %v7812_v54  ;;  %v3471_v61 = vmul.f32 0.5, %v7817_v44 }
 0x806   : > { %v3504_v36 = vmul.f32 0.70710677, %v7820_v22  ;;  %5596 = verf.f32 %v3503_v3  ;;  %v7827_v46 = vadd.f32 %v3419_v15, %v7772_v40  ;;  %v3619_v49 = vpack.c.bf16 %v3591_v51, %v3589_v32 }
 0x807   : > { %v5583_v1 = vpop.eup %5582  ;;  %v3421_v43 = vpop.f32.mrf.mxu0 }
 0x808   : > { %v5585_v14 = vpop.eup %5584  ;;  %v7830_v31 = vadd.f32 %v3421_v43, %v7768_v16  ;;  %v3505_v6 = vmul.f32 0.70710677, %v7827_v46  ;;  %v3561_v13 = vadd.f32 1.0, %v5583_v1  ;;  %5598 = verf.f32 %v3504_v36  ;;  %3807 = vmatprep.mubr.bf16.mxu1 %v3619_v49 }
 0x809   : > { %v5587_v7 = vpop.eup %5586  ;;  %v3423_v48 = vpop.f32.mrf.mxu0  ;;  %v3560_v18 = vadd.f32 1.0, %v5585_v14  ;;  %3808 = vmatmul.mubr.bf16.gmra.mxu1 %v3618_v27  ;;  %v3468_v36 = vmul.f32 0.5, %v7805_v25 }
 0x80a   : > { %v3562_v17 = vadd.f32 1.0, %v5587_v7  ;;  %v3506_v33 = vmul.f32 0.70710677, %v7830_v31  ;;  %5600 = verf.f32 %v3505_v6  ;;  %v7837_v12 = vadd.f32 %v3423_v48, %v7772_v40 }
 0x80b   : > { %v5589_v23 = vpop.eup %5588  ;;  %v3427_v50 = vpop.f32.mrf.mxu0  ;;  %v3593_v58 = vmul.f32 %v3561_v13, %v3465_v62  ;;  %v3592_v34 = vmul.f32 %v3560_v18, %v3464_v42  ;;  %v3474_v25 = vmul.f32 0.5, %v7830_v31  ;;  %v3473_v31 = vmul.f32 0.5, %v7827_v46 }
 0x80c   : > { %v3563_v35 = vadd.f32 1.0, %v5589_v23  ;;  %5602 = verf.f32 %v3506_v33  ;;  %v7841_v21 = vadd.f32 %v3427_v50, %v7768_v16  ;;  %v3594_v30 = vmul.f32 %v3562_v17, %v3466_v47 }
 0x80d   : > { %v3507_v53 = vmul.f32 0.70710677, %v7837_v12  ;;  %v3429_v4 = vpop.f32.mrf.mxu0  ;;  %v5591_v20 = vpop.eup %5590 }
 0x80e   : > { %v3595_v11 = vmul.f32 %v3563_v35, %v3467_v41  ;;  %v3508_v37 = vmul.f32 0.70710677, %v7841_v21  ;;  %v7847_v39 = vadd.f32 %v3429_v4, %v7772_v40  ;;  %v3620_v57 = vpack.c.bf16 %v3594_v30, %v3592_v34 }
 0x80f   : > { %5604 = verf.f32 %v3507_v53  ;;  %v3431_v45 = vpop.f32.mrf.mxu0  ;;  %v5593_v52 = vpop.eup %5592  ;;  %v3564_v59 = vadd.f32 1.0, %v5591_v20  ;;  %v3472_v35 = vmul.f32 0.5, %v7820_v22  ;;  %v3475_v53 = vmul.f32 0.5, %v7837_v12 }
 0x810   : > { %v7850_v10 = vadd.f32 %v3431_v45, %v7768_v16  ;;  %v3621_v63 = vpack.c.bf16 %v3595_v11, %v3593_v58  ;;  %v3509_v0 = vmul.f32 0.70710677, %v7847_v39  ;;  %5606 = verf.f32 %v3508_v37 }
 0x811   : > { %v5595_v56 = vpop.eup %5594  ;;  %v3433_v28 = vpop.f32.mrf.mxu0  ;;  %v3565_v9 = vadd.f32 1.0, %v5593_v52  ;;  %v3596_v44 = vmul.f32 %v3564_v59, %v3468_v36  ;;  %v3477_v59 = vmul.f32 0.5, %v7847_v39 }
 0x812   : > { %v3566_v38 = vadd.f32 1.0, %v5595_v56  ;;  %v3510_v24 = vmul.f32 0.70710677, %v7850_v10  ;;  %v7855_v19 = vadd.f32 %v3433_v28, %v7772_v40  ;;  %3815 = vmatprep.mubr.bf16.mxu1 %v3621_v63  ;;  %5608 = verf.f32 %v3509_v0 }
 0x813   : > { %v3437_v8 = vpop.f32.mrf.mxu0  ;;  %v5597_v60 = vpop.eup %5596  ;;  %3816 = vmatmul.mubr.bf16.gmra.mxu1 %v3620_v57  ;;  %v3597_v32 = vmul.f32 %v3565_v9, %v3469_v5 }
 0x814   : > { %5610 = verf.f32 %v3510_v24  ;;  %v3511_v55 = vmul.f32 0.70710677, %v7855_v19  ;;  %v3567_v3 = vadd.f32 1.0, %v5597_v60  ;;  %v7862_v15 = vadd.f32 %v3437_v8, %v7768_v16 }
 0x815   : > { %v3439_v51 = vpop.f32.mrf.mxu0  ;;  %v3598_v1 = vmul.f32 %v3566_v38, %v3470_v26  ;;  %v5599_v54 = vpop.eup %5598  ;;  %v3478_v26 = vmul.f32 0.5, %v7850_v10 }
 0x816   : > { %5612 = verf.f32 %v3511_v55  ;;  %v7866_v2 = vadd.f32 %v3439_v51, %v7772_v40  ;;  %v3599_v43 = vmul.f32 %v3567_v3, %v3471_v61  ;;  %v3512_v14 = vmul.f32 0.70710677, %v7862_v15 }
 0x817   : > { %v3441_v29 = vpop.f32.mrf.mxu0  ;;  %v5601_v7 = vpop.eup %5600  ;;  %v3622_v33 = vpack.c.bf16 %v3598_v1, %v3596_v44  ;;  %v3568_v23 = vadd.f32 1.0, %v5599_v54  ;;  %v3479_v55 = vmul.f32 0.5, %v7855_v19  ;;  %v3476_v51 = vmul.f32 0.5, %v7841_v21 }
 0x818   : > { %v3513_v62 = vmul.f32 0.70710677, %v7866_v2  ;;  %v7871_v6 = vadd.f32 %v3441_v29, %v7768_v16  ;;  %v3623_v27 = vpack.c.bf16 %v3599_v43, %v3597_v32  ;;  %5614 = verf.f32 %v3512_v14 }
 0x819   : > { %v5603_v48 = vpop.eup %5602  ;;  %v3443_v49 = vpop.f32.mrf.mxu0  ;;  %v3569_v18 = vadd.f32 1.0, %v5601_v7  ;;  %v3600_v34 = vmul.f32 %v3568_v23, %v3472_v35  ;;  %v3481_v21 = vmul.f32 0.5, %v7866_v2 }
 0x81a   : > { %v3570_v13 = vadd.f32 1.0, %v5603_v48  ;;  %v3514_v17 = vmul.f32 0.70710677, %v7871_v6  ;;  %5616 = verf.f32 %v3513_v62  ;;  %v7876_v47 = vadd.f32 %v3443_v49, %v7772_v40  ;;  %3823 = vmatprep.mubr.bf16.mxu1 %v3623_v27 }
 0x81b   : > { %v3447_v50 = vpop.f32.mrf.mxu0  ;;  %3824 = vmatmul.mubr.bf16.gmra.mxu1 %v3622_v33  ;;  %v3601_v22 = vmul.f32 %v3569_v18, %v3473_v31  ;;  %v3482_v62 = vmul.f32 0.5, %v7871_v6  ;;  %v3480_v49 = vmul.f32 0.5, %v7862_v15 }
 0x81c   : > { %v5605_v41 = vpop.eup %5604  ;;  %5618 = verf.f32 %v3514_v17  ;;  %v7881_v42 = vadd.f32 %v3447_v50, %v7768_v16  ;;  %v3602_v30 = vmul.f32 %v3570_v13, %v3474_v25  ;;  %v3515_v58 = vmul.f32 0.70710677, %v7876_v47 }
 0x81d   : > { %v3571_v4 = vadd.f32 1.0, %v5605_v41  ;;  %v3449_v11 = vpop.f32.mrf.mxu0  ;;  %v5607_v20 = vpop.eup %5606  ;;  %v3483_v48 = vmul.f32 0.5, %v7876_v47 }
 0x81e   : > { %v7886_v37 = vadd.f32 %v3449_v11, %v7772_v40  ;;  %5620 = verf.f32 %v3515_v58  ;;  %v3516_v63 = vmul.f32 0.70710677, %v7881_v42  ;;  %v3624_v38 = vpack.c.bf16 %v3602_v30, %v3600_v34 }
 0x81f   : > { %v3603_v45 = vmul.f32 %v3571_v4, %v3475_v53  ;;  %v3451_v46 = vpop.f32.mrf.mxu0  ;;  %v5609_v52 = vpop.eup %5608  ;;  %v3572_v61 = vadd.f32 1.0, %v5607_v20  ;;  %v3484_v15 = vmul.f32 0.5, %v7881_v42  ;;  %v5497_v42 = vld [vmem:[#allocation17 + $0x20] sm:$0xff]  }
 0x820   : > { %v3517_v56 = vmul.f32 0.70710677, %v7886_v37  ;;  %v3452_v12 = vadd.f32 %v3451_v46, %v7768_v16  ;;  %v3573_v24 = vadd.f32 1.0, %v5609_v52  ;;  %v3485_v6 = vmul.f32 0.5, %v7886_v37  ;;  %v5494_v52 = vld [vmem:[#allocation17 + $0x38] sm:$0xff]   ;;  %v5495_v37 = vld [vmem:[#allocation17 + $0x30] sm:$0xff]  }
 0x821   : > { %v5611_v0 = vpop.eup %5610  ;;  %v3453_v28 = vpop.f32.mrf.mxu0  ;;  %v3625_v57 = vpack.c.bf16 %v3603_v45, %v3601_v22  ;;  %v3604_v32 = vmul.f32 %v3572_v61, %v3476_v51  ;;  %4822 = vmatprep.subr.bf16.mxu0 %v5494_v52  ;;  %4854 = vmatprep.subr.bf16.mxu1 %v5494_v52 }
 0x822   : > { %v3574_v9 = vadd.f32 1.0, %v5611_v0  ;;  %5622 = verf.f32 %v3517_v56  ;;  %v3454_v8 = vadd.f32 %v3453_v28, %v7772_v40  ;;  %v3518_v5 = vmul.f32 0.70710677, %v3452_v12  ;;  %4823 = vmatpush3.bf16.msra.mxu0 %v5494_v52  ;;  %4862 = vmatpush3.bf16.msra.mxu1 %v5494_v52  ;;  %v5498_v56 = vld [vmem:[#allocation17 + $0x18] sm:$0xff]   ;;  %v5499_v0 = vld [vmem:[#allocation17 + $0x10] sm:$0xff]   ;;  %v5501_v28 = vld [vmem:[#allocation17] sm:$0xff]  }
 0x823   : > { %v5613_v60 = vpop.eup %5612  ;;  %3831 = vmatprep.mubr.bf16.mxu1 %v3625_v57  ;;  %5624 = verf.f32 %v3516_v63  ;;  %v3605_v36 = vmul.f32 %v3573_v24, %v3477_v59  ;;  %v3486_v47 = vmul.f32 0.5, %v3452_v12  ;;  %4824 = vmatprep.subr.bf16.mxu0 %v5495_v37  ;;  %v5496_v63 = vld [vmem:[#allocation17 + $0x28] sm:$0xff]  }
 0x824   : > { %v3575_v3 = vadd.f32 1.0, %v5613_v60  ;;  %v3519_v16 = vmul.f32 0.70710677, %v3454_v8  ;;  %3832 = vmatmul.mubr.bf16.gmra.mxu1 %v3624_v38  ;;  %5626 = verf.f32 %v3518_v5  ;;  %v3606_v1 = vmul.f32 %v3574_v9, %v3478_v26  ;;  %4855 = vmatprep.subr.bf16.mxu1 %v5495_v37  ;;  %v5500_v12 = vld [vmem:[#allocation17 + $0x8] sm:$0xff]   ;;  %v7905_v38 = vld [vmem:[%s8438_s28] ss:$0 sm:$0xff] }
 0x825   : > { %v5615_v54 = vpop.eup %5614  ;;  %v3487_v4 = vmul.f32 0.5, %v3454_v8 }
 0x826   : > { %v3607_v40 = vmul.f32 %v3575_v3, %v3479_v55  ;;  %5628 = verf.f32 %v3519_v16  ;;  %v3626_v14 = vpack.c.bf16 %v3606_v1, %v3604_v32  ;;  %v3576_v44 = vadd.f32 1.0, %v5615_v54  ;;  %4825 = vmatpush3.bf16.msra.mxu0 %v5495_v37  ;;  %4863 = vmatpush3.bf16.msra.mxu1 %v5495_v37 }
 0x827   : > { %v5617_v39 = vpop.eup %5616  ;;  %4826 = vmatprep.subr.bf16.mxu0 %v5496_v63  ;;  %4856 = vmatprep.subr.bf16.mxu1 %v5496_v63 }
 0x828   : > { %v3627_v10 = vpack.c.bf16 %v3607_v40, %v3605_v36  ;;  %v3577_v29 = vadd.f32 1.0, %v5617_v39  ;;  %v3608_v23 = vmul.f32 %v3576_v44, %v3480_v49 }
 0x829   : > { %v5619_v43 = vpop.eup %5618 }
 0x82a   : > { %v3578_v19 = vadd.f32 1.0, %v5619_v43  ;;  %3839 = vmatprep.mubr.bf16.mxu1 %v3627_v10  ;;  %v3609_v17 = vmul.f32 %v3577_v29, %v3481_v21  ;;  %4827 = vmatpush3.bf16.msra.mxu0 %v5496_v63 }
 0x82b   : > { %v5621_v7 = vpop.eup %5620  ;;  %4864 = vmatpush3.bf16.msra.mxu1 %v5496_v63  ;;  %4828 = vmatprep.subr.bf16.mxu0 %v5497_v42 }
 0x82c   : > { %3840 = vmatmul.mubr.bf16.gmra.mxu1 %v3626_v14  ;;  %v3579_v25 = vadd.f32 1.0, %v5621_v7  ;;  %v3610_v27 = vmul.f32 %v3578_v19, %v3482_v62  ;;  %4857 = vmatprep.subr.bf16.mxu1 %v5497_v42 }
 0x82e   : > { %v3611_v33 = vmul.f32 %v3579_v25, %v3483_v48  ;;  %v3628_v31 = vpack.c.bf16 %v3610_v27, %v3608_v23  ;;  %4829 = vmatpush3.bf16.msra.mxu0 %v5497_v42 }
 0x82f   : > { %v5623_v13 = vpop.eup %5622  ;;  %4865 = vmatpush3.bf16.msra.mxu1 %v5497_v42  ;;  %4830 = vmatprep.subr.bf16.mxu0 %v5498_v56 }
 0x830   : > { %v5625_v18 = vpop.eup %5624  ;;  %v3629_v50 = vpack.c.bf16 %v3611_v33, %v3609_v17  ;;  %v3581_v35 = vadd.f32 1.0, %v5623_v13  ;;  %4858 = vmatprep.subr.bf16.mxu1 %v5498_v56 }
 0x831   : > { %v5627_v41 = vpop.eup %5626  ;;  %v3580_v2 = vadd.f32 1.0, %v5625_v18 }
 0x832   : > { %v3582_v53 = vadd.f32 1.0, %v5627_v41  ;;  %3847 = vmatprep.mubr.bf16.mxu1 %v3629_v50  ;;  %v3613_v11 = vmul.f32 %v3581_v35, %v3485_v6  ;;  %4831 = vmatpush3.bf16.msra.mxu0 %v5498_v56 }
 0x833   : > { %v5629_v30 = vpop.eup %5628  ;;  %v3612_v22 = vmul.f32 %v3580_v2, %v3484_v15  ;;  %4866 = vmatpush3.bf16.msra.mxu1 %v5498_v56  ;;  %4832 = vmatprep.subr.bf16.mxu0 %v5499_v0 }
 0x834   : > { %v3583_v58 = vadd.f32 1.0, %v5629_v30  ;;  %3848 = vmatmul.mubr.bf16.gmra.mxu1 %v3628_v31  ;;  %v3614_v20 = vmul.f32 %v3582_v53, %v3486_v47  ;;  %4859 = vmatprep.subr.bf16.mxu1 %v5499_v0 }
 0x836   : > { %v3615_v34 = vmul.f32 %v3583_v58, %v3487_v4  ;;  %v3630_v46 = vpack.c.bf16 %v3614_v20, %v3612_v22  ;;  %4833 = vmatpush3.bf16.msra.mxu0 %v5499_v0 }
 0x837   : > { %4867 = vmatpush3.bf16.msra.mxu1 %v5499_v0  ;;  %4834 = vmatprep.subr.bf16.mxu0 %v5500_v12 }
 0x838   : > { %v3631_v45 = vpack.c.bf16 %v3615_v34, %v3613_v11  ;;  %4860 = vmatprep.subr.bf16.mxu1 %v5500_v12 }
 0x83a   : > { %3855 = vmatprep.mubr.bf16.mxu1 %v3631_v45  ;;  %4835 = vmatpush3.bf16.msra.mxu0 %v5500_v12 }
 0x83b   : > { %4868 = vmatpush3.bf16.msra.mxu1 %v5500_v12  ;;  %4836 = vmatprep.subr.bf16.mxu0 %v5501_v28 }
 0x83c   : > { %3856 = vmatmul.mubr.bf16.gmra.mxu1 %v3630_v46  ;;  %4861 = vmatprep.subr.bf16.mxu1 %v5501_v28 }
 0x83e   : > { %4837 = vmatpush3.bf16.msra.mxu0 %v5501_v28 }
 0x83f   : > { %4869 = vmatpush3.bf16.msra.mxu1 %v5501_v28 }
 0x8c1   : > { %v4758_v57 = vpop.f32.mrf.mxu1 }
 0x8c3   : > { %v4759_v24 = vpop.f32.mrf.mxu1 }
 0x8c4   : > { %v4760_v9 = vadd.f32 %v4759_v24, %v4758_v57 }
 0x8c5   : > { %v4761_v8 = vpop.f32.mrf.mxu1 }
 0x8c6   : > { %v3802_v60 = vadd.f32 %v4760_v9, %v7905_v38 }
 0x8c7   : > { %v4762_v59 = vpop.f32.mrf.mxu1 }
 0x8c8   : > { %v3880_v26 = vmul.f32 0.70710677, %v3802_v60  ;;  %v4763_v55 = vadd.f32 %v4762_v59, %v4761_v8  ;;  %v3864_v27 = vmul.f32 0.5, %v3802_v60 }
 0x8c9   : > { %v4764_v61 = vpop.f32.mrf.mxu1 }
 0x8ca   : > { %5630 = verf.f32 %v3880_v26  ;;  %v3805_v5 = vadd.f32 %v4763_v55, %v7905_v38 }
 0x8cb   : > { %v4765_v16 = vpop.f32.mrf.mxu1 }
 0x8cc   : > { %v3881_v3 = vmul.f32 0.70710677, %v3805_v5  ;;  %v4766_v51 = vadd.f32 %v4765_v16, %v4764_v61  ;;  %v3865_v17 = vmul.f32 0.5, %v3805_v5 }
 0x8cd   : > { %v4767_v36 = vpop.f32.mrf.mxu1 }
 0x8ce   : > { %5632 = verf.f32 %v3881_v3  ;;  %v3810_v1 = vadd.f32 %v4766_v51, %v7905_v38 }
 0x8cf   : > { %v4768_v40 = vpop.f32.mrf.mxu1 }
 0x8d0   : > { %v3882_v54 = vmul.f32 0.70710677, %v3810_v1  ;;  %v4769_v39 = vadd.f32 %v4768_v40, %v4767_v36  ;;  %v3866_v22 = vmul.f32 0.5, %v3810_v1 }
 0x8d2   : > { %5634 = verf.f32 %v3882_v54  ;;  %v3813_v10 = vadd.f32 %v4769_v39, %v7905_v38 }
 0x8d3   : > { %v4770_v32 = vpop.f32.mrf.mxu1 }
 0x8d4   : > { %v3883_v19 = vmul.f32 0.70710677, %v3813_v10  ;;  %v3867_v46 = vmul.f32 0.5, %v3813_v10 }
 0x8d5   : > { %v4771_v43 = vpop.f32.mrf.mxu1 }
 0x8d6   : > { %v4772_v14 = vadd.f32 %v4771_v43, %v4770_v32  ;;  %5636 = verf.f32 %v3883_v19 }
 0x8d7   : > { %v5631_v29 = vpop.eup %5630  ;;  %v4773_v7 = vpop.f32.mrf.mxu1 }
 0x8d8   : > { %v3818_v44 = vadd.f32 %v4772_v14, %v7905_v38  ;;  %v3912_v25 = vadd.f32 1.0, %v5631_v29 }
 0x8d9   : > { %v4774_v62 = vpop.f32.mrf.mxu1 }
 0x8da   : > { %v3884_v21 = vmul.f32 0.70710677, %v3818_v44  ;;  %v4775_v48 = vadd.f32 %v4774_v62, %v4773_v7  ;;  %v3928_v35 = vmul.f32 %v3912_v25, %v3864_v27  ;;  %v3868_v5 = vmul.f32 0.5, %v3818_v44 }
 0x8db   : > { %v5633_v49 = vpop.eup %5632  ;;  %v4776_v13 = vpop.f32.mrf.mxu1 }
 0x8dc   : > { %5638 = verf.f32 %v3884_v21  ;;  %v3821_v33 = vadd.f32 %v4775_v48, %v7905_v38  ;;  %v3913_v23 = vadd.f32 1.0, %v5633_v49 }
 0x8dd   : > { %v4777_v18 = vpop.f32.mrf.mxu1 }
 0x8de   : > { %v3885_v50 = vmul.f32 0.70710677, %v3821_v33  ;;  %v4778_v41 = vadd.f32 %v4777_v18, %v4776_v13  ;;  %v3929_v31 = vmul.f32 %v3913_v23, %v3865_v17  ;;  %v3869_v3 = vmul.f32 0.5, %v3821_v33 }
 0x8df   : > { %v4779_v30 = vpop.f32.mrf.mxu1  ;;  %v5635_v2 = vpop.eup %5634 }
 0x8e0   : > { %5640 = verf.f32 %v3885_v50  ;;  %v3826_v6 = vadd.f32 %v4778_v41, %v7905_v38  ;;  %v3944_v53 = vpack.c.bf16 %v3929_v31, %v3928_v35  ;;  %v3914_v11 = vadd.f32 1.0, %v5635_v2 }
 0x8e1   : > { %v4780_v47 = vpop.f32.mrf.mxu1 }
 0x8e2   : > { %v3886_v4 = vmul.f32 0.70710677, %v3826_v6  ;;  %v4781_v58 = vadd.f32 %v4780_v47, %v4779_v30  ;;  %4838 = vmatprep.mubr.bf16.mxu0 %v3944_v53  ;;  %v3930_v56 = vmul.f32 %v3914_v11, %v3866_v22  ;;  %v3870_v21 = vmul.f32 0.5, %v3826_v6 }
 0x8e3   : > { %v5637_v34 = vpop.eup %5636 }
 0x8e4   : > { %v4782_v15 = vpop.f32.mrf.mxu1  ;;  %5642 = verf.f32 %v3886_v4  ;;  %v3829_v20 = vadd.f32 %v4781_v58, %v7905_v38  ;;  %v3915_v52 = vadd.f32 1.0, %v5637_v34 }
 0x8e6   : > { %v4783_v45 = vpop.f32.mrf.mxu1  ;;  %v3887_v37 = vmul.f32 0.70710677, %v3829_v20  ;;  %v3931_v0 = vmul.f32 %v3915_v52, %v3867_v46  ;;  %v3871_v25 = vmul.f32 0.5, %v3829_v20 }
 0x8e7   : > { %v4784_v63 = vadd.f32 %v4783_v45, %v4782_v15 }
 0x8e8   : > { %v4785_v42 = vpop.f32.mrf.mxu1  ;;  %5644 = verf.f32 %v3887_v37  ;;  %v3945_v24 = vpack.c.bf16 %v3931_v0, %v3930_v56 }
 0x8e9   : > { %v3834_v12 = vadd.f32 %v4784_v63, %v7905_v38  ;;  %v5639_v28 = vpop.eup %5638 }
 0x8ea   : > { %v4786_v57 = vpop.f32.mrf.mxu1  ;;  %4839 = vmatmul.mubr.bf16.vlgmr.msra.gmra.mxu0 %v3945_v24  ;;  %v3916_v26 = vadd.f32 1.0, %v5639_v28 }
 0x8eb   : > { %v3888_v9 = vmul.f32 0.70710677, %v3834_v12  ;;  %v4787_v8 = vadd.f32 %v4786_v57, %v4785_v42  ;;  %v3872_v34 = vmul.f32 0.5, %v3834_v12 }
 0x8ec   : > { %v4788_v60 = vpop.f32.mrf.mxu1  ;;  %v3932_v54 = vmul.f32 %v3916_v26, %v3868_v5 }
 0x8ed   : > { %v3837_v59 = vadd.f32 %v4787_v8, %v7905_v38  ;;  %v5641_v55 = vpop.eup %5640  ;;  %5646 = verf.f32 %v3888_v9 }
 0x8ee   : > { %v4789_v61 = vpop.f32.mrf.mxu1  ;;  %v3917_v36 = vadd.f32 1.0, %v5641_v55 }
 0x8ef   : > { %v3889_v16 = vmul.f32 0.70710677, %v3837_v59  ;;  %v4790_v51 = vadd.f32 %v4789_v61, %v4788_v60  ;;  %v3873_v58 = vmul.f32 0.5, %v3837_v59 }
 0x8f0   : > { %v4791_v1 = vpop.f32.mrf.mxu1  ;;  %v3933_v39 = vmul.f32 %v3917_v36, %v3869_v3 }
 0x8f1   : > { %5648 = verf.f32 %v3889_v16  ;;  %v3842_v40 = vadd.f32 %v4790_v51, %v7905_v38  ;;  %v5643_v32 = vpop.eup %5642 }
 0x8f2   : > { %v4792_v10 = vpop.f32.mrf.mxu1  ;;  %v3946_v14 = vpack.c.bf16 %v3933_v39, %v3932_v54  ;;  %v3918_v44 = vadd.f32 1.0, %v5643_v32 }
 0x8f3   : > { %v3890_v43 = vmul.f32 0.70710677, %v3842_v40  ;;  %v4793_v19 = vadd.f32 %v4792_v10, %v4791_v1  ;;  %v3874_v9 = vmul.f32 0.5, %v3842_v40 }
 0x8f4   : > { %v4794_v29 = vpop.f32.mrf.mxu1  ;;  %4842 = vmatprep.mubr.bf16.mxu0 %v3946_v14  ;;  %v3934_v23 = vmul.f32 %v3918_v44, %v3870_v21  ;;  %v4726_v44 = vld [vmem:[%s8439_s14] ss:$0 sm:$0xff] }
 0x8f5   : > { %5650 = verf.f32 %v3890_v43  ;;  %v3845_v7 = vadd.f32 %v4793_v19, %v7905_v38  ;;  %v5645_v62 = vpop.eup %5644 }
 0x8f6   : > { %v4795_v48 = vpop.f32.mrf.mxu1  ;;  %v3919_v13 = vadd.f32 1.0, %v5645_v62 }
 0x8f7   : > { %v3891_v49 = vmul.f32 0.70710677, %v3845_v7  ;;  %v4796_v27 = vadd.f32 %v4795_v48, %v4794_v29  ;;  %v3875_v8 = vmul.f32 0.5, %v3845_v7 }
 0x8f8   : > { %v4797_v17 = vpop.f32.mrf.mxu1  ;;  %v3935_v18 = vmul.f32 %v3919_v13, %v3871_v25 }
 0x8f9   : > { %5652 = verf.f32 %v3891_v49  ;;  %v3850_v33 = vadd.f32 %v4796_v27, %v7905_v38 }
 0x8fa   : > { %v4798_v50 = vpop.f32.mrf.mxu1  ;;  %v5647_v41 = vpop.eup %5646  ;;  %v3947_v30 = vpack.c.bf16 %v3935_v18, %v3934_v23 }
 0x8fb   : > { %v3892_v35 = vmul.f32 0.70710677, %v3850_v33  ;;  %v4799_v31 = vadd.f32 %v4798_v50, %v4797_v17  ;;  %v3920_v4 = vadd.f32 1.0, %v5647_v41  ;;  %v3876_v16 = vmul.f32 0.5, %v3850_v33 }
 0x8fc   : > { %v4800_v53 = vpop.f32.mrf.mxu1  ;;  %4843 = vmatmul.mubr.bf16.gmra.mxu0 %v3947_v30 }
 0x8fd   : > { %5654 = verf.f32 %v3892_v35  ;;  %v3853_v6 = vadd.f32 %v4799_v31, %v7905_v38  ;;  %v3936_v63 = vmul.f32 %v3920_v4, %v3872_v34 }
 0x8fe   : > { %v5649_v2 = vpop.eup %5648  ;;  %v4801_v47 = vpop.f32.mrf.mxu1 }
 0x8ff   : > { %v3893_v15 = vmul.f32 0.70710677, %v3853_v6  ;;  %v4802_v11 = vadd.f32 %v4801_v47, %v4800_v53  ;;  %v3921_v20 = vadd.f32 1.0, %v5649_v2  ;;  %v3877_v51 = vmul.f32 0.5, %v3853_v6 }
 0x900   : > { %v4803_v22 = vpop.f32.mrf.mxu1 }
 0x901   : > { %5656 = verf.f32 %v3893_v15  ;;  %v3858_v45 = vadd.f32 %v4802_v11, %v7905_v38  ;;  %v3937_v46 = vmul.f32 %v3921_v20, %v3873_v58 }
 0x902   : > { %v5651_v52 = vpop.eup %5650  ;;  %v4804_v37 = vpop.f32.mrf.mxu1 }
 0x903   : > { %v3894_v42 = vmul.f32 0.70710677, %v3858_v45  ;;  %v4805_v56 = vadd.f32 %v4804_v37, %v4803_v22  ;;  %v3948_v0 = vpack.c.bf16 %v3937_v46, %v3936_v63  ;;  %v3922_v28 = vadd.f32 1.0, %v5651_v52 }
 0x904   : > { %v3878_v10 = vmul.f32 0.5, %v3858_v45 }
 0x905   : > { %5658 = verf.f32 %v3894_v42  ;;  %v3861_v57 = vadd.f32 %v4805_v56, %v7905_v38  ;;  %4846 = vmatprep.mubr.bf16.mxu1 %v3948_v0  ;;  %v3938_v59 = vmul.f32 %v3922_v28, %v3874_v9 }
 0x906   : > { %v5653_v24 = vpop.eup %5652 }
 0x907   : > { %v3923_v12 = vadd.f32 1.0, %v5653_v24  ;;  %v3895_v60 = vmul.f32 0.70710677, %v3861_v57  ;;  %v3879_v43 = vmul.f32 0.5, %v3861_v57 }
 0x909   : > { %v3939_v26 = vmul.f32 %v3923_v12, %v3875_v8  ;;  %5660 = verf.f32 %v3895_v60 }
 0x90a   : > { %v5655_v55 = vpop.eup %5654 }
 0x90b   : > { %v3949_v5 = vpack.c.bf16 %v3939_v26, %v3938_v59  ;;  %v3924_v61 = vadd.f32 1.0, %v5655_v55 }
 0x90d   : > { %4847 = vmatmul.mubr.bf16.vlgmr.msra.gmra.mxu1 %v3949_v5  ;;  %v3940_v1 = vmul.f32 %v3924_v61, %v3876_v16 }
 0x90e   : > { %v5657_v3 = vpop.eup %5656 }
 0x90f   : > { %v3925_v36 = vadd.f32 1.0, %v5657_v3 }
 0x911   : > { %v3941_v54 = vmul.f32 %v3925_v36, %v3877_v51 }
 0x912   : > { %v5659_v38 = vpop.eup %5658 }
 0x913   : > { %v3950_v39 = vpack.c.bf16 %v3941_v54, %v3940_v1  ;;  %v3926_v40 = vadd.f32 1.0, %v5659_v38 }
 0x915   : > { %4850 = vmatprep.mubr.bf16.mxu1 %v3950_v39  ;;  %v3942_v14 = vmul.f32 %v3926_v40, %v3878_v10 }
 0x916   : > { %v5661_v32 = vpop.eup %5660 }
 0x917   : > { %v3927_v19 = vadd.f32 1.0, %v5661_v32 }
 0x919   : > { %v3943_v29 = vmul.f32 %v3927_v19, %v3879_v43 }
 0x91b   : > { %v3951_v7 = vpack.c.bf16 %v3943_v29, %v3942_v14 }
 0x91d   : > { %4851 = vmatmul.mubr.bf16.gmra.mxu1 %v3951_v7 }
 0x9aa   : > { %v4840_v62 = vpop.f32.mrf.mxu0 }
 0x9ab   : > { %v4066_v21 = vadd.f32 %v4840_v62, %v4726_v44 }
 0x9ac   : > { %v4057_v48 = vpop.f32.mrf.mxu0 }
 0x9ad   : > { %v4058_v25 = vadd.f32 %v4726_v44, %v4057_v48  ;;  %4124 = vmax.xlane.f32.xlu1 %v4066_v21 }
 0x9ae   : > { %v4841_v49 = vpop.f32.mrf.mxu0 }
 0x9af   : > { %v4069_v27 = vadd.f32 %v4841_v49, %v4726_v44  ;;  %4120 = vmax.xlane.f32.xlu0 %v4058_v25 }
 0x9b0   : > { %v4060_v13 = vpop.f32.mrf.mxu0 }
 0x9b1   : > { %v4061_v17 = vadd.f32 %v4726_v44, %v4060_v13  ;;  %4126 = vmax.xlane.f32.xlu1 %v4069_v27 }
 0x9b3   : > { %4122 = vmax.xlane.f32.xlu0 %v4061_v17 }
 0x9bc   : > { %v4844_v33 = vpop.f32.mrf.mxu0 }
 0x9bd   : > { %v4082_v23 = vadd.f32 %v4844_v33, %v4726_v44 }
 0x9be   : > { %v4073_v18 = vpop.f32.mrf.mxu0 }
 0x9bf   : > { %4132 = vmax.xlane.f32.xlu0 %v4082_v23  ;;  %v4074_v41 = vadd.f32 %v4726_v44, %v4073_v18 }
 0x9c0   : > { %v4845_v50 = vpop.f32.mrf.mxu0 }
 0x9c1   : > { %v4085_v35 = vadd.f32 %v4845_v50, %v4726_v44 }
 0x9c2   : > { %v4076_v31 = vpop.f32.mrf.mxu0 }
 0x9c3   : > { %4134 = vmax.xlane.f32.xlu1 %v4085_v35  ;;  %4128 = vmax.xlane.f32.xlu0 %v4074_v41  ;;  %v4077_v30 = vadd.f32 %v4726_v44, %v4076_v31 }
 0x9c7   : > { %4130 = vmax.xlane.f32.xlu1 %v4077_v30 }
 0x9cd   : > { %v4848_v53 = vpop.f32.mrf.mxu1 }
 0x9ce   : > { %v7926_v6 = vadd.f32 %v4848_v53, %v4726_v44 }
 0x9cf   : > { %v4089_v2 = vpop.f32.mrf.mxu1 }
 0x9d0   : > { %4140 = vmax.xlane.f32.xlu0 %v7926_v6  ;;  %v7929_v4 = vadd.f32 %v4726_v44, %v4089_v2 }
 0x9d1   : > { %v4849_v47 = vpop.f32.mrf.mxu1 }
 0x9d2   : > { %v7931_v58 = vadd.f32 %v4849_v47, %v4726_v44 }
 0x9d3   : > { %v4092_v15 = vpop.f32.mrf.mxu1 }
 0x9d4   : > { %4142 = vmax.xlane.f32.xlu1 %v7931_v58  ;;  %4136 = vmax.xlane.f32.xlu0 %v7929_v4  ;;  %v7935_v11 = vadd.f32 %v4726_v44, %v4092_v15 }
 0x9d8   : > { %4138 = vmax.xlane.f32.xlu1 %v7935_v11 }
 0x9dd   : > { %v4852_v20 = vpop.f32.mrf.mxu1 }
 0x9de   : > { %v7941_v52 = vadd.f32 %v4852_v20, %v4726_v44 }
 0x9df   : > { %v4105_v34 = vpop.f32.mrf.mxu1 }
 0x9e0   : > { %v7938_v22 = vadd.f32 %v4726_v44, %v4105_v34 }
 0x9e1   : > { %v4853_v45 = vpop.f32.mrf.mxu1 }
 0x9e2   : > { %4144 = vmax.xlane.f32.xlu0 %v7938_v22  ;;  %v7947_v63 = vadd.f32 %v4853_v45, %v4726_v44 }
 0x9e3   : > { %v4108_v46 = vpop.f32.mrf.mxu1 }
 0x9e4   : > { %v7943_v37 = vadd.f32 %v4726_v44, %v4108_v46 }
 0x9e6   : > { %4146 = vmax.xlane.f32.xlu1 %v7943_v37  ;;  %4148 = vmax.xlane.f32.xlu0 %v7941_v52 }
 0x9ea   : > { %4150 = vmax.xlane.f32.xlu1 %v7947_v63 }
 0xa36   : > { %v4125_v42 = vpop.xlane.xlu1 %4124 }
 0xa37   : > { %v7950_v56 = vsub.f32 %v4066_v21, %v4125_v42 }
 0xa38   : > { %v4121_v0 = vpop.xlane.xlu0 %4120 }
 0xa39   : > { %v4172_v28 = vmul.f32 1.442695, %v7950_v56  ;;  %v7953_v57 = vsub.f32 %v4058_v25, %v4121_v0 }
 0xa3a   : > { %v4127_v24 = vpop.xlane.xlu1 %4126 }
 0xa3b   : > { %5662 = vpow2.f32 %v4172_v28  ;;  %v4168_v9 = vmul.f32 1.442695, %v7953_v57  ;;  %v7956_v8 = vsub.f32 %v4069_v27, %v4127_v24 }
 0xa3c   : > { %v4123_v12 = vpop.xlane.xlu0 %4122 }
 0xa3d   : > { %v4174_v60 = vmul.f32 1.442695, %v7956_v8  ;;  %v7959_v59 = vsub.f32 %v4061_v17, %v4123_v12  ;;  %5664 = vpow2.f32 %v4168_v9 }
 0xa3f   : > { %5666 = vpow2.f32 %v4174_v60  ;;  %v4170_v26 = vmul.f32 1.442695, %v7959_v59 }
 0xa41   : > { %5668 = vpow2.f32 %v4170_v26 }
 0xa48   : > { %v4133_v55 = vpop.xlane.xlu0 %4132  ;;  %v5663_v61 = vpop.eup %5662 }
 0xa49   : > { %v7962_v5 = vsub.f32 %v4082_v23, %v4133_v55  ;;  %4204 = vadd.xlane.f32.xlu0 %v5663_v61 }
 0xa4a   : > { %v5665_v36 = vpop.eup %5664 }
 0xa4b   : > { %v4180_v3 = vmul.f32 1.442695, %v7962_v5 }
 0xa4c   : > { %v4135_v16 = vpop.xlane.xlu1 %4134  ;;  %v4129_v51 = vpop.xlane.xlu0 %4128 }
 0xa4d   : > { %5670 = vpow2.f32 %v4180_v3  ;;  %v7965_v1 = vsub.f32 %v4085_v35, %v4135_v16  ;;  %v7967_v54 = vsub.f32 %v4074_v41, %v4129_v51  ;;  %v5667_v38 = vpop.eup %5666  ;;  %4200 = vadd.xlane.f32.xlu0 %v5665_v36 }
 0xa4e   : > { %4206 = vadd.xlane.f32.xlu1 %v5667_v38  ;;  %v5669_v43 = vpop.eup %5668 }
 0xa4f   : > { %v4182_v39 = vmul.f32 1.442695, %v7965_v1  ;;  %v4176_v40 = vmul.f32 1.442695, %v7967_v54 }
 0xa50   : > { %v4131_v32 = vpop.xlane.xlu1 %4130 }
 0xa51   : > { %5672 = vpow2.f32 %v4182_v39  ;;  %v7971_v10 = vsub.f32 %v4077_v30, %v4131_v32 }
 0xa52   : > { %5674 = vpow2.f32 %v4176_v40  ;;  %4202 = vadd.xlane.f32.xlu1 %v5669_v43 }
 0xa53   : > { %v4178_v19 = vmul.f32 1.442695, %v7971_v10 }
 0xa55   : > { %5676 = vpow2.f32 %v4178_v19 }
 0xa59   : > { %v4141_v14 = vpop.xlane.xlu0 %4140 }
 0xa5a   : > { %v7975_v29 = vsub.f32 %v7926_v6, %v4141_v14  ;;  %v5671_v7 = vpop.eup %5670 }
 0xa5b   : > { %4212 = vadd.xlane.f32.xlu0 %v5671_v7 }
 0xa5c   : > { %v4188_v44 = vmul.f32 1.442695, %v7975_v29 }
 0xa5d   : > { %v4143_v62 = vpop.xlane.xlu1 %4142  ;;  %v4137_v21 = vpop.xlane.xlu0 %4136 }
 0xa5e   : > { %5678 = vpow2.f32 %v4188_v44  ;;  %v7979_v48 = vsub.f32 %v7931_v58, %v4143_v62  ;;  %v7982_v25 = vsub.f32 %v7929_v4, %v4137_v21  ;;  %v5673_v49 = vpop.eup %5672 }
 0xa5f   : > { %v5675_v27 = vpop.eup %5674  ;;  %4214 = vadd.xlane.f32.xlu1 %v5673_v49 }
 0xa60   : > { %v4190_v13 = vmul.f32 1.442695, %v7979_v48  ;;  %v4184_v17 = vmul.f32 1.442695, %v7982_v25  ;;  %4208 = vadd.xlane.f32.xlu0 %v5675_v27 }
 0xa61   : > { %v4139_v33 = vpop.xlane.xlu1 %4138 }
 0xa62   : > { %5680 = vpow2.f32 %v4190_v13  ;;  %v7987_v23 = vsub.f32 %v7935_v11, %v4139_v33  ;;  %v5677_v18 = vpop.eup %5676 }
 0xa63   : > { %5682 = vpow2.f32 %v4184_v17  ;;  %4210 = vadd.xlane.f32.xlu1 %v5677_v18 }
 0xa64   : > { %v4186_v50 = vmul.f32 1.442695, %v7987_v23 }
 0xa66   : > { %5684 = vpow2.f32 %v4186_v50 }
 0xa6b   : > { %v5679_v41 = vpop.eup %5678  ;;  %v4145_v35 = vpop.xlane.xlu0 %4144 }
 0xa6c   : > { %v7991_v31 = vsub.f32 %v7938_v22, %v4145_v35  ;;  %4220 = vadd.xlane.f32.xlu0 %v5679_v41 }
 0xa6e   : > { %v4192_v30 = vmul.f32 1.442695, %v7991_v31 }
 0xa6f   : > { %v5681_v53 = vpop.eup %5680  ;;  %v4147_v6 = vpop.xlane.xlu1 %4146 }
 0xa70   : > { %v4149_v2 = vpop.xlane.xlu0 %4148  ;;  %v5683_v47 = vpop.eup %5682  ;;  %5686 = vpow2.f32 %v4192_v30  ;;  %v7995_v4 = vsub.f32 %v7943_v37, %v4147_v6  ;;  %4222 = vadd.xlane.f32.xlu1 %v5681_v53 }
 0xa71   : > { %v7998_v58 = vsub.f32 %v7941_v52, %v4149_v2  ;;  %4216 = vadd.xlane.f32.xlu0 %v5683_v47 }
 0xa72   : > { %v4194_v15 = vmul.f32 1.442695, %v7995_v4 }
 0xa73   : > { %v4196_v11 = vmul.f32 1.442695, %v7998_v58  ;;  %v5685_v20 = vpop.eup %5684  ;;  %v4151_v34 = vpop.xlane.xlu1 %4150 }
 0xa74   : > { %5688 = vpow2.f32 %v4194_v15  ;;  %v8003_v22 = vsub.f32 %v7947_v63, %v4151_v34  ;;  %4218 = vadd.xlane.f32.xlu1 %v5685_v20 }
 0xa75   : > { %5690 = vpow2.f32 %v4196_v11 }
 0xa76   : > { %v4198_v45 = vmul.f32 1.442695, %v8003_v22 }
 0xa78   : > { %5692 = vpow2.f32 %v4198_v45 }
 0xa7d   : > { %v5687_v46 = vpop.eup %5686 }
 0xa7e   : > { %4224 = vadd.xlane.f32.xlu0 %v5687_v46 }
 0xa81   : > { %v5689_v52 = vpop.eup %5688 }
 0xa82   : > { %v5691_v37 = vpop.eup %5690  ;;  %4226 = vadd.xlane.f32.xlu1 %v5689_v52 }
 0xa83   : > { %4228 = vadd.xlane.f32.xlu0 %v5691_v37 }
 0xa85   : > { %v5693_v42 = vpop.eup %5692 }
 0xa86   : > { %4230 = vadd.xlane.f32.xlu1 %v5693_v42 }
 0xad2   : > { %v4205_v0 = vpop.xlane.xlu0 %4204 }
 0xad3   : > { %5694 = vlog2.f32 %v4205_v0 }
 0xad6   : > { %v4201_v24 = vpop.xlane.xlu0 %4200 }
 0xad7   : > { %v4207_v28 = vpop.xlane.xlu1 %4206 }
 0xad8   : > { %5696 = vlog2.f32 %v4207_v28 }
 0xad9   : > { %5698 = vlog2.f32 %v4201_v24 }
 0xadb   : > { %v4203_v63 = vpop.xlane.xlu1 %4202 }
 0xadc   : > { %5700 = vlog2.f32 %v4203_v63 }
 0xae0   : > { %v5695_v9 = vpop.eup %5694 }
 0xae1   : > { %v4237_v12 = vmul.f32 0.6931472, %v5695_v9 }
 0xae3   : > { %v4266_v26 = vsub.f32 %v7950_v56, %v4237_v12 }
 0xae4   : > { %v4213_v60 = vpop.xlane.xlu0 %4212 }
 0xae5   : > { %5702 = vlog2.f32 %v4213_v60  ;;  %v5697_v55 = vpop.eup %5696  ;;  %4282 = vst [vmem:[%s7288_s7 + $0x10] sm:$0xff] %v4266_v26 }
 0xae6   : > { %v5699_v61 = vpop.eup %5698  ;;  %v4239_v3 = vmul.f32 0.6931472, %v5697_v55 }
 0xae7   : > { %v4233_v16 = vmul.f32 0.6931472, %v5699_v61 }
 0xae8   : > { %v4215_v51 = vpop.xlane.xlu1 %4214  ;;  %v4267_v36 = vsub.f32 %v7956_v8, %v4239_v3 }
 0xae9   : > { %5704 = vlog2.f32 %v4215_v51  ;;  %v4209_v38 = vpop.xlane.xlu0 %4208  ;;  %v5701_v39 = vpop.eup %5700  ;;  %v4264_v40 = vsub.f32 %v7953_v57, %v4233_v16 }
 0xaea   : > { %5706 = vlog2.f32 %v4209_v38  ;;  %4283 = vst [vmem:[%s7288_s7 + $0x18] sm:$0xff] %v4267_v36  ;;  %v4235_v56 = vmul.f32 0.6931472, %v5701_v39 }
 0xaeb   : > { %4280 = vst [vmem:[%s7288_s7] sm:$0xff] %v4264_v40 }
 0xaec   : > { %v4211_v32 = vpop.xlane.xlu1 %4210  ;;  %v4265_v43 = vsub.f32 %v7959_v59, %v4235_v56 }
 0xaed   : > { %5708 = vlog2.f32 %v4211_v32 }
 0xaee   : > { %4281 = vst [vmem:[%s7288_s7 + $0x8] sm:$0xff] %v4265_v43 }
 0xaf2   : > { %v5703_v19 = vpop.eup %5702 }
 0xaf3   : > { %v4245_v14 = vmul.f32 0.6931472, %v5703_v19 }
 0xaf5   : > { %v4221_v7 = vpop.xlane.xlu0 %4220  ;;  %v4270_v8 = vsub.f32 %v7962_v5, %v4245_v14 }
 0xaf6   : > { %5710 = vlog2.f32 %v4221_v7  ;;  %v5705_v44 = vpop.eup %5704 }
 0xaf7   : > { %v5707_v57 = vpop.eup %5706  ;;  %4286 = vst [vmem:[%s7288_s7 + $0x30] sm:$0xff] %v4270_v8  ;;  %v4247_v62 = vmul.f32 0.6931472, %v5705_v44 }
 0xaf8   : > { %v4241_v21 = vmul.f32 0.6931472, %v5707_v57 }
 0xaf9   : > { %v4223_v49 = vpop.xlane.xlu1 %4222  ;;  %v4271_v27 = vsub.f32 %v7965_v1, %v4247_v62 }
 0xafa   : > { %5712 = vlog2.f32 %v4223_v49  ;;  %v4217_v59 = vpop.xlane.xlu0 %4216  ;;  %v5709_v13 = vpop.eup %5708  ;;  %v4268_v17 = vsub.f32 %v7967_v54, %v4241_v21 }
 0xafb   : > { %5714 = vlog2.f32 %v4217_v59  ;;  %4287 = vst [vmem:[%s7288_s7 + $0x38] sm:$0xff] %v4271_v27  ;;  %v4243_v5 = vmul.f32 0.6931472, %v5709_v13 }
 0xafc   : > { %4284 = vst [vmem:[%s7288_s7 + $0x20] sm:$0xff] %v4268_v17 }
 0xafd   : > { %v4219_v33 = vpop.xlane.xlu1 %4218  ;;  %v4269_v18 = vsub.f32 %v7971_v10, %v4243_v5 }
 0xafe   : > { %5716 = vlog2.f32 %v4219_v33 }
 0xaff   : > { %4285 = vst [vmem:[%s7288_s7 + $0x28] sm:$0xff] %v4269_v18 }
 0xb03   : > { %v5711_v50 = vpop.eup %5710 }
 0xb04   : > { %v4253_v41 = vmul.f32 0.6931472, %v5711_v50 }
 0xb06   : > { %v4274_v1 = vsub.f32 %v7975_v29, %v4253_v41 }
 0xb07   : > { %v5713_v35 = vpop.eup %5712  ;;  %v4225_v30 = vpop.xlane.xlu0 %4224 }
 0xb08   : > { %v5715_v53 = vpop.eup %5714  ;;  %4290 = vst [vmem:[%s7288_s7 + $0x50] sm:$0xff] %v4274_v1  ;;  %v4255_v54 = vmul.f32 0.6931472, %v5713_v35  ;;  %5718 = vlog2.f32 %v4225_v30 }
 0xb09   : > { %v4249_v6 = vmul.f32 0.6931472, %v5715_v53 }
 0xb0a   : > { %v4275_v2 = vsub.f32 %v7979_v48, %v4255_v54 }
 0xb0b   : > { %v5717_v47 = vpop.eup %5716  ;;  %v4272_v10 = vsub.f32 %v7982_v25, %v4249_v6  ;;  %v4227_v15 = vpop.xlane.xlu1 %4226 }
 0xb0c   : > { %4291 = vst [vmem:[%s7288_s7 + $0x58] sm:$0xff] %v4275_v2  ;;  %v4251_v11 = vmul.f32 0.6931472, %v5717_v47  ;;  %5720 = vlog2.f32 %v4227_v15  ;;  %v4229_v29 = vpop.xlane.xlu0 %4228 }
 0xb0d   : > { %4288 = vst [vmem:[%s7288_s7 + $0x40] sm:$0xff] %v4272_v10  ;;  %5722 = vlog2.f32 %v4229_v29 }
 0xb0e   : > { %v4273_v20 = vsub.f32 %v7987_v23, %v4251_v11 }
 0xb0f   : > { %v4231_v34 = vpop.xlane.xlu1 %4230 }
 0xb10   : > { %4289 = vst [vmem:[%s7288_s7 + $0x48] sm:$0xff] %v4273_v20  ;;  %5724 = vlog2.f32 %v4231_v34 }
 0xb15   : > { %v5719_v48 = vpop.eup %5718 }
 0xb16   : > { %v4257_v45 = vmul.f32 0.6931472, %v5719_v48 }
 0xb18   : > { %v4276_v25 = vsub.f32 %v7991_v31, %v4257_v45 }
 0xb19   : > { %v5721_v46 = vpop.eup %5720 }
 0xb1a   : > { %v5723_v52 = vpop.eup %5722  ;;  %4292 = vst [vmem:[%s7288_s7 + $0x60] sm:$0xff] %v4276_v25  ;;  %v4259_v37 = vmul.f32 0.6931472, %v5721_v46 }
 0xb1b   : > { %v4261_v42 = vmul.f32 0.6931472, %v5723_v52 }
 0xb1c   : > { %v4277_v0 = vsub.f32 %v7995_v4, %v4259_v37 }
 0xb1d   : > { %v5725_v28 = vpop.eup %5724  ;;  %v4278_v24 = vsub.f32 %v7998_v58, %v4261_v42 }
 0xb1e   : > { %4293 = vst [vmem:[%s7288_s7 + $0x68] sm:$0xff] %v4277_v0  ;;  %v4263_v23 = vmul.f32 0.6931472, %v5725_v28 }
 0xb1f   : > { %4294 = vst [vmem:[%s7288_s7 + $0x70] sm:$0xff] %v4278_v24 }
 0xb20   : > { %v4279_v63 = vsub.f32 %v8003_v22, %v4263_v23 }
 0xb22   : > { %4295 = vst [vmem:[%s7288_s7 + $0x78] sm:$0xff] %v4279_v63 }
 0xb23 PF: > { %s8440_s18 = sld [smem:[#allocation30_spill]]  ;;  %s4313_s3 = sshll.u32 %s7288_s7, 4  ;;  %s8042_s3 = int_to_ptr.vmem [resolvable:$true] %s4313_s3 }
 0xb24   : > { %s8441_s0 = sld [smem:[#allocation29_spill]]  ;;  %s8051_s6 = scalar_lea.sflag [#allocation7], %s615_s1 }
 0xb25   : > { %s8442_s5 = sld [smem:[#allocation31_spill]]  ;;  %s5938_s14 = scalar_lea.vmem %s8042_s3, 2048 }
 0xb26   : > { %s8444_s19 = sld [smem:[#allocation85_spill]]  ;;  %p5939_p1 = scmp.ne.s32.totalorder %s8042_s3, %s5938_s14 }
 0xb27   : > { %p8446_p3 = scmp.ne.s32.totalorder %s8271_s12, 0  ;;  %s6139_s7 = smov [#allocation19]  }
 0xb29   : > { %p5940_p11 = pnand %p5939_p1, %p8446_p3 }
 0xb2a   : > { %s4304_s11 = smul.u32 %s8441_s0, %s8440_s18  ;;  %s5942_s18 = sshll.u32 %s6139_s7, 4  ;;  %s5943_s18 = int_to_ptr.vmem [resolvable:$false] %s5942_s18 }
 0xb2b   : > { %s4737_s9 = sshll.u32 %s8442_s5, 5  ;;  %p5941_p13 = pneg %p5940_p11 }
 0xb2c   : > { %s4736_s2 = sshll.u32 %s4304_s11, 4  ;;  %s8445_s10 = smov %s8444_s19 }
 0xb2d   : > { %s4310_s13 = sadd.s32 %s4737_s9, %s4736_s2  ;;  %s5944_s0 = scalar_lea.vmem %s5943_s18, 4096 }
 0xb2e   : > { %s4738_s25 = sshll.u32 %s4310_s13, 7  ;;  %p5945_p7 = scmp.lt.s32.totalorder %s8042_s3, %s5943_s18 }
 0xb2f   : > { %s8047_s28 = scalar_lea.hbm %s8444_s19, %s4738_s25  ;;  %p5946_p4 = scmp.lt.s32.totalorder %s5944_s0, %s5938_s14 }
 0xb31   : > { %p5947_p6 = por %p5946_p4, %p5945_p7 }
 0xb33   : > { %p5948_p9 = pnand %p5947_p6, %p5941_p13 }
 0xb35   : > { %5951 = shalt.err (!%p5948_p9)
}
 0xb36   : > { %s5952_s1 = scalar_lea.hbm %s8047_s28, 2048  ;;  %s5956_s11 = scalar_lea.hbm %s8445_s10, 8192 }
 0xb37   : > { %p5953_p10 = scmp.ne.s32.totalorder %s8047_s28, %s5952_s1  ;;  %p5957_p5 = scmp.lt.s32.totalorder %s8047_s28, %s8445_s10 }
 0xb38   : > { %p5958_p2 = scmp.lt.s32.totalorder %s5956_s11, %s5952_s1 }
 0xb39   : > { %p5954_p12 = pnand %p5953_p10, %p8446_p3 }
 0xb3a   : > { %p5959_p8 = por %p5958_p2, %p5957_p5 }
 0xb3b   : > { %p5955_p0 = pneg %p5954_p12 }
 0xb3d   : > { %p5960_p1 = pnand %p5959_p8, %p5955_p0 }
 0xb3f   : > { %5963 = shalt.err (!%p5960_p1)
}
 0xb40   : > { %s6140_s13 = smov 128   ;;  %s6141_s25 = smov 8  }
 0xb41   : > { %4898 = dma.vmem_to_hbm [thread:$0]  (%p8446_p3), %s8042_s3, 2048, %s8047_s28, %s8051_s6, %s6140_s13, %s6140_s13, %s6141_s25  }
 0xb42 PF: > { %s8447_s26 = sld [smem:[#allocation27_spill]]  ;;  %p4943_p11 = scmp.ge.s32.totalorder %s6118_s23, 2 }
 0xb43   : > { %p8448_p13 = scmp.ne.s32.totalorder %s8273_s4, 0 }
 0xb45   : > { %p4927_p7 = pnand %p4943_p11, %p8448_p13 }
 0xb47   : > { %p4928_p4 = pneg %p4927_p7 }
 0xb48   : > { %s4328_s24 = sand.u32 1, %s8447_s26  }
 0xb49   : > { %s4329_s19 = scalar_lea.sflag [#allocation7], %s4328_s24 }
 0xb4a   : > { %6053 = dma.done.wait (%p4928_p4), %s4329_s19, 2048  }
 0xb4b   : > { %6055 = vsyncadd (%p4928_p4), %s4329_s19, 4294965248  ;;  %s35_s23 = sadd.s32 1, %s6118_s23   ;;  %s8450_s25 = sld [smem:[#allocation28_spill]] }
 0xb4c   : > { %p8079_p6 = scmp.ge.s32.totalorder %s35_s23, 10   ;;  %s8451_s12 = sld [smem:[#allocation32_spill]] }
 0xb4d   : > { %s8452_s18 = sld [smem:[#allocation33_spill]]  ;;  %s8457_s26 = smov %s6066_s27 }
 0xb4e   : > { %s8453_s4 = sld [smem:[#allocation35_spill]]  ;;  %s8458_s27 = smov %s6466_s17 }
 0xb4f   : > { %s8454_s3 = sld [smem:[#allocation36_spill]]  ;;  %s8459_s28 = smov %s6074_s29 }
 0xb50   : > { %s8455_s6 = sld [smem:[#allocation37_spill]]  ;;  %s8460_s29 = smov %s6078_s30 }
 0xb51   : > { %s8461_s30 = smov %s6454_s20  ;;  %s8462_s14 = smov %s6086_s15 }
 0xb52   : > { %s8463_s15 = smov %s6090_s16  ;;  %s8464_s16 = smov %s6451_s21 }
 0xb53   : > { %s8465_s17 = smov %s8451_s12  ;;  %s8466_s19 = smov %s6114_s22 }
 0xb54   : > { %s8467_s20 = smov %s8453_s4  ;;  %34 = sbr.rel (!%p8079_p6) target bundleno = 31 (0x1f), region = 170 }
 0xb55   : > { %s8468_s21 = smov %s8454_s3 }
 0xb56   : > { %s8469_s22 = smov %s8455_s6 }
 0xb59   :  { %4334 = vsyncpa [#allocation6], 1 }
 0xb5a   :  { %4336 = vsyncpa [#allocation6 + $0x1], 1 }
 0xb5b   :  { %4337 = vsyncpa [#allocation9], 1 }
 0xb5c   :  { %4339 = vsyncpa [#allocation9 + $0x1], 1 }
 0xb5d   :  { %4340 = vsyncpa [#allocation12], 1 }
 0xb5e   :  { %4341 = vsyncpa [#allocation15], 1 }
 0xb5f   :  { %4342 = vsyncpa [#allocation18], 1 }
 0xb60   :  { %4343 = vsyncpa [#allocation7], 1 }
 0xb61   :  { %4345 = vsyncpa [#allocation7 + $0x1], 1 }

</bundles_post_ra>
